<compile_context>
chip_gen: v7x
topology: tpu7x:2x2x1
jax: 0.10.0
libtpu: 0.0.40
codegen_flags: <defaults>
</compile_context>

<pallas_src>
import functools

import jax
import jax.numpy as jnp
from jax import lax
from jax.experimental import pallas as pl
from jax.experimental.pallas import tpu as pltpu


LN_EPS = 1e-5                    # PyTorch nn.LayerNorm default
INV_SQRT2 = 0.7071067811865476   # 1/sqrt(2), folded into a multiply


def _round_up(x, m):
    return ((x + m - 1) // m) * m


def ffn_kernel(x_ref, gamma_ref, beta_ref, w1_ref, b1_ref, w2_ref, b2_ref,
               o_ref, *, approx_gelu=False):
    """One (tile_t, dim) token tile: LayerNorm -> Linear -> GELU -> Linear."""
    x = x_ref[...].astype(jnp.float32)

    # LayerNorm over the feature (lane) dim: biased variance, eps inside rsqrt.
    mu = jnp.mean(x, axis=-1, keepdims=True)
    xc = x - mu
    var = jnp.mean(xc * xc, axis=-1, keepdims=True)
    xn = xc * lax.rsqrt(var + LN_EPS)
    xn = xn * gamma_ref[...] + beta_ref[...]

    # Linear 1 (dim -> hidden). MXU operands in the weight dtype (bf16 when
    # enabled); f32 accumulation.
    h = jnp.dot(xn.astype(w1_ref.dtype), w1_ref[...],
                preferred_element_type=jnp.float32) + b1_ref[...]

    # GELU. Exact erf form matches PyTorch nn.GELU() (module default); the
    # tanh approximation (EUP, separate bundle slot) is available via flag.
    if approx_gelu:
        h = jax.nn.gelu(h, approximate=True)
    else:
        h = 0.5 * h * (1.0 + lax.erf(h * INV_SQRT2))

    # Linear 2 (hidden -> dim).
    y = jnp.dot(h.astype(w2_ref.dtype), w2_ref[...],
                preferred_element_type=jnp.float32) + b2_ref[...]

    o_ref[...] = y.astype(o_ref.dtype)


def _const_spec(block_shape, single_buffer):
    """BlockSpec for an operand whose block never changes across the grid."""
    index_map = lambda i: (0,) * len(block_shape)
    if single_buffer:
        # Constant index_map -> no double-buffering needed; halves the
        # resident VMEM footprint of the weights/params.
        return pl.BlockSpec(block_shape, index_map,
                            pipeline_mode=pl.Buffered(1))
    return pl.BlockSpec(block_shape, index_map)


def _ffn_pallas(kernel, x2, gamma2, beta2, w1, b1_2, w2, b2_2, *,
                tile_t, single_buffer):
    T, dim = x2.shape
    hidden = w1.shape[1]
    grid = (T // tile_t,)

    # TODO(synk): for ViT-Large-scale weights on v7x (64 MiB VMEM), add a grid
    # axis over `hidden` chunks with an f32 (tile_t, dim) accumulator instead
    # of keeping W1/W2 fully resident.
    in_specs = [
        pl.BlockSpec((tile_t, dim), lambda i: (i, 0)),   # x tile
        _const_spec((1, dim), single_buffer),            # gamma
        _const_spec((1, dim), single_buffer),            # beta
        _const_spec((dim, hidden), single_buffer),       # W1
        _const_spec((1, hidden), single_buffer),         # b1
        _const_spec((hidden, dim), single_buffer),       # W2
        _const_spec((1, dim), single_buffer),            # b2
    ]

    return pl.pallas_call(
        kernel,
        out_shape=jax.ShapeDtypeStruct((T, dim), x2.dtype),
        grid=grid,
        in_specs=in_specs,
        out_specs=pl.BlockSpec((tile_t, dim), lambda i: (i, 0)),
        compiler_params=pltpu.CompilerParams(
            dimension_semantics=("parallel",),      # shards across TCs on v7x
            vmem_limit_bytes=64 * 1024 * 1024,      # > v5e 16 MiB scoped default
        ),
    )(x2, gamma2, beta2, w1, b1_2, w2, b2_2)


def feed_forward(x, gamma, beta, w1, b1, w2, b2, *, tile_t=256,
                 use_bf16_matmul=True, approx_gelu=False):
    """SimpleViT FeedForward: x (B, S, dim) -> (B, S, dim)."""
    B, S, dim = x.shape
    hidden = w1.shape[1]
    T = B * S

    # Token tile: multiple of 8 sublanes (default 256 = MXU M-dim multiple on
    # v6e/v7x). Pad the token count up to a tile multiple instead of asserting.
    tile_t = max(8, _round_up(int(tile_t), 8))
    tile_t = min(tile_t, _round_up(T, 8))
    T_pad = _round_up(T, tile_t)

    x2 = x.reshape(T, dim)
    if T_pad != T:
        x2 = jnp.pad(x2, ((0, T_pad - T), (0, 0)))

    gamma2 = gamma.reshape(1, dim).astype(jnp.float32)
    beta2 = beta.reshape(1, dim).astype(jnp.float32)
    b1_2 = b1.reshape(1, hidden).astype(jnp.float32)
    b2_2 = b2.reshape(1, dim).astype(jnp.float32)

    # bf16 MXU operands (f32 accumulation in-kernel); also halves weight VMEM.
    w_dtype = jnp.bfloat16 if use_bf16_matmul else jnp.float32
    w1c = w1.astype(w_dtype)
    w2c = w2.astype(w_dtype)

    kernel = functools.partial(ffn_kernel, approx_gelu=approx_gelu)

    out = None
    last_err = None
    for single_buffer in (True, False):  # fall back if Buffered(1) is rejected
        try:
            out = _ffn_pallas(kernel, x2, gamma2, beta2, w1c, b1_2, w2c, b2_2,
                              tile_t=tile_t, single_buffer=single_buffer)
            out = jax.block_until_ready(out)
            break
        except Exception as err:  # noqa: BLE001 - retry with default specs
            last_err = err
            out = None
    if out is None:
        raise last_err

    if T_pad != T:
        out = out[:T]
    return out.reshape(B, S, dim)


def reference_ffn(x, gamma, beta, w1, b1, w2, b2, *,
                  matmul_dtype=jnp.float32, approx_gelu=False):
    """Pure-JAX reference matching the PyTorch FeedForward semantics."""
    xf = x.astype(jnp.float32)
    mu = jnp.mean(xf, axis=-1, keepdims=True)
    var = jnp.mean((xf - mu) ** 2, axis=-1, keepdims=True)
    xn = (xf - mu) * lax.rsqrt(var + LN_EPS) * gamma + beta
    h = jnp.dot(xn.astype(matmul_dtype), w1.astype(matmul_dtype),
                preferred_element_type=jnp.float32) + b1
    if approx_gelu:
        h = jax.nn.gelu(h, approximate=True)
    else:
        h = 0.5 * h * (1.0 + lax.erf(h * INV_SQRT2))
    y = jnp.dot(h.astype(matmul_dtype), w2.astype(matmul_dtype),
                preferred_element_type=jnp.float32) + b2
    return y.astype(x.dtype)


if __name__ == "__main__":
    # Small shapes consistent with the SimpleViT FeedForward block; dim and
    # hidden are multiples of 128 so stores are lane-dense.
    batch, seq, dim, hidden = 2, 256, 128, 256

    key = jax.random.PRNGKey(0)
    kx, kx2, kw1, kb1, kw2, kb2 = jax.random.split(key, 6)

    x = jax.random.normal(kx, (batch, seq, dim), dtype=jnp.float32)

    gamma = jnp.ones((dim,), dtype=jnp.float32)   # PyTorch LayerNorm init
    beta = jnp.zeros((dim,), dtype=jnp.float32)
    lim1 = 1.0 / (dim ** 0.5)
    lim2 = 1.0 / (hidden ** 0.5)
    w1 = jax.random.uniform(kw1, (dim, hidden), jnp.float32, -lim1, lim1)
    b1 = jax.random.uniform(kb1, (hidden,), jnp.float32, -lim1, lim1)
    w2 = jax.random.uniform(kw2, (hidden, dim), jnp.float32, -lim2, lim2)
    b2 = jax.random.uniform(kb2, (dim,), jnp.float32, -lim2, lim2)

    use_bf16 = True
    mm_dtype = jnp.bfloat16 if use_bf16 else jnp.float32

    out = feed_forward(x, gamma, beta, w1, b1, w2, b2,
                       tile_t=256, use_bf16_matmul=use_bf16)
    out = jax.block_until_ready(out)
    assert out.shape == (batch, seq, dim)

    # Matched-precision reference (same bf16 matmul operands) -> tight check.
    ref_matched = reference_ffn(x, gamma, beta, w1, b1, w2, b2,
                                matmul_dtype=mm_dtype)
    assert jnp.allclose(out, ref_matched, atol=1e-3, rtol=1e-3), \
        "mismatch vs matched-precision reference"

    # Full-f32 / exact-erf reference (PyTorch semantics) -> looser tolerance
    # because the MXU operands are bf16.
    ref_f32 = reference_ffn(x, gamma, beta, w1, b1, w2, b2)
    assert jnp.allclose(out, ref_f32, atol=2e-2, rtol=2e-2), \
        "mismatch vs f32 reference"

    # Ragged token count -> exercises the padding path (T not a multiple of
    # the token tile).
    x_odd = jax.random.normal(kx2, (1, 13, dim), dtype=jnp.float32)
    out_odd = feed_forward(x_odd, gamma, beta, w1, b1, w2, b2,
                           tile_t=256, use_bf16_matmul=use_bf16)
    out_odd = jax.block_until_ready(out_odd)
    ref_odd = reference_ffn(x_odd, gamma, beta, w1, b1, w2, b2,
                            matmul_dtype=mm_dtype)
    assert out_odd.shape == (1, 13, dim)
    assert jnp.allclose(out_odd, ref_odd, atol=1e-3, rtol=1e-3), \
        "mismatch on padded/ragged token path"

    print("KERNEL_OK")
</pallas_src>

<mosaic_0001>
module attributes {stable_mosaic.version = 11 : i64} {
  func.func @ffn_kernel(%arg0: i32, %arg1: memref<256x128xf32, #tpu.memory_space<vmem>>, %arg2: memref<1x128xf32, #tpu.memory_space<vmem>>, %arg3: memref<1x128xf32, #tpu.memory_space<vmem>>, %arg4: memref<128x256xbf16, #tpu.memory_space<vmem>>, %arg5: memref<1x256xf32, #tpu.memory_space<vmem>>, %arg6: memref<256x128xbf16, #tpu.memory_space<vmem>>, %arg7: memref<1x128xf32, #tpu.memory_space<vmem>>, %arg8: memref<256x128xf32, #tpu.memory_space<vmem>>) attributes {dimension_semantics = [#tpu.dimension_semantics<parallel>], iteration_bounds = array<i64: 2>, scalar_prefetch = 0 : i64, scratch_operands = 0 : i64, tpu.core_type = #tpu.core_type<tc>, window_params = [{transform_indices = @transform_0, window_bounds = array<i64: 256, 128>}, {pipeline_mode = #tpu.pipeline_mode<synchronous>, transform_indices = @transform_1, window_bounds = array<i64: 1, 128>}, {pipeline_mode = #tpu.pipeline_mode<synchronous>, transform_indices = @transform_2, window_bounds = array<i64: 1, 128>}, {pipeline_mode = #tpu.pipeline_mode<synchronous>, transform_indices = @transform_3, window_bounds = array<i64: 128, 256>}, {pipeline_mode = #tpu.pipeline_mode<synchronous>, transform_indices = @transform_4, window_bounds = array<i64: 1, 256>}, {pipeline_mode = #tpu.pipeline_mode<synchronous>, transform_indices = @transform_5, window_bounds = array<i64: 256, 128>}, {pipeline_mode = #tpu.pipeline_mode<synchronous>, transform_indices = @transform_6, window_bounds = array<i64: 1, 128>}, {transform_indices = @transform_7, window_bounds = array<i64: 256, 128>}]} {
    %c0 = arith.constant 0 : index
    %c0_0 = arith.constant 0 : index
    %0 = vector.load %arg1[%c0, %c0_0] : memref<256x128xf32, #tpu.memory_space<vmem>>, vector<256x128xf32>
    %cst = arith.constant dense<0.000000e+00> : vector<256xf32>
    %1 = vector.multi_reduction <add>, %0, %cst [1] : vector<256x128xf32> to vector<256xf32>
    %2 = vector.shape_cast %1 : vector<256xf32> to vector<256x1xf32>
    %cst_1 = arith.constant 1.280000e+02 : f32
    %3 = vector.broadcast %cst_1 : f32 to vector<256x1xf32>
    %4 = arith.divf %2, %3 : vector<256x1xf32>
    %5 = vector.broadcast %4 : vector<256x1xf32> to vector<256x128xf32>
    %6 = arith.subf %0, %5 : vector<256x128xf32>
    %7 = arith.mulf %6, %6 : vector<256x128xf32>
    %cst_2 = arith.constant dense<0.000000e+00> : vector<256xf32>
    %8 = vector.multi_reduction <add>, %7, %cst_2 [1] : vector<256x128xf32> to vector<256xf32>
    %9 = vector.shape_cast %8 : vector<256xf32> to vector<256x1xf32>
    %cst_3 = arith.constant 1.280000e+02 : f32
    %10 = vector.broadcast %cst_3 : f32 to vector<256x1xf32>
    %11 = arith.divf %9, %10 : vector<256x1xf32>
    %cst_4 = arith.constant 9.99999974E-6 : f32
    %12 = vector.broadcast %cst_4 : f32 to vector<256x1xf32>
    %13 = arith.addf %11, %12 : vector<256x1xf32>
    %14 = math.rsqrt %13 : vector<256x1xf32>
    %15 = vector.broadcast %14 : vector<256x1xf32> to vector<256x128xf32>
    %16 = arith.mulf %6, %15 : vector<256x128xf32>
    %c0_5 = arith.constant 0 : index
    %c0_6 = arith.constant 0 : index
    %17 = vector.load %arg2[%c0_5, %c0_6] : memref<1x128xf32, #tpu.memory_space<vmem>>, vector<1x128xf32>
    %18 = vector.broadcast %17 : vector<1x128xf32> to vector<256x128xf32>
    %19 = arith.mulf %16, %18 : vector<256x128xf32>
    %c0_7 = arith.constant 0 : index
    %c0_8 = arith.constant 0 : index
    %20 = vector.load %arg3[%c0_7, %c0_8] : memref<1x128xf32, #tpu.memory_space<vmem>>, vector<1x128xf32>
    %21 = vector.broadcast %20 : vector<1x128xf32> to vector<256x128xf32>
    %22 = arith.addf %19, %21 : vector<256x128xf32>
    %23 = arith.truncf %22 : vector<256x128xf32> to vector<256x128xbf16>
    %c0_9 = arith.constant 0 : index
    %c0_10 = arith.constant 0 : index
    %24 = vector.load %arg4[%c0_9, %c0_10] : memref<128x256xbf16, #tpu.memory_space<vmem>>, vector<128x256xbf16>
    %cst_11 = arith.constant dense<0.000000e+00> : vector<256x256xf32>
    %25 = tpu.matmul %23, %24, %cst_11 {dimension_numbers = #tpu.dot_dimension_numbers<[1], [0], [0], [1], [0, 0, 1, 1], [], []>} : vector<256x128xbf16>, vector<128x256xbf16>, vector<256x256xf32> -> vector<256x256xf32>
    %c0_12 = arith.constant 0 : index
    %c0_13 = arith.constant 0 : index
    %26 = vector.load %arg5[%c0_12, %c0_13] : memref<1x256xf32, #tpu.memory_space<vmem>>, vector<1x256xf32>
    %27 = vector.broadcast %26 : vector<1x256xf32> to vector<256x256xf32>
    %28 = arith.addf %25, %27 : vector<256x256xf32>
    %cst_14 = arith.constant 5.000000e-01 : f32
    %29 = vector.broadcast %cst_14 : f32 to vector<256x256xf32>
    %30 = arith.mulf %29, %28 : vector<256x256xf32>
    %cst_15 = arith.constant 0.707106769 : f32
    %31 = vector.broadcast %cst_15 : f32 to vector<256x256xf32>
    %32 = arith.mulf %28, %31 : vector<256x256xf32>
    %33 = math.erf %32 : vector<256x256xf32>
    %cst_16 = arith.constant 1.000000e+00 : f32
    %34 = vector.broadcast %cst_16 : f32 to vector<256x256xf32>
    %35 = arith.addf %34, %33 : vector<256x256xf32>
    %36 = arith.mulf %30, %35 : vector<256x256xf32>
    %37 = arith.truncf %36 : vector<256x256xf32> to vector<256x256xbf16>
    %c0_17 = arith.constant 0 : index
    %c0_18 = arith.constant 0 : index
    %38 = vector.load %arg6[%c0_17, %c0_18] : memref<256x128xbf16, #tpu.memory_space<vmem>>, vector<256x128xbf16>
    %cst_19 = arith.constant dense<0.000000e+00> : vector<256x128xf32>
    %39 = tpu.matmul %37, %38, %cst_19 {dimension_numbers = #tpu.dot_dimension_numbers<[1], [0], [0], [1], [0, 0, 1, 1], [], []>} : vector<256x256xbf16>, vector<256x128xbf16>, vector<256x128xf32> -> vector<256x128xf32>
    %c0_20 = arith.constant 0 : index
    %c0_21 = arith.constant 0 : index
    %40 = vector.load %arg7[%c0_20, %c0_21] : memref<1x128xf32, #tpu.memory_space<vmem>>, vector<1x128xf32>
    %41 = vector.broadcast %40 : vector<1x128xf32> to vector<256x128xf32>
    %42 = arith.addf %39, %41 : vector<256x128xf32>
    %c0_22 = arith.constant 0 : index
    %c0_23 = arith.constant 0 : index
    %43 = vector.load %arg8[%c0_22, %c0_23] : memref<256x128xf32, #tpu.memory_space<vmem>>, vector<256x128xf32>
    tpu.vector_store %arg8[%c0_22, %c0_23], %42 {strides = array<i32>} : memref<256x128xf32, #tpu.memory_space<vmem>>, vector<256x128xf32>,
    return
  }
  func.func @transform_0(%arg0: i32) -> (i32, i32) {
    %c0_i32 = arith.constant 0 : i32
    %c0_i32_0 = arith.constant 0 : i32
    return %arg0, %c0_i32 : i32, i32
  }
  func.func @transform_1(%arg0: i32) -> (i32, i32) {
    %c0_i32 = arith.constant 0 : i32
    %c0_i32_0 = arith.constant 0 : i32
    %c0_i32_1 = arith.constant 0 : i32
    return %c0_i32, %c0_i32_0 : i32, i32
  }
  func.func @transform_2(%arg0: i32) -> (i32, i32) {
    %c0_i32 = arith.constant 0 : i32
    %c0_i32_0 = arith.constant 0 : i32
    %c0_i32_1 = arith.constant 0 : i32
    return %c0_i32, %c0_i32_0 : i32, i32
  }
  func.func @transform_3(%arg0: i32) -> (i32, i32) {
    %c0_i32 = arith.constant 0 : i32
    %c0_i32_0 = arith.constant 0 : i32
    %c0_i32_1 = arith.constant 0 : i32
    return %c0_i32, %c0_i32_0 : i32, i32
  }
  func.func @transform_4(%arg0: i32) -> (i32, i32) {
    %c0_i32 = arith.constant 0 : i32
    %c0_i32_0 = arith.constant 0 : i32
    %c0_i32_1 = arith.constant 0 : i32
    return %c0_i32, %c0_i32_0 : i32, i32
  }
  func.func @transform_5(%arg0: i32) -> (i32, i32) {
    %c0_i32 = arith.constant 0 : i32
    %c0_i32_0 = arith.constant 0 : i32
    %c0_i32_1 = arith.constant 0 : i32
    return %c0_i32, %c0_i32_0 : i32, i32
  }
  func.func @transform_6(%arg0: i32) -> (i32, i32) {
    %c0_i32 = arith.constant 0 : i32
    %c0_i32_0 = arith.constant 0 : i32
    %c0_i32_1 = arith.constant 0 : i32
    return %c0_i32, %c0_i32_0 : i32, i32
  }
  func.func @transform_7(%arg0: i32) -> (i32, i32) {
    %c0_i32 = arith.constant 0 : i32
    %c0_i32_0 = arith.constant 0 : i32
    return %arg0, %c0_i32 : i32, i32
  }
}

module attributes {stable_mosaic.version = 11 : i64} {
  func.func @ffn_kernel(%arg0: i32, %arg1: memref<256x128xf32, #tpu.memory_space<vmem>>, %arg2: memref<1x128xf32, #tpu.memory_space<vmem>>, %arg3: memref<1x128xf32, #tpu.memory_space<vmem>>, %arg4: memref<128x256xbf16, #tpu.memory_space<vmem>>, %arg5: memref<1x256xf32, #tpu.memory_space<vmem>>, %arg6: memref<256x128xbf16, #tpu.memory_space<vmem>>, %arg7: memref<1x128xf32, #tpu.memory_space<vmem>>, %arg8: memref<256x128xf32, #tpu.memory_space<vmem>>) attributes {dimension_semantics = [#tpu.dimension_semantics<parallel>], iteration_bounds = array<i64: 2>, scalar_prefetch = 0 : i64, scratch_operands = 0 : i64, tpu.core_type = #tpu.core_type<tc>, window_params = [{transform_indices = @transform_0, window_bounds = array<i64: 256, 128>}, {pipeline_mode = #tpu.pipeline_mode<synchronous>, transform_indices = @transform_1, window_bounds = array<i64: 1, 128>}, {pipeline_mode = #tpu.pipeline_mode<synchronous>, transform_indices = @transform_2, window_bounds = array<i64: 1, 128>}, {pipeline_mode = #tpu.pipeline_mode<synchronous>, transform_indices = @transform_3, window_bounds = array<i64: 128, 256>}, {pipeline_mode = #tpu.pipeline_mode<synchronous>, transform_indices = @transform_4, window_bounds = array<i64: 1, 256>}, {pipeline_mode = #tpu.pipeline_mode<synchronous>, transform_indices = @transform_5, window_bounds = array<i64: 256, 128>}, {pipeline_mode = #tpu.pipeline_mode<synchronous>, transform_indices = @transform_6, window_bounds = array<i64: 1, 128>}, {transform_indices = @transform_7, window_bounds = array<i64: 256, 128>}]} {
    %c0 = arith.constant 0 : index
    %c0_0 = arith.constant 0 : index
    %0 = vector.load %arg1[%c0, %c0_0] : memref<256x128xf32, #tpu.memory_space<vmem>>, vector<256x128xf32>
    %cst = arith.constant dense<0.000000e+00> : vector<256xf32>
    %1 = vector.multi_reduction <add>, %0, %cst [1] : vector<256x128xf32> to vector<256xf32>
    %2 = vector.shape_cast %1 : vector<256xf32> to vector<256x1xf32>
    %cst_1 = arith.constant 1.280000e+02 : f32
    %3 = vector.broadcast %cst_1 : f32 to vector<256x1xf32>
    %4 = arith.divf %2, %3 : vector<256x1xf32>
    %5 = vector.broadcast %4 : vector<256x1xf32> to vector<256x128xf32>
    %6 = arith.subf %0, %5 : vector<256x128xf32>
    %7 = arith.mulf %6, %6 : vector<256x128xf32>
    %cst_2 = arith.constant dense<0.000000e+00> : vector<256xf32>
    %8 = vector.multi_reduction <add>, %7, %cst_2 [1] : vector<256x128xf32> to vector<256xf32>
    %9 = vector.shape_cast %8 : vector<256xf32> to vector<256x1xf32>
    %cst_3 = arith.constant 1.280000e+02 : f32
    %10 = vector.broadcast %cst_3 : f32 to vector<256x1xf32>
    %11 = arith.divf %9, %10 : vector<256x1xf32>
    %cst_4 = arith.constant 9.99999974E-6 : f32
    %12 = vector.broadcast %cst_4 : f32 to vector<256x1xf32>
    %13 = arith.addf %11, %12 : vector<256x1xf32>
    %14 = math.rsqrt %13 : vector<256x1xf32>
    %15 = vector.broadcast %14 : vector<256x1xf32> to vector<256x128xf32>
    %16 = arith.mulf %6, %15 : vector<256x128xf32>
    %c0_5 = arith.constant 0 : index
    %c0_6 = arith.constant 0 : index
    %17 = vector.load %arg2[%c0_5, %c0_6] : memref<1x128xf32, #tpu.memory_space<vmem>>, vector<1x128xf32>
    %18 = vector.broadcast %17 : vector<1x128xf32> to vector<256x128xf32>
    %19 = arith.mulf %16, %18 : vector<256x128xf32>
    %c0_7 = arith.constant 0 : index
    %c0_8 = arith.constant 0 : index
    %20 = vector.load %arg3[%c0_7, %c0_8] : memref<1x128xf32, #tpu.memory_space<vmem>>, vector<1x128xf32>
    %21 = vector.broadcast %20 : vector<1x128xf32> to vector<256x128xf32>
    %22 = arith.addf %19, %21 : vector<256x128xf32>
    %23 = arith.truncf %22 : vector<256x128xf32> to vector<256x128xbf16>
    %c0_9 = arith.constant 0 : index
    %c0_10 = arith.constant 0 : index
    %24 = vector.load %arg4[%c0_9, %c0_10] : memref<128x256xbf16, #tpu.memory_space<vmem>>, vector<128x256xbf16>
    %cst_11 = arith.constant dense<0.000000e+00> : vector<256x256xf32>
    %25 = tpu.matmul %23, %24, %cst_11 {dimension_numbers = #tpu.dot_dimension_numbers<[1], [0], [0], [1], [0, 0, 1, 1], [], []>} : vector<256x128xbf16>, vector<128x256xbf16>, vector<256x256xf32> -> vector<256x256xf32>
    %c0_12 = arith.constant 0 : index
    %c0_13 = arith.constant 0 : index
    %26 = vector.load %arg5[%c0_12, %c0_13] : memref<1x256xf32, #tpu.memory_space<vmem>>, vector<1x256xf32>
    %27 = vector.broadcast %26 : vector<1x256xf32> to vector<256x256xf32>
    %28 = arith.addf %25, %27 : vector<256x256xf32>
    %cst_14 = arith.constant 5.000000e-01 : f32
    %29 = vector.broadcast %cst_14 : f32 to vector<256x256xf32>
    %30 = arith.mulf %29, %28 : vector<256x256xf32>
    %cst_15 = arith.constant 0.707106769 : f32
    %31 = vector.broadcast %cst_15 : f32 to vector<256x256xf32>
    %32 = arith.mulf %28, %31 : vector<256x256xf32>
    %33 = math.erf %32 : vector<256x256xf32>
    %cst_16 = arith.constant 1.000000e+00 : f32
    %34 = vector.broadcast %cst_16 : f32 to vector<256x256xf32>
    %35 = arith.addf %34, %33 : vector<256x256xf32>
    %36 = arith.mulf %30, %35 : vector<256x256xf32>
    %37 = arith.truncf %36 : vector<256x256xf32> to vector<256x256xbf16>
    %c0_17 = arith.constant 0 : index
    %c0_18 = arith.constant 0 : index
    %38 = vector.load %arg6[%c0_17, %c0_18] : memref<256x128xbf16, #tpu.memory_space<vmem>>, vector<256x128xbf16>
    %cst_19 = arith.constant dense<0.000000e+00> : vector<256x128xf32>
    %39 = tpu.matmul %37, %38, %cst_19 {dimension_numbers = #tpu.dot_dimension_numbers<[1], [0], [0], [1], [0, 0, 1, 1], [], []>} : vector<256x256xbf16>, vector<256x128xbf16>, vector<256x128xf32> -> vector<256x128xf32>
    %c0_20 = arith.constant 0 : index
    %c0_21 = arith.constant 0 : index
    %40 = vector.load %arg7[%c0_20, %c0_21] : memref<1x128xf32, #tpu.memory_space<vmem>>, vector<1x128xf32>
    %41 = vector.broadcast %40 : vector<1x128xf32> to vector<256x128xf32>
    %42 = arith.addf %39, %41 : vector<256x128xf32>
    %c0_22 = arith.constant 0 : index
    %c0_23 = arith.constant 0 : index
    %43 = vector.load %arg8[%c0_22, %c0_23] : memref<256x128xf32, #tpu.memory_space<vmem>>, vector<256x128xf32>
    tpu.vector_store %arg8[%c0_22, %c0_23], %42 {strides = array<i32>} : memref<256x128xf32, #tpu.memory_space<vmem>>, vector<256x128xf32>,
    return
  }
  func.func @transform_0(%arg0: i32) -> (i32, i32) {
    %c0_i32 = arith.constant 0 : i32
    %c0_i32_0 = arith.constant 0 : i32
    return %arg0, %c0_i32 : i32, i32
  }
  func.func @transform_1(%arg0: i32) -> (i32, i32) {
    %c0_i32 = arith.constant 0 : i32
    %c0_i32_0 = arith.constant 0 : i32
    %c0_i32_1 = arith.constant 0 : i32
    return %c0_i32, %c0_i32_0 : i32, i32
  }
  func.func @transform_2(%arg0: i32) -> (i32, i32) {
    %c0_i32 = arith.constant 0 : i32
    %c0_i32_0 = arith.constant 0 : i32
    %c0_i32_1 = arith.constant 0 : i32
    return %c0_i32, %c0_i32_0 : i32, i32
  }
  func.func @transform_3(%arg0: i32) -> (i32, i32) {
    %c0_i32 = arith.constant 0 : i32
    %c0_i32_0 = arith.constant 0 : i32
    %c0_i32_1 = arith.constant 0 : i32
    return %c0_i32, %c0_i32_0 : i32, i32
  }
  func.func @transform_4(%arg0: i32) -> (i32, i32) {
    %c0_i32 = arith.constant 0 : i32
    %c0_i32_0 = arith.constant 0 : i32
    %c0_i32_1 = arith.constant 0 : i32
    return %c0_i32, %c0_i32_0 : i32, i32
  }
  func.func @transform_5(%arg0: i32) -> (i32, i32) {
    %c0_i32 = arith.constant 0 : i32
    %c0_i32_0 = arith.constant 0 : i32
    %c0_i32_1 = arith.constant 0 : i32
    return %c0_i32, %c0_i32_0 : i32, i32
  }
  func.func @transform_6(%arg0: i32) -> (i32, i32) {
    %c0_i32 = arith.constant 0 : i32
    %c0_i32_0 = arith.constant 0 : i32
    %c0_i32_1 = arith.constant 0 : i32
    return %c0_i32, %c0_i32_0 : i32, i32
  }
  func.func @transform_7(%arg0: i32) -> (i32, i32) {
    %c0_i32 = arith.constant 0 : i32
    %c0_i32_0 = arith.constant 0 : i32
    return %arg0, %c0_i32 : i32, i32
  }
}

</mosaic_0001>

<bundles_post_ra>
// kernel: tpu_custom_call.1
= control target key start
LH: loop header
LB: loop body
LE: loop exit
PB: predicated region body
PF: predicated region fallthrough
CT: control target
= control target key end

     0   :  { %s3812_s0 = inlined_call_operand.hbm [shape: f32[512,128], index: 0, kind: input, shape index: {}]   ;;  %s3813_s1 = inlined_call_operand.hbm [shape: f32[1,128], index: 1, kind: input, shape index: {}]   ;;  %s3814_s2 = inlined_call_operand.hbm [shape: f32[1,128], index: 2, kind: input, shape index: {}]   ;;  %s3815_s3 = inlined_call_operand.hbm [shape: bf16[128,256], index: 3, kind: input, shape index: {}]   ;;  %s3816_s4 = inlined_call_operand.hbm [shape: f32[1,256], index: 4, kind: input, shape index: {}]   ;;  %s3817_s5 = inlined_call_operand.hbm [shape: bf16[256,128], index: 5, kind: input, shape index: {}]   ;;  %s3818_s6 = inlined_call_operand.hbm [shape: f32[1,128], index: 6, kind: input, shape index: {}]   ;;  %s3819_s7 = inlined_call_operand.hbm [shape: f32[512,128], index: 7, kind: output, shape index: {}]  }
   0x1   :  { %3825 = sst [smem:[#allocation20_spill]] %s3813_s1 }
   0x2   :  { %12 = vsyncpa [#allocation3], 0 }
   0x3   :  { %14 = vsyncpa [#allocation3 + $0x1], 0 }
   0x4   :  { %15 = vsyncpa [#allocation6], 0 }
   0x5   :  { %16 = vsyncpa [#allocation9], 0 }
   0x6   :  { %17 = vsyncpa [#allocation12], 0 }
   0x7   :  { %18 = vsyncpa [#allocation4], 0 }
   0x8   :  { %20 = vsyncpa [#allocation4 + $0x1], 0  ;;  %s2837_s24 = smov 0   ;;  %s2839_s25 = smov 0  }
   0x9   :  { %s2841_s26 = smov 0   ;;  %s2843_s27 = smov 0  }
   0xa LB: > { %s2782_s28 = smov [#allocation5]   ;;  %s2858_s30 = sadd.s32 4294967295, %s2780_s27   ;;  %s2780_s27 = sphi %s2843_s27, %s3851_s27   ;;  %s2776_s26 = sphi %s2841_s26, %s3850_s26   ;;  %s2772_s25 = sphi %s2839_s25, %s3849_s25   ;;  %s2768_s24 = sphi %s2837_s24, %s3848_s24  }
   0xb   : > { %s222_s29 = sshll.u32 %s2782_s28, 4  ;;  %p1984_p0 = scmp.ge.s32.totalorder %s2780_s27, 1  ;;  %s2863_s29 = int_to_ptr.vmem [resolvable:$true] %s222_s29 }
   0xc   : > { %p3822_p1 = scmp.eq.s32.totalorder %s2858_s30, 0  ;;  %p209_p2 = scmp.lt.s32.totalorder %s2780_s27, 3 }
   0xd   : > { %s2783_s9 = smov [#allocation8]   ;;  %s2784_s12 = smov [#allocation11]  }
   0xe   : > { %p2865_p3 = pnand %p1984_p0, %p209_p2  ;;  %s243_s10 = sshll.u32 %s2783_s9, 4  ;;  %s2872_s10 = int_to_ptr.vmem [resolvable:$true] %s243_s10 }
   0xf   : > { %s267_s13 = sshll.u32 %s2784_s12, 4  ;;  %s3828_s1 = sld [smem:[#allocation20_spill]]  ;;  %s2880_s13 = int_to_ptr.vmem [resolvable:$true] %s267_s13 }
  0x10   : > { %s3826_s8 = scalar_select %p2865_p3, 1, 0 }
  0x11   : > { %p2186_p5 = pneg %p2865_p3 }
  0x13   : > { %p2876_p6 = pnand %p2186_p5, %p3822_p1 }
  0x15   : > { %s2504_s16 = scalar_lea.hbm %s3828_s1, 16  ;;  %p2890_p8 = pneg %p2876_p6 }
  0x16   : > { %p2505_p7 = scmp.ne.s32.totalorder %s3828_s1, %s2504_s16  ;;  %p2511_p11 = scmp.lt.u32.totalorder %s2504_s16, %s3828_s1 }
  0x18   : > { %p2507_p9 = pnand %p2890_p8, %p2505_p7 }
  0x1a   : > { %p2508_p10 = pneg %p2507_p9 }
  0x1c   : > { %p2513_p12 = pnand %p2511_p11, %p2508_p10 }
  0x1e   : > { %2516 = shalt.err (!%p2513_p12)
}
  0x1f   : > { %s2517_s22 = scalar_lea.vmem %s2863_s29, 16  ;;  %s2524_s23 = scalar_lea.vmem %s2863_s29, 32 }
  0x20   : > { %p2518_p13 = scmp.ne.s32.totalorder %s2863_s29, %s2517_s22  ;;  %p2525_p5 = scmp.lt.s32.totalorder %s2863_s29, %s2863_s29 }
  0x21   : > { %p2526_p7 = scmp.lt.s32.totalorder %s2524_s23, %s2517_s22 }
  0x22   : > { %p2520_p0 = pnand %p2518_p13, %p2890_p8 }
  0x23   : > { %p2527_p9 = por %p2526_p7, %p2525_p5 }
  0x24   : > { %p2521_p2 = pneg %p2520_p0 }
  0x26   : > { %p2528_p4 = pnand %p2527_p9, %p2521_p2 }
  0x28   : > { %2531 = shalt.err (!%p2528_p4)
}
  0x29   : > { %2189 = dma.hbm_to_vmem [thread:$0]  (!%p2876_p6), %s3828_s1, 16, %s2863_s29, [#allocation6]  }
  0x2a   : > { %s2532_s15 = scalar_lea.hbm %s3815_s3, 2048 }
  0x2b   : > { %p2533_p10 = scmp.ne.s32.totalorder %s3815_s3, %s2532_s15  ;;  %p2539_p4 = scmp.lt.u32.totalorder %s2532_s15, %s3815_s3 }
  0x2d   : > { %p2535_p11 = pnand %p2533_p10, %p2890_p8 }
  0x2f   : > { %p2536_p12 = pneg %p2535_p11 }
  0x31   : > { %p2541_p13 = pnand %p2539_p4, %p2536_p12 }
  0x33   : > { %2544 = shalt.err (!%p2541_p13)
}
  0x34   : > { %s2545_s29 = scalar_lea.vmem %s2872_s10, 2048  ;;  %p2553_p7 = scmp.lt.s32.totalorder %s2872_s10, %s2872_s10 }
  0x35   : > { %p2546_p0 = scmp.ne.s32.totalorder %s2872_s10, %s2545_s29  ;;  %p2554_p9 = scmp.lt.s32.totalorder %s2545_s29, %s2545_s29 }
  0x37   : > { %p2548_p2 = pnand %p2546_p0, %p2890_p8  ;;  %p2555_p10 = por %p2554_p9, %p2553_p7 }
  0x39   : > { %p2549_p5 = pneg %p2548_p2 }
  0x3b   : > { %p2556_p11 = pnand %p2555_p10, %p2549_p5 }
  0x3d   : > { %2559 = shalt.err (!%p2556_p11)
}
  0x3e   : > { %s3820_s21 = smov 128   ;;  %s3821_s22 = smov 8  }
  0x3f   : > { %2195 = dma.hbm_to_vmem [thread:$0]  (!%p2876_p6), %s3815_s3, 2048, %s2872_s10, [#allocation9], %s3820_s21, %s3820_s21, %s3821_s22  }
  0x40   : > { %s2560_s14 = scalar_lea.hbm %s3817_s5, 2048 }
  0x41   : > { %p2561_p12 = scmp.ne.s32.totalorder %s3817_s5, %s2560_s14  ;;  %p2567_p0 = scmp.lt.u32.totalorder %s2560_s14, %s3817_s5 }
  0x43   : > { %p2563_p4 = pnand %p2561_p12, %p2890_p8 }
  0x45   : > { %p2564_p13 = pneg %p2563_p4 }
  0x47   : > { %p2569_p2 = pnand %p2567_p0, %p2564_p13 }
  0x49   : > { %2572 = shalt.err (!%p2569_p2)
}
  0x4a   : > { %s2573_s10 = scalar_lea.vmem %s2880_s13, 2048  ;;  %p2581_p10 = scmp.lt.s32.totalorder %s2880_s13, %s2880_s13 }
  0x4b   : > { %p2574_p5 = scmp.ne.s32.totalorder %s2880_s13, %s2573_s10  ;;  %p2582_p11 = scmp.lt.s32.totalorder %s2573_s10, %s2573_s10 }
  0x4d   : > { %p2576_p7 = pnand %p2574_p5, %p2890_p8  ;;  %p2583_p12 = por %p2582_p11, %p2581_p10 }
  0x4f   : > { %p2577_p9 = pneg %p2576_p7 }
  0x51   : > { %p2584_p4 = pnand %p2583_p12, %p2577_p9 }
  0x53   : > { %2587 = shalt.err (!%p2584_p4)
}
  0x54   : > { %s2787_s20 = smov 64   ;;  %s2788_s29 = smov 4  }
  0x55   : > { %2201 = dma.hbm_to_vmem [thread:$0]  (!%p2876_p6), %s3817_s5, 2048, %s2880_s13, [#allocation12], %s2787_s20, %s2787_s20, %s2788_s29  }
  0x56   : > { %s2789_s9 = smov [#allocation7]   ;;  %s2790_s14 = smov [#allocation10]  }
  0x57   : > { %s233_s12 = sshll.u32 %s2789_s9, 4  ;;  %s257_s15 = sshll.u32 %s2790_s14, 4  ;;  %s234_s12 = int_to_ptr.vmem [resolvable:$true] %s233_s12  ;;  %s258_s15 = int_to_ptr.vmem [resolvable:$true] %s257_s15 }
  0x58   : > { %s2588_s18 = scalar_lea.hbm %s3814_s2, 16 }
  0x59   : > { %p2589_p13 = scmp.ne.s32.totalorder %s3814_s2, %s2588_s18  ;;  %p2595_p5 = scmp.lt.u32.totalorder %s2588_s18, %s3814_s2 }
  0x5b   : > { %p2591_p0 = pnand %p2589_p13, %p2890_p8 }
  0x5d   : > { %p2592_p2 = pneg %p2591_p0 }
  0x5f   : > { %p2597_p7 = pnand %p2595_p5, %p2592_p2 }
  0x61   : > { %2600 = shalt.err (!%p2597_p7)
}
  0x62   : > { %s2601_s13 = scalar_lea.vmem %s234_s12, 16  ;;  %s2608_s20 = scalar_lea.vmem %s234_s12, 32 }
  0x63   : > { %p2602_p9 = scmp.ne.s32.totalorder %s234_s12, %s2601_s13  ;;  %p2609_p12 = scmp.lt.s32.totalorder %s234_s12, %s234_s12 }
  0x64   : > { %p2610_p4 = scmp.lt.s32.totalorder %s2608_s20, %s2601_s13 }
  0x65   : > { %p2604_p10 = pnand %p2602_p9, %p2890_p8 }
  0x66   : > { %p2611_p1 = por %p2610_p4, %p2609_p12 }
  0x67   : > { %p2605_p11 = pneg %p2604_p10 }
  0x69   : > { %p2612_p3 = pnand %p2611_p1, %p2605_p11 }
  0x6b   : > { %2615 = shalt.err (!%p2612_p3)
}
  0x6c   : > { %2192 = dma.hbm_to_vmem [thread:$0]  (!%p2876_p6), %s3814_s2, 16, %s234_s12, [#allocation6]  }
  0x6d   : > { %s2616_s23 = scalar_lea.hbm %s3816_s4, 32 }
  0x6e   : > { %p2617_p13 = scmp.ne.s32.totalorder %s3816_s4, %s2616_s23  ;;  %p2623_p3 = scmp.lt.u32.totalorder %s2616_s23, %s3816_s4 }
  0x70   : > { %p2619_p0 = pnand %p2617_p13, %p2890_p8 }
  0x72   : > { %p2620_p1 = pneg %p2619_p0 }
  0x74   : > { %p2625_p2 = pnand %p2623_p3, %p2620_p1 }
  0x76   : > { %2628 = shalt.err (!%p2625_p2)
}
  0x77   : > { %s2629_s17 = scalar_lea.vmem %s258_s15, 32  ;;  %p2637_p10 = scmp.lt.s32.totalorder %s258_s15, %s258_s15 }
  0x78   : > { %p2630_p5 = scmp.ne.s32.totalorder %s258_s15, %s2629_s17  ;;  %p2638_p11 = scmp.lt.s32.totalorder %s2629_s17, %s2629_s17 }
  0x7a   : > { %p2632_p7 = pnand %p2630_p5, %p2890_p8  ;;  %p2639_p12 = por %p2638_p11, %p2637_p10 }
  0x7c   : > { %p2633_p9 = pneg %p2632_p7 }
  0x7e   : > { %p2640_p4 = pnand %p2639_p12, %p2633_p9 }
  0x80   : > { %2643 = shalt.err (!%p2640_p4)
}
  0x81   : > { %2198 = dma.hbm_to_vmem [thread:$0]  (!%p2876_p6), %s3816_s4, 32, %s258_s15, [#allocation9]  }
  0x82   : > { %s2791_s10 = smov [#allocation13]   ;;  %s2644_s29 = scalar_lea.hbm %s3818_s6, 16 }
  0x83   : > { %s281_s13 = sshll.u32 %s2791_s10, 4  ;;  %p2645_p13 = scmp.ne.s32.totalorder %s3818_s6, %s2644_s29  ;;  %s282_s13 = int_to_ptr.vmem [resolvable:$true] %s281_s13 }
  0x84   : > { %p2651_p3 = scmp.lt.u32.totalorder %s2644_s29, %s3818_s6 }
  0x85   : > { %p2647_p0 = pnand %p2645_p13, %p2890_p8 }
  0x87   : > { %p2648_p1 = pneg %p2647_p0 }
  0x89   : > { %p2653_p2 = pnand %p2651_p3, %p2648_p1 }
  0x8b   : > { %2656 = shalt.err (!%p2653_p2)
}
  0x8c   : > { %s2657_s15 = scalar_lea.vmem %s282_s13, 16  ;;  %s2664_s9 = scalar_lea.vmem %s282_s13, 32 }
  0x8d   : > { %p2658_p5 = scmp.ne.s32.totalorder %s282_s13, %s2657_s15  ;;  %p2665_p10 = scmp.lt.s32.totalorder %s282_s13, %s282_s13 }
  0x8e   : > { %p2666_p11 = scmp.lt.s32.totalorder %s2664_s9, %s2657_s15 }
  0x8f   : > { %p2660_p7 = pnand %p2658_p5, %p2890_p8 }
  0x90   : > { %p2667_p12 = por %p2666_p11, %p2665_p10 }
  0x91   : > { %p2661_p9 = pneg %p2660_p7 }
  0x93   : > { %p2668_p4 = pnand %p2667_p12, %p2661_p9 }
  0x95   : > { %2671 = shalt.err (!%p2668_p4)
}
  0x96   : > { %2204 = dma.hbm_to_vmem [thread:$0]  (!%p2876_p6), %s3818_s6, 16, %s282_s13, [#allocation12]  }
  0x97   : > { %s1983_s19 = sadd.s32 4294967294, %s2780_s27   ;;  %s3017_s11 = sadd.s32 1, %s2780_s27  }
  0x98   : > { %s30_s17 = ssub.s32 %s2780_s27, %s3017_s11  ;;  %s33_s12 = sadd.s32 1, %s2776_s26 }
  0x99   : > { %p31_p8 = scmp.eq.s32.totalorder %s30_s17, 0  ;;  %p40_p13 = scmp.ne.s32.totalorder %s2776_s26, %s2772_s25 }
  0x9a   : > { %p41_p0 = scmp.eq.s32.totalorder %s2780_s27, 0  ;;  %p46_p1 = scmp.ne.s32.totalorder %s2772_s25, %s2768_s24 }
  0x9b   : > { %s3028_s18 = scalar_select %p31_p8, %s2776_s26, %s33_s12  }
  0x9c   : > { %p3030_p3 = por %p41_p0, %p40_p13  ;;  %p3831_p2 = scmp.eq.s32.totalorder %s2858_s30, 0 }
  0x9d   : > { %p196_p5 = scmp.eq.s32.totalorder %s2858_s30, 1  ;;  %p202_p7 = scmp.eq.s32.totalorder %s1983_s19, 1 }
  0x9e   : > { %p3036_p6 = por %p3831_p2, %p46_p1  ;;  %p2219_p9 = scmp.lt.s32.totalorder %s2780_s27, 2 }
  0x9f   : > { %s292_s20 = sand.u32 1, %s2776_s26   ;;  %p3043_p10 = por %p196_p5, %p40_p13 }
  0xa0   : > { %p3047_p11 = por %p202_p7, %p46_p1  ;;  %s1992_s1 = sshll.u32 %s292_s20, 8 }
  0xa1   : > { %s3833_s21 = scalar_select %p3043_p10, 1, 0 }
  0xa2   : > { %s3834_s29 = scalar_select %p3047_p11, 1, 0 }
  0xa3   : > { %s2044_s22 = sshll.u32 %s2780_s27, 12  ;;  %s296_s9 = scalar_lea.vmem [#allocation2], %s1992_s1 }
  0xa4   : > { %s3055_s15 = scalar_lea.hbm %s3812_s0, %s2044_s22  ;;  %s303_s14 = sshll.u32 %s296_s9, 4  ;;  %s3057_s14 = int_to_ptr.vmem [resolvable:$true] %s303_s14 }
  0xa5   : > { %p3061_p12 = pnand %p2219_p9, %p3030_p3  ;;  %s3065_s19 = scalar_lea.sflag [#allocation3], %s292_s20 }
  0xa6   : > { %s2672_s17 = scalar_lea.hbm %s3055_s15, 4096  ;;  %s2677_s10 = scalar_lea.hbm %s3812_s0, 8192 }
  0xa7   : > { %p2673_p4 = scmp.ne.s32.totalorder %s3055_s15, %s2672_s17  ;;  %p2674_p8 = pneg %p3061_p12 }
  0xa8   : > { %p2678_p1 = scmp.lt.u32.totalorder %s3055_s15, %s3812_s0  ;;  %p2679_p3 = scmp.lt.u32.totalorder %s2677_s10, %s2672_s17 }
  0xa9   : > { %p2675_p13 = pnand %p2674_p8, %p2673_p4  ;;  %p2681_p5 = scmp.lt.u32.totalorder %s2672_s17, %s3055_s15 }
  0xaa   : > { %p2680_p2 = por %p2679_p3, %p2678_p1 }
  0xab   : > { %p2676_p0 = pneg %p2675_p13 }
  0xac   : > { %p2682_p7 = por %p2681_p5, %p2680_p2 }
  0xae   : > { %p2683_p9 = pnand %p2682_p7, %p2676_p0 }
  0xb0   : > { %2686 = shalt.err (!%p2683_p9)
}
  0xb1   : > { %s2687_s20 = scalar_lea.vmem %s3057_s14, 4096  ;;  %s2792_s28 = smov [#allocation2]  }
  0xb2   : > { %p2688_p4 = scmp.ne.s32.totalorder %s3057_s14, %s2687_s20  ;;  %s2692_s9 = sshll.u32 %s2792_s28, 4  ;;  %s2693_s9 = int_to_ptr.vmem [resolvable:$false] %s2692_s9 }
  0xb3   : > { %s2694_s12 = scalar_lea.vmem %s2693_s9, 8192  ;;  %p2695_p10 = scmp.lt.s32.totalorder %s3057_s14, %s2693_s9 }
  0xb4   : > { %p2690_p13 = pnand %p2688_p4, %p2674_p8  ;;  %p2696_p1 = scmp.lt.s32.totalorder %s2694_s12, %s2687_s20 }
  0xb6   : > { %p2691_p11 = pneg %p2690_p13  ;;  %p2697_p3 = por %p2696_p1, %p2695_p10 }
  0xb8   : > { %p2698_p2 = pnand %p2697_p3, %p2691_p11 }
  0xba   : > { %2701 = shalt.err (!%p2698_p2)
}
  0xbb   : > { %s3836_s17 = smov 8   ;;  %s3837_s1 = smov 128  }
  0xbc   : > { %2208 = dma.hbm_to_vmem [thread:$0]  (!%p3061_p12), %s3055_s15, 4096, %s3057_s14, %s3065_s19, %s3837_s1, %s3837_s1, %s3836_s17  }
  0xbd   : > { %p3838_p8 = scmp.ne.s32.totalorder %s3826_s8, 0 }
  0xbe   : > { %s3099_s10 = sand.u32 (!%p3838_p8), 1, %s2772_s25  }
  0xbf   : > { %315 = sbr.rel (%p3838_p8) target bundleno = 1190 (0x4a6), region = 48  ;;  %s1996_s22 = sshll.u32 (!%p3838_p8), %s3099_s10, 8 }
  0xc0   : > { %s318_s23 = scalar_lea.sflag (!%p3838_p8), [#allocation3], %s3099_s10  ;;  %s3105_s16 = scalar_lea.vmem (!%p3838_p8), [#allocation2], %s1996_s22 }
  0xc6   : > { %2747 = dma.done.wait (%p3036_p6), %s318_s23, 4096  }
  0xc7   : > { %2749 = vsyncadd (%p3036_p6), %s318_s23, 4294963200  ;;  %p3839_p10 = scmp.eq.s32.totalorder %s2858_s30, 0 }
  0xc9   : > { %2751 = dma.done.wait (%p3839_p10), [#allocation6], 32   ;;  %p3840_p11 = pmov %p3839_p10 }
  0xca   : > { %p3841_p12 = pmov %p3839_p10 }
  0xcb   : > { %2753 = vsyncadd (%p3840_p11), [#allocation6], 4294967264 }
  0xcc   : > { %2755 = dma.done.wait (%p3841_p12), [#allocation9], 2080   ;;  %p3842_p0 = pmov %p3839_p10 }
  0xce   : > { %2757 = vsyncadd (%p3842_p0), [#allocation9], 4294965216  ;;  %p3843_p5 = pmov %p3842_p0 }
  0xcf   : > { %p3844_p7 = pmov %p3842_p0 }
  0xd0   : > { %2759 = dma.done.wait (%p3843_p5), [#allocation12], 2064  }
  0xd1   : > { %2761 = vsyncadd (%p3844_p7), [#allocation12], 4294965232  ;;  %v379_v0 = vld [vmem:[%s3105_s16] sm:$0xff]  ;;  %v381_v1 = vld [vmem:[%s3105_s16 + $0x10] sm:$0xff]  ;;  %s3696_s8 = scalar_lea.vmem [#allocation14], %s1996_s22  ;;  %s2045_s13 = sshll.u32 %s2858_s30, 12 }
  0xd2   : > { %411 = vadd.xlane.f32.xlu0 %v379_v0  ;;  %415 = vadd.xlane.f32.xlu1 %v381_v1  ;;  %v380_v2 = vld [vmem:[%s3105_s16 + $0x8] sm:$0xff]  ;;  %v382_v3 = vld [vmem:[%s3105_s16 + $0x18] sm:$0xff]  ;;  %v3128_v4 = vld [vmem:[%s3105_s16 + $0x20] sm:$0xff]  ;;  %s1853_s15 = sshll.u32 %s3696_s8, 4  ;;  %s3763_s20 = scalar_lea.hbm %s3819_s7, %s2045_s13  ;;  %s3765_s15 = int_to_ptr.vmem [resolvable:$true] %s1853_s15 }
  0xd3   : > { %v3131_v5 = vld [vmem:[%s3105_s16 + $0x28] sm:$0xff]  ;;  %v3134_v6 = vld [vmem:[%s3105_s16 + $0x30] sm:$0xff]  ;;  %v3137_v7 = vld [vmem:[%s3105_s16 + $0x38] sm:$0xff]  ;;  %s1840_s30 = scalar_lea.sflag [#allocation4], %s3099_s10  ;;  %s2702_s28 = scalar_lea.vmem %s3765_s15, 4096 }
  0xd4   : > { %v3142_v8 = vld [vmem:[%s3105_s16 + $0x40] sm:$0xff]  ;;  %v3145_v9 = vld [vmem:[%s3105_s16 + $0x48] sm:$0xff]  ;;  %v3150_v10 = vld [vmem:[%s3105_s16 + $0x50] sm:$0xff]  ;;  %p2703_p6 = scmp.ne.s32.totalorder %s3765_s15, %s2702_s28  ;;  %p3845_p9 = scmp.ne.s32.totalorder %s3833_s21, 0 }
  0xd5   : > { %v3153_v11 = vld [vmem:[%s3105_s16 + $0x58] sm:$0xff]  ;;  %v3158_v12 = vld [vmem:[%s3105_s16 + $0x60] sm:$0xff]  ;;  %v3163_v13 = vld [vmem:[%s3105_s16 + $0x68] sm:$0xff]  ;;  %s2794_s9 = smov [#allocation14]  }
  0xd6   : > { %413 = vadd.xlane.f32.xlu0 %v380_v2  ;;  %417 = vadd.xlane.f32.xlu1 %v382_v3  ;;  %v3168_v14 = vld [vmem:[%s3105_s16 + $0x70] sm:$0xff]  ;;  %v3171_v15 = vld [vmem:[%s3105_s16 + $0x78] sm:$0xff]  ;;  %v3176_v16 = vld [vmem:[%s3105_s16 + $0x80] sm:$0xff]  ;;  %p2704_p4 = pnand %p2703_p6, %p3845_p9  ;;  %s2706_s12 = sshll.u32 %s2794_s9, 4  ;;  %s2707_s12 = int_to_ptr.vmem [resolvable:$false] %s2706_s12 }
  0xd7   : > { %v3179_v17 = vld [vmem:[%s3105_s16 + $0x88] sm:$0xff]  ;;  %v3184_v18 = vld [vmem:[%s3105_s16 + $0x90] sm:$0xff]  ;;  %v3187_v19 = vld [vmem:[%s3105_s16 + $0x98] sm:$0xff]  ;;  %s2708_s17 = scalar_lea.vmem %s2707_s12, 8192  ;;  %p2709_p1 = scmp.lt.s32.totalorder %s3765_s15, %s2707_s12 }
  0xd8   : > { %v2272_v20 = vld [vmem:[#allocation8 + $0x4] ss:$8 sps:$4 sm:$0xff]   ;;  %v2274_v21 = vld [vmem:[#allocation8] ss:$8 sps:$4 sm:$0xff]   ;;  %v2275_v22 = vld [vmem:[#allocation8 + $0x14] ss:$8 sps:$4 sm:$0xff]   ;;  %p2705_p13 = pneg %p2704_p4  ;;  %p2710_p3 = scmp.lt.s32.totalorder %s2708_s17, %s2702_s28 }
  0xd9   : > { %966 = vmatprep.subr.bf16.mxu0 %v2272_v20  ;;  %v3200_v35 = vld [vmem:[%s3105_s16 + $0xa0] sm:$0xff]  ;;  %v3210_v41 = vld [vmem:[%s3105_s16 + $0xa8] sm:$0xff]  ;;  %v3219_v46 = vld [vmem:[%s3105_s16 + $0xb0] sm:$0xff] }
  0xda   : > { %419 = vadd.xlane.f32.xlu0 %v3128_v4  ;;  %421 = vadd.xlane.f32.xlu1 %v3131_v5  ;;  %v2277_v51 = vld [vmem:[#allocation8 + $0x10] ss:$8 sps:$4 sm:$0xff]   ;;  %v2278_v54 = vld [vmem:[#allocation8 + $0x24] ss:$8 sps:$4 sm:$0xff]   ;;  %v2280_v58 = vld [vmem:[#allocation8 + $0x20] ss:$8 sps:$4 sm:$0xff]   ;;  %p2711_p2 = por %p2710_p3, %p2709_p1 }
  0xdb   : > { %967 = vmatpush1.bf16.msra.mxu0 %v2274_v21  ;;  %v3228_v52 = vld [vmem:[%s3105_s16 + $0xb8] sm:$0xff]  ;;  %v3237_v59 = vld [vmem:[%s3105_s16 + $0xc0] sm:$0xff] }
  0xdc   : > { %968 = vmatprep.subr.bf16.mxu0 %v2275_v22  ;;  %v2281_v61 = vld [vmem:[#allocation8 + $0x34] ss:$8 sps:$4 sm:$0xff]   ;;  %v2286_v21 = vld [vmem:[#allocation8 + $0x40] ss:$8 sps:$4 sm:$0xff]   ;;  %v3255_v22 = vld [vmem:[%s3105_s16 + $0xd0] sm:$0xff]  ;;  %p2712_p8 = pnand %p2711_p2, %p2705_p13 }
  0xde   : > { %423 = vadd.xlane.f32.xlu0 %v3134_v6  ;;  %425 = vadd.xlane.f32.xlu1 %v3137_v7 }
  0xdf   : > { %969 = vmatpush1.bf16.msra.mxu0 %v2277_v51 }
  0xe0   : > { %970 = vmatprep.subr.bf16.mxu0 %v2278_v54 }
  0xe2   : > { %427 = vadd.xlane.f32.xlu0 %v3142_v8  ;;  %429 = vadd.xlane.f32.xlu1 %v3145_v9 }
  0xe3   : > { %971 = vmatpush1.bf16.msra.mxu0 %v2280_v58  ;;  %v3291_v58 = vld [vmem:[%s3105_s16 + $0xf0] sm:$0xff] }
  0xe4   : > { %972 = vmatprep.subr.bf16.mxu0 %v2281_v61 }
  0xe6   : > { %431 = vadd.xlane.f32.xlu0 %v3150_v10  ;;  %433 = vadd.xlane.f32.xlu1 %v3153_v11 }
  0xea   : > { %435 = vadd.xlane.f32.xlu0 %v3158_v12  ;;  %437 = vadd.xlane.f32.xlu1 %v3163_v13 }
  0xee   : > { %439 = vadd.xlane.f32.xlu0 %v3168_v14  ;;  %441 = vadd.xlane.f32.xlu1 %v3171_v15 }
  0xf2   : > { %443 = vadd.xlane.f32.xlu0 %v3176_v16  ;;  %445 = vadd.xlane.f32.xlu1 %v3179_v17 }
  0xf6   : > { %447 = vadd.xlane.f32.xlu0 %v3184_v18  ;;  %449 = vadd.xlane.f32.xlu1 %v3187_v19 }
 0x15f   : > { %v412_v23 = vpop.xlane.xlu0 %411  ;;  %v416_v24 = vpop.xlane.xlu1 %415 }
 0x160   : > { %v476_v25 = vmul.f32 0.0078125, %v412_v23  ;;  %v478_v27 = vmul.f32 0.0078125, %v416_v24 }
 0x162   : > { %v3191_v26 = vsub.f32 %v379_v0, %v476_v25  ;;  %v3197_v33 = vsub.f32 %v381_v1, %v478_v27  ;;  %v2283_v1 = vld [vmem:[#allocation8 + $0x30] ss:$8 sps:$4 sm:$0xff]   ;;  %v2287_v25 = vld [vmem:[#allocation8 + $0x54] ss:$8 sps:$4 sm:$0xff]  }
 0x163   : > { %v414_v28 = vpop.xlane.xlu0 %413  ;;  %v418_v29 = vpop.xlane.xlu1 %417  ;;  %973 = vmatpush1.bf16.msra.mxu0 %v2283_v1 }
 0x164   : > { %v477_v30 = vmul.f32 0.0078125, %v414_v28  ;;  %v540_v31 = vmul.f32 %v3191_v26, %v3191_v26  ;;  %v479_v34 = vmul.f32 0.0078125, %v418_v29  ;;  %v542_v39 = vmul.f32 %v3197_v33, %v3197_v33  ;;  %v2289_v29 = vld [vmem:[#allocation8 + $0x50] ss:$8 sps:$4 sm:$0xff]  }
 0x166   : > { %v3195_v32 = vsub.f32 %v380_v2, %v477_v30  ;;  %572 = vadd.xlane.f32.xlu0 %v540_v31  ;;  %v3205_v38 = vsub.f32 %v382_v3, %v479_v34  ;;  %v3246_v2 = vld [vmem:[%s3105_s16 + $0xc8] sm:$0xff]  ;;  %v3264_v30 = vld [vmem:[%s3105_s16 + $0xd8] sm:$0xff] }
 0x167   : > { %v420_v36 = vpop.xlane.xlu0 %419  ;;  %v422_v42 = vpop.xlane.xlu1 %421  ;;  %v2290_v34 = vld [vmem:[#allocation8 + $0x64] ss:$8 sps:$4 sm:$0xff]  }
 0x168   : > { %v541_v37 = vmul.f32 %v3195_v32, %v3195_v32  ;;  %v480_v40 = vmul.f32 0.0078125, %v420_v36  ;;  %v543_v44 = vmul.f32 %v3205_v38, %v3205_v38  ;;  %v481_v45 = vmul.f32 0.0078125, %v422_v42 }
 0x16a   : > { %451 = vadd.xlane.f32.xlu0 %v3200_v35  ;;  %574 = vadd.xlane.f32.xlu1 %v541_v37  ;;  %v3214_v43 = vsub.f32 %v3128_v4, %v480_v40  ;;  %v3223_v48 = vsub.f32 %v3131_v5, %v481_v45  ;;  %v2284_v5 = vld [vmem:[#allocation8 + $0x44] ss:$8 sps:$4 sm:$0xff]   ;;  %v3273_v40 = vld [vmem:[%s3105_s16 + $0xe0] sm:$0xff] }
 0x16b   : > { %v424_v47 = vpop.xlane.xlu0 %423  ;;  %v426_v53 = vpop.xlane.xlu1 %425  ;;  %974 = vmatprep.subr.bf16.mxu0 %v2284_v5 }
 0x16c   : > { %v544_v49 = vmul.f32 %v3214_v43, %v3214_v43  ;;  %v482_v50 = vmul.f32 0.0078125, %v424_v47  ;;  %v545_v56 = vmul.f32 %v3223_v48, %v3223_v48  ;;  %v483_v57 = vmul.f32 0.0078125, %v426_v53  ;;  %975 = vmatpush1.bf16.msra.mxu0 %v2286_v21 }
 0x16d   : > { %976 = vmatprep.subr.bf16.mxu0 %v2287_v25 }
 0x16e   : > { %576 = vadd.xlane.f32.xlu0 %v542_v39  ;;  %453 = vadd.xlane.f32.xlu1 %v3210_v41  ;;  %v3232_v55 = vsub.f32 %v3134_v6, %v482_v50  ;;  %v3241_v62 = vsub.f32 %v3137_v7, %v483_v57  ;;  %v2292_v39 = vld [vmem:[#allocation8 + $0x60] ss:$8 sps:$4 sm:$0xff]  }
 0x16f   : > { %v428_v60 = vpop.xlane.xlu0 %427  ;;  %v430_v3 = vpop.xlane.xlu1 %429  ;;  %v3282_v50 = vld [vmem:[%s3105_s16 + $0xe8] sm:$0xff] }
 0x170   : > { %v546_v63 = vmul.f32 %v3232_v55, %v3232_v55  ;;  %v484_v0 = vmul.f32 0.0078125, %v428_v60  ;;  %v547_v7 = vmul.f32 %v3241_v62, %v3241_v62  ;;  %v485_v20 = vmul.f32 0.0078125, %v430_v3  ;;  %977 = vmatpush1.bf16.msra.mxu0 %v2289_v29 }
 0x171   : > { %978 = vmatprep.subr.bf16.mxu0 %v2290_v34  ;;  %v2793_v60 = vmov 0  }
 0x172   : > { %455 = vadd.xlane.f32.xlu0 %v3219_v46  ;;  %578 = vadd.xlane.f32.xlu1 %v543_v44  ;;  %v3250_v6 = vsub.f32 %v3142_v8, %v484_v0  ;;  %v3259_v8 = vsub.f32 %v3145_v9, %v485_v20  ;;  %v2293_v44 = vld [vmem:[#allocation8 + $0x74] ss:$8 sps:$4 sm:$0xff]  }
 0x173   : > { %v432_v4 = vpop.xlane.xlu0 %431  ;;  %v434_v23 = vpop.xlane.xlu1 %433  ;;  %998 = vmatprep.mubr.bf16.mxu0 %v2793_v60 }
 0x174   : > { %v548_v27 = vmul.f32 %v3250_v6, %v3250_v6  ;;  %v486_v28 = vmul.f32 0.0078125, %v432_v4  ;;  %v549_v9 = vmul.f32 %v3259_v8, %v3259_v8  ;;  %v487_v37 = vmul.f32 0.0078125, %v434_v23  ;;  %979 = vmatpush1.bf16.msra.mxu0 %v2292_v39  ;;  %v3304_v4 = vld [vmem:[%s3105_s16 + $0xf8] sm:$0xff] }
 0x175   : > { %980 = vmatprep.subr.bf16.mxu0 %v2293_v44 }
 0x176   : > { %457 = vadd.xlane.f32.xlu1 %v3228_v52  ;;  %580 = vadd.xlane.f32.xlu0 %v544_v49  ;;  %v3268_v36 = vsub.f32 %v3150_v10, %v486_v28  ;;  %v3277_v45 = vsub.f32 %v3153_v11, %v487_v37  ;;  %v2295_v49 = vld [vmem:[#allocation8 + $0x70] ss:$8 sps:$4 sm:$0xff]  }
 0x177   : > { %v436_v24 = vpop.xlane.xlu0 %435  ;;  %v438_v31 = vpop.xlane.xlu1 %437 }
 0x178   : > { %v550_v10 = vmul.f32 %v3268_v36, %v3268_v36  ;;  %v488_v47 = vmul.f32 0.0078125, %v436_v24  ;;  %981 = vmatpush1.bf16.msra.mxu0 %v2295_v49  ;;  %v489_v53 = vmul.f32 0.0078125, %v438_v31  ;;  %v551_v11 = vmul.f32 %v3277_v45, %v3277_v45 }
 0x17a   : > { %582 = vadd.xlane.f32.xlu1 %v545_v56  ;;  %459 = vadd.xlane.f32.xlu0 %v3237_v59  ;;  %v3286_v56 = vsub.f32 %v3158_v12, %v488_v47  ;;  %v3295_v61 = vsub.f32 %v3163_v13, %v489_v53 }
 0x17b   : > { %v440_v42 = vpop.xlane.xlu0 %439  ;;  %v442_v51 = vpop.xlane.xlu1 %441 }
 0x17c   : > { %v490_v57 = vmul.f32 0.0078125, %v440_v42  ;;  %v552_v1 = vmul.f32 %v3286_v56, %v3286_v56  ;;  %v553_v13 = vmul.f32 %v3295_v61, %v3295_v61 }
 0x17e   : > { %461 = vadd.xlane.f32.xlu1 %v3246_v2  ;;  %584 = vadd.xlane.f32.xlu0 %v546_v63  ;;  %v491_v63 = vmul.f32 0.0078125, %v442_v51  ;;  %v3299_v12 = vsub.f32 %v3168_v14, %v490_v57 }
 0x17f   : > { %v444_v54 = vpop.xlane.xlu0 %443  ;;  %v446_v0 = vpop.xlane.xlu1 %445 }
 0x180   : > { %v492_v3 = vmul.f32 0.0078125, %v444_v54  ;;  %v554_v14 = vmul.f32 %v3299_v12, %v3299_v12  ;;  %v493_v21 = vmul.f32 0.0078125, %v446_v0 }
 0x182   : > { %586 = vadd.xlane.f32.xlu1 %v547_v7  ;;  %463 = vadd.xlane.f32.xlu0 %v3255_v22  ;;  %v3307_v7 = vsub.f32 %v3171_v15, %v491_v63  ;;  %v3313_v20 = vsub.f32 %v3176_v16, %v492_v3  ;;  %v3320_v15 = vsub.f32 %v3179_v17, %v493_v21 }
 0x183   : > { %v448_v5 = vpop.xlane.xlu0 %447  ;;  %v450_v24 = vpop.xlane.xlu1 %449 }
 0x184   : > { %v494_v23 = vmul.f32 0.0078125, %v448_v5  ;;  %v555_v25 = vmul.f32 %v3307_v7, %v3307_v7  ;;  %v556_v16 = vmul.f32 %v3313_v20, %v3313_v20  ;;  %v495_v28 = vmul.f32 0.0078125, %v450_v24 }
 0x185   : > { %v557_v31 = vmul.f32 %v3320_v15, %v3320_v15 }
 0x186   : > { %465 = vadd.xlane.f32.xlu1 %v3264_v30  ;;  %588 = vadd.xlane.f32.xlu0 %v548_v27  ;;  %v3323_v27 = vsub.f32 %v3184_v18, %v494_v23  ;;  %v3328_v29 = vsub.f32 %v3187_v19, %v495_v28 }
 0x188   : > { %v558_v34 = vmul.f32 %v3323_v27, %v3323_v27  ;;  %v559_v17 = vmul.f32 %v3328_v29, %v3328_v29 }
 0x18a   : > { %590 = vadd.xlane.f32.xlu1 %v549_v9  ;;  %467 = vadd.xlane.f32.xlu0 %v3273_v40 }
 0x18e   : > { %469 = vadd.xlane.f32.xlu1 %v3282_v50  ;;  %592 = vadd.xlane.f32.xlu0 %v550_v10 }
 0x192   : > { %594 = vadd.xlane.f32.xlu1 %v551_v11  ;;  %471 = vadd.xlane.f32.xlu0 %v3291_v58 }
 0x196   : > { %473 = vadd.xlane.f32.xlu1 %v3304_v4  ;;  %596 = vadd.xlane.f32.xlu0 %v552_v1 }
 0x19a   : > { %598 = vadd.xlane.f32.xlu1 %v553_v13  ;;  %600 = vadd.xlane.f32.xlu0 %v554_v14 }
 0x19e   : > { %602 = vadd.xlane.f32.xlu1 %v555_v25  ;;  %604 = vadd.xlane.f32.xlu0 %v556_v16 }
 0x1a2   : > { %606 = vadd.xlane.f32.xlu1 %v557_v31  ;;  %608 = vadd.xlane.f32.xlu0 %v558_v34  ;;  %v3352_v31 = vld [vmem:[#allocation5] ss:$0 sm:$0xff] }
 0x1a6   : > { %610 = vadd.xlane.f32.xlu1 %v559_v17 }
 0x1f3   : > { %v573_v18 = vpop.xlane.xlu0 %572 }
 0x1f4   : > { %v636_v9 = vmul.f32 0.0078125, %v573_v18 }
 0x1f6   : > { %v668_v37 = vadd.f32 1e-05, %v636_v9 }
 0x1f7   : > { %v575_v39 = vpop.xlane.xlu1 %574  ;;  %v452_v42 = vpop.xlane.xlu0 %451 }
 0x1f8   : > { %2312 = vrsqrt.f32 %v668_v37  ;;  %v637_v19 = vmul.f32 0.0078125, %v575_v39  ;;  %v496_v44 = vmul.f32 0.0078125, %v452_v42 }
 0x1fa   : > { %v669_v10 = vadd.f32 1e-05, %v637_v19  ;;  %v3337_v47 = vsub.f32 %v3200_v35, %v496_v44  ;;  %v3361_v44 = vld [vmem:[#allocation7] ss:$0 sm:$0xff] }
 0x1fb   : > { %v454_v49 = vpop.xlane.xlu1 %453  ;;  %v577_v51 = vpop.xlane.xlu0 %576 }
 0x1fc   : > { %2314 = vrsqrt.f32 %v669_v10  ;;  %v497_v53 = vmul.f32 0.0078125, %v454_v49  ;;  %v638_v54 = vmul.f32 0.0078125, %v577_v51  ;;  %v560_v11 = vmul.f32 %v3337_v47, %v3337_v47 }
 0x1fe   : > { %v3342_v57 = vsub.f32 %v3210_v41, %v497_v53  ;;  %v670_v63 = vadd.f32 1e-05, %v638_v54  ;;  %612 = vadd.xlane.f32.xlu0 %v560_v11 }
 0x1ff   : > { %v579_v0 = vpop.xlane.xlu1 %578  ;;  %v456_v1 = vpop.xlane.xlu0 %455 }
 0x200   : > { %2316 = vrsqrt.f32 %v670_v63  ;;  %v639_v3 = vmul.f32 0.0078125, %v579_v0  ;;  %v498_v5 = vmul.f32 0.0078125, %v456_v1  ;;  %v561_v35 = vmul.f32 %v3342_v57, %v3342_v57 }
 0x202   : > { %v2313_v13 = vpop.eup %2312  ;;  %v671_v14 = vadd.f32 1e-05, %v639_v3  ;;  %v3347_v21 = vsub.f32 %v3219_v46, %v498_v5  ;;  %614 = vadd.xlane.f32.xlu1 %v561_v35 }
 0x203   : > { %v458_v23 = vpop.xlane.xlu1 %457  ;;  %v581_v24 = vpop.xlane.xlu0 %580  ;;  %v732_v41 = vmul.f32 %v2313_v13, %v3191_v26 }
 0x204   : > { %2318 = vrsqrt.f32 %v671_v14  ;;  %v499_v25 = vmul.f32 0.0078125, %v458_v23  ;;  %v640_v16 = vmul.f32 0.0078125, %v581_v24  ;;  %v562_v28 = vmul.f32 %v3347_v21, %v3347_v21 }
 0x205   : > { %v771_v26 = vmul.f32 %v3352_v31, %v732_v41 }
 0x206   : > { %v2315_v34 = vpop.eup %2314  ;;  %v3355_v17 = vsub.f32 %v3228_v52, %v499_v25  ;;  %v672_v18 = vadd.f32 1e-05, %v640_v16  ;;  %616 = vadd.xlane.f32.xlu0 %v562_v28 }
 0x207   : > { %v583_v46 = vpop.xlane.xlu1 %582  ;;  %v460_v9 = vpop.xlane.xlu0 %459  ;;  %v733_v37 = vmul.f32 %v2315_v34, %v3195_v32  ;;  %v810_v54 = vadd.f32 %v3361_v44, %v771_v26 }
 0x208   : > { %2320 = vrsqrt.f32 %v672_v18  ;;  %v641_v39 = vmul.f32 0.0078125, %v583_v46  ;;  %v500_v42 = vmul.f32 0.0078125, %v460_v9  ;;  %v563_v19 = vmul.f32 %v3355_v17, %v3355_v17 }
 0x209   : > { %v772_v10 = vmul.f32 %v3352_v31, %v733_v37 }
 0x20a   : > { %v2317_v52 = vpop.eup %2316  ;;  %v673_v49 = vadd.f32 1e-05, %v641_v39  ;;  %v3365_v51 = vsub.f32 %v3237_v59, %v500_v42  ;;  %618 = vadd.xlane.f32.xlu1 %v563_v19 }
 0x20b   : > { %v462_v53 = vpop.xlane.xlu1 %461  ;;  %v585_v32 = vpop.xlane.xlu0 %584  ;;  %v811_v11 = vadd.f32 %v3361_v44, %v772_v10  ;;  %v734_v63 = vmul.f32 %v2317_v52, %v3197_v33 }
 0x20c   : > { %2322 = vrsqrt.f32 %v673_v49  ;;  %v501_v0 = vmul.f32 0.0078125, %v462_v53  ;;  %v642_v1 = vmul.f32 0.0078125, %v585_v32  ;;  %v564_v3 = vmul.f32 %v3365_v51, %v3365_v51 }
 0x20d   : > { %v842_v5 = vpack.c.bf16 %v811_v11, %v810_v54  ;;  %v773_v33 = vmul.f32 %v3352_v31, %v734_v63 }
 0x20e   : > { %v2319_v35 = vpop.eup %2318  ;;  %v3373_v59 = vsub.f32 %v3246_v2, %v501_v0  ;;  %v674_v13 = vadd.f32 1e-05, %v642_v1  ;;  %620 = vadd.xlane.f32.xlu0 %v564_v3 }
 0x20f   : > { %v587_v14 = vpop.xlane.xlu1 %586  ;;  %999 = vmatmul.mubr.bf16.vlgmr.msra.gmra.mrb[0].mxu0 %v842_v5  ;;  %v464_v23 = vpop.xlane.xlu0 %463  ;;  %v735_v24 = vmul.f32 %v2319_v35, %v3205_v38  ;;  %v812_v9 = vadd.f32 %v3361_v44, %v773_v33 }
 0x210   : > { %2324 = vrsqrt.f32 %v674_v13  ;;  %v643_v41 = vmul.f32 0.0078125, %v587_v14  ;;  %v502_v25 = vmul.f32 0.0078125, %v464_v23  ;;  %v565_v16 = vmul.f32 %v3373_v59, %v3373_v59  ;;  %1008 = vmatprep.mubr.bf16.mxu0 %v2793_v60 }
 0x211   : > { %v774_v2 = vmul.f32 %v3352_v31, %v735_v24 }
 0x212   : > { %v2321_v28 = vpop.eup %2320  ;;  %v675_v34 = vadd.f32 1e-05, %v643_v41  ;;  %v3382_v18 = vsub.f32 %v3255_v22, %v502_v25  ;;  %622 = vadd.xlane.f32.xlu1 %v565_v16 }
 0x213   : > { %v466_v46 = vpop.xlane.xlu1 %465  ;;  %v589_v38 = vpop.xlane.xlu0 %588  ;;  %v813_v37 = vadd.f32 %v3361_v44, %v774_v2  ;;  %v736_v26 = vmul.f32 %v2321_v28, %v3214_v43 }
 0x214   : > { %2326 = vrsqrt.f32 %v675_v34  ;;  %v503_v39 = vmul.f32 0.0078125, %v466_v46  ;;  %v644_v42 = vmul.f32 0.0078125, %v589_v38  ;;  %v566_v19 = vmul.f32 %v3382_v18, %v3382_v18 }
 0x215   : > { %v843_v10 = vpack.c.bf16 %v813_v37, %v812_v9  ;;  %v775_v43 = vmul.f32 %v3352_v31, %v736_v26 }
 0x216   : > { %v2323_v52 = vpop.eup %2322  ;;  %v3390_v22 = vsub.f32 %v3264_v30, %v503_v39  ;;  %v676_v49 = vadd.f32 1e-05, %v644_v42  ;;  %624 = vadd.xlane.f32.xlu0 %v566_v19 }
 0x217   : > { %v591_v53 = vpop.xlane.xlu1 %590  ;;  %1009 = vmatmul.mubr.bf16.gmra.mrb[4].mxu0 %v843_v10  ;;  %v468_v32 = vpop.xlane.xlu0 %467  ;;  %v737_v54 = vmul.f32 %v2323_v52, %v3223_v48  ;;  %v814_v13 = vadd.f32 %v3361_v44, %v775_v43 }
 0x218   : > { %2328 = vrsqrt.f32 %v676_v49  ;;  %v645_v11 = vmul.f32 0.0078125, %v591_v53  ;;  %v504_v63 = vmul.f32 0.0078125, %v468_v32  ;;  %v567_v0 = vmul.f32 %v3390_v22, %v3390_v22  ;;  %1018 = vmatprep.mubr.bf16.mxu0 %v2793_v60 }
 0x219   : > { %v776_v30 = vmul.f32 %v3352_v31, %v737_v54 }
 0x21a   : > { %v2325_v1 = vpop.eup %2324  ;;  %v677_v3 = vadd.f32 1e-05, %v645_v11  ;;  %v3399_v5 = vsub.f32 %v3273_v40, %v504_v63  ;;  %626 = vadd.xlane.f32.xlu1 %v567_v0 }
 0x21b   : > { %v470_v35 = vpop.xlane.xlu1 %469  ;;  %v593_v48 = vpop.xlane.xlu0 %592  ;;  %v815_v14 = vadd.f32 %v3361_v44, %v776_v30  ;;  %v738_v23 = vmul.f32 %v2325_v1, %v3232_v55 }
 0x21c   : > { %2330 = vrsqrt.f32 %v677_v3  ;;  %v505_v24 = vmul.f32 0.0078125, %v470_v35  ;;  %v646_v33 = vmul.f32 0.0078125, %v593_v48  ;;  %v568_v41 = vmul.f32 %v3399_v5, %v3399_v5 }
 0x21d   : > { %v844_v25 = vpack.c.bf16 %v815_v14, %v814_v13  ;;  %v777_v55 = vmul.f32 %v3352_v31, %v738_v23 }
 0x21e   : > { %v2327_v16 = vpop.eup %2326  ;;  %v3407_v40 = vsub.f32 %v3282_v50, %v505_v24  ;;  %v678_v2 = vadd.f32 1e-05, %v646_v33  ;;  %628 = vadd.xlane.f32.xlu0 %v568_v41 }
 0x21f   : > { %v595_v28 = vpop.xlane.xlu1 %594  ;;  %1019 = vmatmul.mubr.bf16.gmra.mrb[8].mxu0 %v844_v25  ;;  %v472_v34 = vpop.xlane.xlu0 %471  ;;  %v739_v46 = vmul.f32 %v2327_v16, %v3241_v62  ;;  %v816_v10 = vadd.f32 %v3361_v44, %v777_v55 }
 0x220   : > { %2332 = vrsqrt.f32 %v678_v2  ;;  %v647_v38 = vmul.f32 0.0078125, %v595_v28  ;;  %v506_v9 = vmul.f32 0.0078125, %v472_v34  ;;  %v569_v37 = vmul.f32 %v3407_v40, %v3407_v40  ;;  %1028 = vmatprep.mubr.bf16.mxu0 %v2793_v60 }
 0x221   : > { %v778_v50 = vmul.f32 %v3352_v31, %v739_v46 }
 0x222   : > { %v2329_v26 = vpop.eup %2328  ;;  %v679_v39 = vadd.f32 1e-05, %v647_v38  ;;  %v3416_v42 = vsub.f32 %v3291_v58, %v506_v9  ;;  %630 = vadd.xlane.f32.xlu1 %v569_v37 }
 0x223   : > { %v474_v19 = vpop.xlane.xlu1 %473  ;;  %v597_v62 = vpop.xlane.xlu0 %596  ;;  %v817_v52 = vadd.f32 %v3361_v44, %v778_v50  ;;  %v740_v49 = vmul.f32 %v2329_v26, %v3250_v6 }
 0x224   : > { %2334 = vrsqrt.f32 %v679_v39  ;;  %v507_v53 = vmul.f32 0.0078125, %v474_v19  ;;  %v648_v32 = vmul.f32 0.0078125, %v597_v62  ;;  %v570_v54 = vmul.f32 %v3416_v42, %v3416_v42 }
 0x225   : > { %v845_v43 = vpack.c.bf16 %v817_v52, %v816_v10  ;;  %v779_v6 = vmul.f32 %v3352_v31, %v740_v49 }
 0x226   : > { %v2331_v11 = vpop.eup %2330  ;;  %v3424_v58 = vsub.f32 %v3304_v4, %v507_v53  ;;  %v680_v63 = vadd.f32 1e-05, %v648_v32  ;;  %632 = vadd.xlane.f32.xlu0 %v570_v54 }
 0x227   : > { %v599_v0 = vpop.xlane.xlu1 %598  ;;  %1029 = vmatmul.mubr.bf16.gmra.mrb[12].mxu0 %v845_v43  ;;  %v601_v30 = vpop.xlane.xlu0 %600  ;;  %v741_v1 = vmul.f32 %v2331_v11, %v3259_v8  ;;  %v818_v8 = vadd.f32 %v3361_v44, %v779_v6 }
 0x228   : > { %2336 = vrsqrt.f32 %v680_v63  ;;  %v649_v3 = vmul.f32 0.0078125, %v599_v0  ;;  %v650_v35 = vmul.f32 0.0078125, %v601_v30  ;;  %v571_v48 = vmul.f32 %v3424_v58, %v3424_v58  ;;  %1038 = vmatprep.mubr.bf16.mxu0 %v2793_v60 }
 0x229   : > { %v780_v4 = vmul.f32 %v3352_v31, %v741_v1 }
 0x22a   : > { %v2333_v13 = vpop.eup %2332  ;;  %v681_v14 = vadd.f32 1e-05, %v649_v3  ;;  %v682_v23 = vadd.f32 1e-05, %v650_v35  ;;  %634 = vadd.xlane.f32.xlu1 %v571_v48 }
 0x22b   : > { %v603_v24 = vpop.xlane.xlu1 %602  ;;  %v605_v33 = vpop.xlane.xlu0 %604  ;;  %v819_v41 = vadd.f32 %v3361_v44, %v780_v4  ;;  %v742_v25 = vmul.f32 %v2333_v13, %v3268_v36 }
 0x22c   : > { %2338 = vrsqrt.f32 %v681_v14  ;;  %v651_v16 = vmul.f32 0.0078125, %v603_v24  ;;  %v652_v46 = vmul.f32 0.0078125, %v605_v33 }
 0x22d   : > { %v846_v2 = vpack.c.bf16 %v819_v41, %v818_v8  ;;  %2340 = vrsqrt.f32 %v682_v23  ;;  %v781_v9 = vmul.f32 %v3352_v31, %v742_v25 }
 0x22e   : > { %v2335_v28 = vpop.eup %2334  ;;  %v683_v34 = vadd.f32 1e-05, %v651_v16  ;;  %v684_v26 = vadd.f32 1e-05, %v652_v46 }
 0x22f   : > { %v607_v55 = vpop.xlane.xlu1 %606  ;;  %1039 = vmatmul.mubr.bf16.gmra.mrb[16].mxu0 %v846_v2  ;;  %v743_v38 = vmul.f32 %v2335_v28, %v3277_v45  ;;  %v609_v19 = vpop.xlane.xlu0 %608  ;;  %v820_v10 = vadd.f32 %v3361_v44, %v781_v9  ;;  %v2296_v9 = vld [vmem:[#allocation11 + $0x40] sm:$0xff]  }
 0x230   : > { %2342 = vrsqrt.f32 %v683_v34  ;;  %v653_v37 = vmul.f32 0.0078125, %v607_v55  ;;  %1048 = vmatprep.mubr.bf16.mxu0 %v2793_v60  ;;  %v654_v54 = vmul.f32 0.0078125, %v609_v19  ;;  %2046 = vmatprep.subr.bf16.mxu1 %v2296_v9  ;;  %v2301_v19 = vld [vmem:[#allocation11 + $0x10] sm:$0xff]  }
 0x231   : > { %v782_v50 = vmul.f32 %v3352_v31, %v743_v38 }
 0x232   : > { %v2337_v36 = vpop.eup %2336  ;;  %v685_v39 = vadd.f32 1e-05, %v653_v37  ;;  %v686_v6 = vadd.f32 1e-05, %v654_v54  ;;  %v2297_v37 = vld [vmem:[#allocation11] sm:$0xff]   ;;  %v2309_v54 = vld [vmem:[#allocation11 + $0x30] sm:$0xff]  }
 0x233   : > { %v611_v62 = vpop.xlane.xlu1 %610  ;;  %v821_v52 = vadd.f32 %v3361_v44, %v782_v50  ;;  %v744_v49 = vmul.f32 %v2337_v36, %v3286_v56  ;;  %v2298_v50 = vld [vmem:[#allocation11 + $0x48] sm:$0xff]   ;;  %2047 = vmatpush3.bf16.msra.mxu1 %v2297_v37 }
 0x234   : > { %2344 = vrsqrt.f32 %v685_v39  ;;  %v655_v45 = vmul.f32 0.0078125, %v611_v62  ;;  %2048 = vmatprep.subr.bf16.mxu1 %v2298_v50  ;;  %v2300_v39 = vld [vmem:[#allocation11 + $0x50] sm:$0xff]   ;;  %v2302_v62 = vld [vmem:[#allocation11 + $0x58] sm:$0xff]  }
 0x235   : > { %v847_v53 = vpack.c.bf16 %v821_v52, %v820_v10  ;;  %2346 = vrsqrt.f32 %v684_v26  ;;  %v783_v11 = vmul.f32 %v3352_v31, %v744_v49  ;;  %v2303_v10 = vld [vmem:[#allocation11 + $0x18] sm:$0xff]   ;;  %v2304_v52 = vld [vmem:[#allocation11 + $0x60] sm:$0xff]  }
 0x236   : > { %v2339_v32 = vpop.eup %2338  ;;  %v687_v0 = vadd.f32 1e-05, %v655_v45  ;;  %v2305_v49 = vld [vmem:[#allocation11 + $0x20] sm:$0xff]   ;;  %v2306_v45 = vld [vmem:[#allocation11 + $0x68] sm:$0xff]  }
 0x237   : > { %1049 = vmatmul.mubr.bf16.gmra.mrb[20].mxu0 %v847_v53  ;;  %v745_v43 = vmul.f32 %v2339_v32, %v3295_v61  ;;  %v2341_v63 = vpop.eup %2340  ;;  %v822_v56 = vadd.f32 %v3361_v44, %v783_v11  ;;  %v2307_v53 = vld [vmem:[#allocation11 + $0x28] sm:$0xff]   ;;  %v2308_v32 = vld [vmem:[#allocation11 + $0x70] sm:$0xff]   ;;  %v2311_v11 = vld [vmem:[#allocation11 + $0x38] sm:$0xff]  }
 0x238   : > { %1058 = vmatprep.mubr.bf16.mxu0 %v2793_v60  ;;  %v746_v35 = vmul.f32 %v2341_v63, %v3299_v12  ;;  %2348 = vrsqrt.f32 %v687_v0 }
 0x239   : > { %v784_v30 = vmul.f32 %v3352_v31, %v745_v43  ;;  %2350 = vrsqrt.f32 %v686_v6  ;;  %v2310_v43 = vld [vmem:[#allocation11 + $0x78] sm:$0xff]  }
 0x23a   : > { %v2343_v1 = vpop.eup %2342  ;;  %v785_v14 = vmul.f32 %v3352_v31, %v746_v35 }
 0x23b   : > { %v823_v3 = vadd.f32 %v3361_v44, %v784_v30  ;;  %v747_v48 = vmul.f32 %v2343_v1, %v3307_v7 }
 0x23c   : > { %v824_v12 = vadd.f32 %v3361_v44, %v785_v14 }
 0x23d   : > { %v848_v61 = vpack.c.bf16 %v823_v3, %v822_v56  ;;  %v786_v4 = vmul.f32 %v3352_v31, %v747_v48 }
 0x23e   : > { %v2345_v13 = vpop.eup %2344 }
 0x23f   : > { %1059 = vmatmul.mubr.bf16.gmra.mrb[24].mxu0 %v848_v61  ;;  %v2347_v23 = vpop.eup %2346  ;;  %v825_v24 = vadd.f32 %v3361_v44, %v786_v4  ;;  %v749_v33 = vmul.f32 %v2345_v13, %v3320_v15 }
 0x240   : > { %1068 = vmatprep.mubr.bf16.mxu0 %v2793_v60  ;;  %v748_v7 = vmul.f32 %v2347_v23, %v3313_v20 }
 0x241   : > { %v849_v8 = vpack.c.bf16 %v825_v24, %v824_v12  ;;  %v788_v41 = vmul.f32 %v3352_v31, %v749_v33 }
 0x242   : > { %v2349_v25 = vpop.eup %2348  ;;  %v787_v16 = vmul.f32 %v3352_v31, %v748_v7 }
 0x243   : > { %v2351_v2 = vpop.eup %2350  ;;  %v827_v28 = vadd.f32 %v3361_v44, %v788_v41  ;;  %v751_v34 = vmul.f32 %v2349_v25, %v3328_v29  ;;  %v2299_v29 = vld [vmem:[#allocation11 + $0x8] sm:$0xff]  }
 0x244   : > { %v826_v15 = vadd.f32 %v3361_v44, %v787_v16  ;;  %v750_v46 = vmul.f32 %v2351_v2, %v3323_v27  ;;  %2049 = vmatpush3.bf16.msra.mxu1 %v2299_v29 }
 0x245   : > { %v790_v20 = vmul.f32 %v3352_v31, %v751_v34  ;;  %2050 = vmatprep.subr.bf16.mxu1 %v2300_v39 }
 0x246   : > { %v850_v55 = vpack.c.bf16 %v827_v28, %v826_v15  ;;  %v789_v38 = vmul.f32 %v3352_v31, %v750_v46 }
 0x247   : > { %1069 = vmatmul.mubr.bf16.gmra.mrb[28].mxu0 %v849_v8  ;;  %v829_v36 = vadd.f32 %v3361_v44, %v790_v20 }
 0x248   : > { %1078 = vmatprep.mubr.bf16.mxu0 %v2793_v60  ;;  %v828_v26 = vadd.f32 %v3361_v44, %v789_v38  ;;  %2051 = vmatpush3.bf16.msra.mxu1 %v2301_v19 }
 0x249   : > { %2052 = vmatprep.subr.bf16.mxu1 %v2302_v62 }
 0x24a   : > { %v851_v27 = vpack.c.bf16 %v829_v36, %v828_v26 }
 0x24c   : > { %2053 = vmatpush3.bf16.msra.mxu1 %v2303_v10 }
 0x24d   : > { %2054 = vmatprep.subr.bf16.mxu1 %v2304_v52 }
 0x24f   : > { %1079 = vmatmul.mubr.bf16.gmra.mrb[32].mxu0 %v850_v55 }
 0x250   : > { %1088 = vmatprep.mubr.bf16.mxu0 %v2793_v60  ;;  %2055 = vmatpush3.bf16.msra.mxu1 %v2305_v49 }
 0x251   : > { %2056 = vmatprep.subr.bf16.mxu1 %v2306_v45 }
 0x254   : > { %2057 = vmatpush3.bf16.msra.mxu1 %v2307_v53 }
 0x255   : > { %2058 = vmatprep.subr.bf16.mxu1 %v2308_v32 }
 0x257   : > { %1089 = vmatmul.mubr.bf16.gmra.mrb[36].mxu0 %v851_v27 }
 0x258   : > { %1098 = vmatprep.mubr.bf16.mxu0 %v2793_v60  ;;  %2059 = vmatpush3.bf16.msra.mxu1 %v2309_v54 }
 0x259   : > { %2060 = vmatprep.subr.bf16.mxu1 %v2310_v43 }
 0x25c   : > { %2061 = vmatpush3.bf16.msra.mxu1 %v2311_v11 }
 0x28b   : > { %v613_v63 = vpop.xlane.xlu0 %612 }
 0x28c   : > { %v656_v0 = vmul.f32 0.0078125, %v613_v63 }
 0x28e   : > { %v688_v30 = vadd.f32 1e-05, %v656_v0 }
 0x28f   : > { %v615_v1 = vpop.xlane.xlu1 %614 }
 0x290   : > { %2352 = vrsqrt.f32 %v688_v30  ;;  %v657_v6 = vmul.f32 0.0078125, %v615_v1 }
 0x292   : > { %v689_v56 = vadd.f32 1e-05, %v657_v6 }
 0x293   : > { %v617_v3 = vpop.xlane.xlu0 %616 }
 0x294   : > { %2354 = vrsqrt.f32 %v689_v56  ;;  %v658_v35 = vmul.f32 0.0078125, %v617_v3 }
 0x296   : > { %v690_v48 = vadd.f32 1e-05, %v658_v35 }
 0x297   : > { %v619_v61 = vpop.xlane.xlu1 %618 }
 0x298   : > { %2356 = vrsqrt.f32 %v690_v48  ;;  %v659_v4 = vmul.f32 0.0078125, %v619_v61 }
 0x29a   : > { %v2353_v13 = vpop.eup %2352  ;;  %v691_v14 = vadd.f32 1e-05, %v659_v4 }
 0x29b   : > { %v621_v23 = vpop.xlane.xlu0 %620  ;;  %v752_v24 = vmul.f32 %v2353_v13, %v3337_v47 }
 0x29c   : > { %2358 = vrsqrt.f32 %v691_v14  ;;  %v660_v33 = vmul.f32 0.0078125, %v621_v23 }
 0x29d   : > { %v791_v25 = vmul.f32 %v3352_v31, %v752_v24 }
 0x29e   : > { %v2355_v12 = vpop.eup %2354  ;;  %v692_v7 = vadd.f32 1e-05, %v660_v33 }
 0x29f   : > { %v623_v8 = vpop.xlane.xlu1 %622  ;;  %v753_v41 = vmul.f32 %v2355_v12, %v3342_v57  ;;  %v830_v46 = vadd.f32 %v3361_v44, %v791_v25 }
 0x2a0   : > { %2360 = vrsqrt.f32 %v692_v7  ;;  %v661_v16 = vmul.f32 0.0078125, %v623_v8 }
 0x2a1   : > { %v792_v2 = vmul.f32 %v3352_v31, %v753_v41 }
 0x2a2   : > { %v2357_v28 = vpop.eup %2356  ;;  %v693_v34 = vadd.f32 1e-05, %v661_v16 }
 0x2a3   : > { %v625_v15 = vpop.xlane.xlu0 %624  ;;  %v831_v47 = vadd.f32 %v3361_v44, %v792_v2  ;;  %v754_v55 = vmul.f32 %v2357_v28, %v3347_v21 }
 0x2a4   : > { %2362 = vrsqrt.f32 %v693_v34  ;;  %v662_v20 = vmul.f32 0.0078125, %v625_v15 }
 0x2a5   : > { %v852_v38 = vpack.c.bf16 %v831_v47, %v830_v46  ;;  %v793_v36 = vmul.f32 %v3352_v31, %v754_v55 }
 0x2a6   : > { %v2359_v9 = vpop.eup %2358  ;;  %v694_v57 = vadd.f32 1e-05, %v662_v20 }
 0x2a7   : > { %v627_v37 = vpop.xlane.xlu1 %626  ;;  %1099 = vmatmul.mubr.bf16.gmra.mrb[40].mxu0 %v852_v38  ;;  %v755_v50 = vmul.f32 %v2359_v9, %v3355_v17  ;;  %v832_v19 = vadd.f32 %v3361_v44, %v793_v36  ;;  %v876_v9 = vlaneseq }
 0x2a8   : > { %2364 = vrsqrt.f32 %v694_v57  ;;  %v663_v29 = vmul.f32 0.0078125, %v627_v37  ;;  %1108 = vmatprep.mubr.bf16.mxu0 %v2793_v60  ;;  %v874_v37 = vld [vmem:[#allocation10] sm:$0x3] }
 0x2a9   : > { %v794_v26 = vmul.f32 %v3352_v31, %v755_v50  ;;  %v877_v57 = vshrl.u32 %v876_v9, 7 }
 0x2aa   : > { %v2361_v27 = vpop.eup %2360  ;;  %v695_v39 = vadd.f32 1e-05, %v663_v29 }
 0x2ab   : > { %v629_v21 = vpop.xlane.xlu0 %628  ;;  %v833_v62 = vadd.f32 %v3361_v44, %v794_v26  ;;  %v756_v10 = vmul.f32 %v2361_v27, %v3365_v51  ;;  %v882_v50 = vsub.s32 1, %v877_v57 }
 0x2ac   : > { %2366 = vrsqrt.f32 %v695_v39  ;;  %v664_v52 = vmul.f32 0.0078125, %v629_v21 }
 0x2ad   : > { %v853_v17 = vpack.c.bf16 %v833_v62, %v832_v19  ;;  %v795_v54 = vmul.f32 %v3352_v31, %v756_v10 }
 0x2ae   : > { %v2363_v49 = vpop.eup %2362  ;;  %v696_v45 = vadd.f32 1e-05, %v664_v52 }
 0x2af   : > { %v631_v53 = vpop.xlane.xlu1 %630  ;;  %1109 = vmatmul.mubr.bf16.gmra.mrb[44].mxu0 %v853_v17  ;;  %v757_v32 = vmul.f32 %v2363_v49, %v3373_v59  ;;  %v834_v30 = vadd.f32 %v3361_v44, %v795_v54 }
 0x2b0   : > { %2368 = vrsqrt.f32 %v696_v45  ;;  %v665_v43 = vmul.f32 0.0078125, %v631_v53  ;;  %1118 = vmatprep.mubr.bf16.mxu0 %v2793_v60 }
 0x2b1   : > { %v796_v11 = vmul.f32 %v3352_v31, %v757_v32 }
 0x2b2   : > { %v2365_v63 = vpop.eup %2364  ;;  %v697_v0 = vadd.f32 1e-05, %v665_v43 }
 0x2b3   : > { %v633_v51 = vpop.xlane.xlu0 %632  ;;  %v835_v1 = vadd.f32 %v3361_v44, %v796_v11  ;;  %v758_v6 = vmul.f32 %v2365_v63, %v3382_v18 }
 0x2b4   : > { %2370 = vrsqrt.f32 %v697_v0  ;;  %v666_v56 = vmul.f32 0.0078125, %v633_v51 }
 0x2b5   : > { %v854_v59 = vpack.c.bf16 %v835_v1, %v834_v30  ;;  %v797_v4 = vmul.f32 %v3352_v31, %v758_v6 }
 0x2b6   : > { %v2367_v3 = vpop.eup %2366  ;;  %v698_v35 = vadd.f32 1e-05, %v666_v56 }
 0x2b7   : > { %v635_v48 = vpop.xlane.xlu1 %634  ;;  %1119 = vmatmul.mubr.bf16.gmra.mrb[48].mxu0 %v854_v59  ;;  %v759_v61 = vmul.f32 %v2367_v3, %v3390_v22  ;;  %v836_v18 = vadd.f32 %v3361_v44, %v797_v4 }
 0x2b8   : > { %2372 = vrsqrt.f32 %v698_v35  ;;  %v667_v13 = vmul.f32 0.0078125, %v635_v48  ;;  %1128 = vmatprep.mubr.bf16.mxu0 %v2793_v60 }
 0x2b9   : > { %v798_v14 = vmul.f32 %v3352_v31, %v759_v61 }
 0x2ba   : > { %v2369_v23 = vpop.eup %2368  ;;  %v699_v24 = vadd.f32 1e-05, %v667_v13 }
 0x2bb   : > { %v837_v33 = vadd.f32 %v3361_v44, %v798_v14  ;;  %v760_v12 = vmul.f32 %v2369_v23, %v3399_v5 }
 0x2bc   : > { %2374 = vrsqrt.f32 %v699_v24 }
 0x2bd   : > { %v855_v7 = vpack.c.bf16 %v837_v33, %v836_v18  ;;  %v799_v41 = vmul.f32 %v3352_v31, %v760_v12 }
 0x2be   : > { %v2371_v8 = vpop.eup %2370 }
 0x2bf   : > { %1129 = vmatmul.mubr.bf16.gmra.mrb[52].mxu0 %v855_v7  ;;  %v761_v22 = vmul.f32 %v2371_v8, %v3407_v40  ;;  %v838_v2 = vadd.f32 %v3361_v44, %v799_v41 }
 0x2c0   : > { %1138 = vmatprep.mubr.bf16.mxu0 %v2793_v60 }
 0x2c1   : > { %v800_v25 = vmul.f32 %v3352_v31, %v761_v22 }
 0x2c2   : > { %v2373_v16 = vpop.eup %2372 }
 0x2c3   : > { %v839_v28 = vadd.f32 %v3361_v44, %v800_v25  ;;  %v762_v34 = vmul.f32 %v2373_v16, %v3416_v42  ;;  %v878_v42 = vsub.s32 0, %v877_v57 }
 0x2c5   : > { %v856_v5 = vpack.c.bf16 %v839_v28, %v838_v2  ;;  %v801_v40 = vmul.f32 %v3352_v31, %v762_v34  ;;  %v3511_v36 = vrot.slane %v874_v37, %v878_v42 }
 0x2c6   : > { %v2375_v15 = vpop.eup %2374 }
 0x2c7   : > { %1139 = vmatmul.mubr.bf16.gmra.mrb[56].mxu0 %v856_v5  ;;  %v763_v46 = vmul.f32 %v2375_v15, %v3424_v58  ;;  %v840_v55 = vadd.f32 %v3361_v44, %v801_v40  ;;  %v3513_v58 = vrot.slane %v874_v37, %v882_v50 }
 0x2c8   : > { %1148 = vmatprep.mubr.bf16.mxu0 %v2793_v60 }
 0x2c9   : > { %v802_v47 = vmul.f32 %v3352_v31, %v763_v46 }
 0x2cb   : > { %v841_v20 = vadd.f32 %v3361_v44, %v802_v47 }
 0x2cd   : > { %v857_v38 = vpack.c.bf16 %v841_v20, %v840_v55 }
 0x2cf   : > { %1149 = vmatmul.mubr.bf16.gmra.mrb[60].mxu0 %v857_v38 }
 0x2e2   : > { %v1000_v29 = vpop.f32.mrb[0].mxu0 }
 0x2e3   : > { %v1001_v60 = vadd.f32 %v1000_v29, %v3511_v36  ;;  %v1002_v26 = vpop.f32.mrb[1].mxu0 }
 0x2e4   : > { %v1003_v31 = vadd.f32 %v1002_v26, %v3513_v58  ;;  %v1004_v27 = vpop.f32.mrb[2].mxu0 }
 0x2e5   : > { %v1223_v39 = vmul.f32 0.70710677, %v1001_v60  ;;  %v1005_v44 = vadd.f32 %v1004_v27, %v3511_v36  ;;  %v1006_v21 = vpop.f32.mrb[3].mxu0  ;;  %v1159_v3 = vmul.f32 0.5, %v1001_v60 }
 0x2e6   : > { %v1224_v19 = vmul.f32 0.70710677, %v1003_v31  ;;  %v1007_v62 = vadd.f32 %v1006_v21, %v3513_v58  ;;  %v1160_v33 = vmul.f32 0.5, %v1003_v31 }
 0x2e7   : > { %2376 = verf.f32 %v1223_v39  ;;  %v1225_v10 = vmul.f32 0.70710677, %v1005_v44  ;;  %v1161_v13 = vmul.f32 0.5, %v1005_v44 }
 0x2e8   : > { %2378 = verf.f32 %v1224_v19  ;;  %v1226_v52 = vmul.f32 0.70710677, %v1007_v62  ;;  %v1162_v25 = vmul.f32 0.5, %v1007_v62 }
 0x2e9   : > { %2380 = verf.f32 %v1225_v10 }
 0x2ea   : > { %2382 = verf.f32 %v1226_v52  ;;  %v1010_v17 = vpop.f32.mrb[4].mxu0 }
 0x2eb   : > { %v1011_v49 = vadd.f32 %v1010_v17, %v3511_v36  ;;  %v1012_v45 = vpop.f32.mrb[5].mxu0 }
 0x2ec   : > { %v1013_v53 = vadd.f32 %v1012_v45, %v3513_v58  ;;  %v1014_v32 = vpop.f32.mrb[6].mxu0 }
 0x2ed   : > { %v1227_v54 = vmul.f32 0.70710677, %v1011_v49  ;;  %v1015_v43 = vadd.f32 %v1014_v32, %v3511_v36  ;;  %v1016_v11 = vpop.f32.mrb[7].mxu0  ;;  %v1163_v60 = vmul.f32 0.5, %v1011_v49 }
 0x2ee   : > { %v1228_v63 = vmul.f32 0.70710677, %v1013_v53  ;;  %v1017_v0 = vadd.f32 %v1016_v11, %v3513_v58  ;;  %v1164_v44 = vmul.f32 0.5, %v1013_v53 }
 0x2ef   : > { %2384 = verf.f32 %v1227_v54  ;;  %v1229_v51 = vmul.f32 0.70710677, %v1015_v43  ;;  %v1165_v26 = vmul.f32 0.5, %v1015_v43 }
 0x2f0   : > { %2386 = verf.f32 %v1228_v63  ;;  %v1230_v30 = vmul.f32 0.70710677, %v1017_v0  ;;  %v1166_v21 = vmul.f32 0.5, %v1017_v0 }
 0x2f1   : > { %v2377_v1 = vpop.eup %2376  ;;  %2388 = verf.f32 %v1229_v51 }
 0x2f2   : > { %v2379_v6 = vpop.eup %2378  ;;  %2390 = verf.f32 %v1230_v30  ;;  %v1020_v56 = vpop.f32.mrb[8].mxu0  ;;  %v1351_v35 = vadd.f32 1.0, %v2377_v1 }
 0x2f3   : > { %v2381_v59 = vpop.eup %2380  ;;  %v3524_v48 = vadd.f32 %v1020_v56, %v3511_v36  ;;  %v1022_v61 = vpop.f32.mrb[9].mxu0  ;;  %v1352_v18 = vadd.f32 1.0, %v2379_v6 }
 0x2f4   : > { %v2383_v4 = vpop.eup %2382  ;;  %v1353_v14 = vadd.f32 1.0, %v2381_v59  ;;  %v3527_v23 = vadd.f32 %v1022_v61, %v3513_v58  ;;  %v1024_v24 = vpop.f32.mrb[10].mxu0  ;;  %v1415_v28 = vmul.f32 %v1351_v35, %v1159_v3 }
 0x2f5   : > { %v1231_v12 = vmul.f32 0.70710677, %v3524_v48  ;;  %v3531_v7 = vadd.f32 %v1024_v24, %v3511_v36  ;;  %v1026_v8 = vpop.f32.mrb[11].mxu0  ;;  %v1354_v22 = vadd.f32 1.0, %v2383_v4  ;;  %v1416_v15 = vmul.f32 %v1352_v18, %v1160_v33 }
 0x2f6   : > { %v1417_v41 = vmul.f32 %v1353_v14, %v1161_v13  ;;  %v1232_v16 = vmul.f32 0.70710677, %v3527_v23  ;;  %v3535_v2 = vadd.f32 %v1026_v8, %v3513_v58  ;;  %v1167_v4 = vmul.f32 0.5, %v3524_v48 }
 0x2f7   : > { %2392 = verf.f32 %v1231_v12  ;;  %v1233_v34 = vmul.f32 0.70710677, %v3531_v7  ;;  %v1418_v46 = vmul.f32 %v1354_v22, %v1162_v25  ;;  %v1169_v13 = vmul.f32 0.5, %v3531_v7 }
 0x2f8   : > { %2394 = verf.f32 %v1232_v16  ;;  %v1234_v5 = vmul.f32 0.70710677, %v3535_v2  ;;  %v1479_v47 = vpack.c.bf16 %v1417_v41, %v1415_v28  ;;  %v1168_v33 = vmul.f32 0.5, %v3527_v23 }
 0x2f9   : > { %v2385_v40 = vpop.eup %2384  ;;  %2396 = verf.f32 %v1233_v34  ;;  %v1480_v9 = vpack.c.bf16 %v1418_v46, %v1416_v15  ;;  %v1170_v12 = vmul.f32 0.5, %v3535_v2 }
 0x2fa   : > { %v2387_v55 = vpop.eup %2386  ;;  %v1355_v20 = vadd.f32 1.0, %v2385_v40  ;;  %2398 = verf.f32 %v1234_v5  ;;  %v1030_v38 = vpop.f32.mrb[12].mxu0 }
 0x2fb   : > { %v2389_v57 = vpop.eup %2388  ;;  %v1356_v42 = vadd.f32 1.0, %v2387_v55  ;;  %v3540_v37 = vadd.f32 %v1030_v38, %v3511_v36  ;;  %v1032_v50 = vpop.f32.mrb[13].mxu0  ;;  %1678 = vmatprep.mubr.bf16.mxu1 %v1480_v9 }
 0x2fc   : > { %v2391_v29 = vpop.eup %2390  ;;  %v1357_v31 = vadd.f32 1.0, %v2389_v57  ;;  %v3543_v27 = vadd.f32 %v1032_v50, %v3513_v58  ;;  %v1034_v39 = vpop.f32.mrb[14].mxu0  ;;  %1679 = vmatmul.mubr.bf16.vlgmr.msra.gmra.mrb[0].mxu1 %v1479_v47  ;;  %v1419_v52 = vmul.f32 %v1355_v20, %v1163_v60 }
 0x2fd   : > { %v1358_v19 = vadd.f32 1.0, %v2391_v29  ;;  %v1235_v62 = vmul.f32 0.70710677, %v3540_v37  ;;  %v1036_v10 = vpop.f32.mrb[15].mxu0  ;;  %v1035_v49 = vadd.f32 %v1034_v39, %v3511_v36  ;;  %v1420_v32 = vmul.f32 %v1356_v42, %v1164_v44 }
 0x2fe   : > { %v1421_v17 = vmul.f32 %v1357_v31, %v1165_v26  ;;  %v1236_v45 = vmul.f32 0.70710677, %v3543_v27  ;;  %v1037_v43 = vadd.f32 %v1036_v10, %v3513_v58  ;;  %v1171_v42 = vmul.f32 0.5, %v3540_v37 }
 0x2ff   : > { %v1422_v54 = vmul.f32 %v1358_v19, %v1166_v21  ;;  %2400 = verf.f32 %v1235_v62  ;;  %v1237_v11 = vmul.f32 0.70710677, %v1035_v49  ;;  %v1172_v31 = vmul.f32 0.5, %v3543_v27 }
 0x300   : > { %2402 = verf.f32 %v1236_v45  ;;  %v1481_v53 = vpack.c.bf16 %v1421_v17, %v1419_v52  ;;  %v1238_v0 = vmul.f32 0.70710677, %v1037_v43  ;;  %v1173_v39 = vmul.f32 0.5, %v1035_v49 }
 0x301   : > { %v2393_v63 = vpop.eup %2392  ;;  %v1482_v51 = vpack.c.bf16 %v1422_v54, %v1420_v32  ;;  %2404 = verf.f32 %v1237_v11  ;;  %v1174_v62 = vmul.f32 0.5, %v1037_v43 }
 0x302   : > { %v2395_v30 = vpop.eup %2394  ;;  %v1359_v1 = vadd.f32 1.0, %v2393_v63  ;;  %v1040_v6 = vpop.f32.mrb[16].mxu0  ;;  %2406 = verf.f32 %v1238_v0 }
 0x303   : > { %v2397_v56 = vpop.eup %2396  ;;  %v1360_v59 = vadd.f32 1.0, %v2395_v30  ;;  %v3550_v3 = vadd.f32 %v1040_v6, %v3511_v36  ;;  %v1042_v35 = vpop.f32.mrb[17].mxu0  ;;  %1686 = vmatprep.mubr.bf16.mxu1 %v1482_v51 }
 0x304   : > { %v2399_v61 = vpop.eup %2398  ;;  %v1361_v14 = vadd.f32 1.0, %v2397_v56  ;;  %v3555_v24 = vadd.f32 %v1042_v35, %v3513_v58  ;;  %v1044_v18 = vpop.f32.mrb[18].mxu0  ;;  %1687 = vmatmul.mubr.bf16.gmra.mrb[4].mxu1 %v1481_v53  ;;  %v1423_v25 = vmul.f32 %v1359_v1, %v1167_v4 }
 0x305   : > { %v1362_v8 = vadd.f32 1.0, %v2399_v61  ;;  %v1239_v22 = vmul.f32 0.70710677, %v3550_v3  ;;  %v1046_v41 = vpop.f32.mrb[19].mxu0  ;;  %v1045_v7 = vadd.f32 %v1044_v18, %v3511_v36  ;;  %v1424_v28 = vmul.f32 %v1360_v59, %v1168_v33 }
 0x306   : > { %v1425_v16 = vmul.f32 %v1361_v14, %v1169_v13  ;;  %v1240_v48 = vmul.f32 0.70710677, %v3555_v24  ;;  %v1047_v5 = vadd.f32 %v1046_v41, %v3513_v58  ;;  %v1175_v59 = vmul.f32 0.5, %v3550_v3 }
 0x307   : > { %v1426_v34 = vmul.f32 %v1362_v8, %v1170_v12  ;;  %2408 = verf.f32 %v1239_v22  ;;  %v1241_v23 = vmul.f32 0.70710677, %v1045_v7  ;;  %v1176_v14 = vmul.f32 0.5, %v3555_v24 }
 0x308   : > { %2410 = verf.f32 %v1240_v48  ;;  %v1483_v15 = vpack.c.bf16 %v1425_v16, %v1423_v25  ;;  %v1242_v46 = vmul.f32 0.70710677, %v1047_v5  ;;  %v1177_v18 = vmul.f32 0.5, %v1045_v7 }
 0x309   : > { %v2401_v2 = vpop.eup %2400  ;;  %v1484_v40 = vpack.c.bf16 %v1426_v34, %v1424_v28  ;;  %2412 = verf.f32 %v1241_v23  ;;  %v1178_v22 = vmul.f32 0.5, %v1047_v5 }
 0x30a   : > { %v2403_v47 = vpop.eup %2402  ;;  %v1050_v55 = vpop.f32.mrb[20].mxu0  ;;  %v1363_v20 = vadd.f32 1.0, %v2401_v2  ;;  %2414 = verf.f32 %v1242_v46 }
 0x30b   : > { %v3564_v38 = vadd.f32 %v1050_v55, %v3511_v36  ;;  %v1052_v9 = vpop.f32.mrb[21].mxu0  ;;  %1694 = vmatprep.mubr.bf16.mxu1 %v1484_v40  ;;  %v2405_v57 = vpop.eup %2404  ;;  %v1364_v50 = vadd.f32 1.0, %v2403_v47 }
 0x30c   : > { %v3568_v29 = vadd.f32 %v1052_v9, %v3513_v58  ;;  %v1054_v60 = vpop.f32.mrb[22].mxu0  ;;  %v2407_v26 = vpop.eup %2406  ;;  %v1365_v44 = vadd.f32 1.0, %v2405_v57  ;;  %1695 = vmatmul.mubr.bf16.gmra.mrb[8].mxu1 %v1483_v15  ;;  %v1427_v17 = vmul.f32 %v1363_v20, %v1171_v42 }
 0x30d   : > { %v1243_v21 = vmul.f32 0.70710677, %v3564_v38  ;;  %v1056_v19 = vpop.f32.mrb[23].mxu0  ;;  %v1366_v10 = vadd.f32 1.0, %v2407_v26  ;;  %v3574_v37 = vadd.f32 %v1054_v60, %v3511_v36  ;;  %v1428_v27 = vmul.f32 %v1364_v50, %v1172_v31 }
 0x30e   : > { %v1244_v52 = vmul.f32 0.70710677, %v3568_v29  ;;  %v1429_v45 = vmul.f32 %v1365_v44, %v1173_v39  ;;  %v3577_v32 = vadd.f32 %v1056_v19, %v3513_v58  ;;  %v1179_v57 = vmul.f32 0.5, %v3564_v38 }
 0x30f   : > { %2416 = verf.f32 %v1243_v21  ;;  %v1430_v49 = vmul.f32 %v1366_v10, %v1174_v62  ;;  %v1245_v54 = vmul.f32 0.70710677, %v3574_v37  ;;  %v1180_v31 = vmul.f32 0.5, %v3568_v29 }
 0x310   : > { %2418 = verf.f32 %v1244_v52  ;;  %v1246_v43 = vmul.f32 0.70710677, %v3577_v32  ;;  %v1485_v53 = vpack.c.bf16 %v1429_v45, %v1427_v17  ;;  %v1181_v39 = vmul.f32 0.5, %v3574_v37 }
 0x311   : > { %v2409_v11 = vpop.eup %2408  ;;  %2420 = verf.f32 %v1245_v54  ;;  %v1486_v51 = vpack.c.bf16 %v1430_v49, %v1428_v27  ;;  %v1182_v62 = vmul.f32 0.5, %v3577_v32 }
 0x312   : > { %v2411_v63 = vpop.eup %2410  ;;  %v1060_v0 = vpop.f32.mrb[24].mxu0  ;;  %v1367_v30 = vadd.f32 1.0, %v2409_v11  ;;  %2422 = verf.f32 %v1246_v43 }
 0x313   : > { %v3582_v1 = vadd.f32 %v1060_v0, %v3511_v36  ;;  %v1062_v6 = vpop.f32.mrb[25].mxu0  ;;  %v2413_v56 = vpop.eup %2412  ;;  %v1368_v35 = vadd.f32 1.0, %v2411_v63  ;;  %1702 = vmatprep.mubr.bf16.mxu1 %v1486_v51 }
 0x314   : > { %v3586_v61 = vadd.f32 %v1062_v6, %v3513_v58  ;;  %v1064_v4 = vpop.f32.mrb[26].mxu0  ;;  %v2415_v13 = vpop.eup %2414  ;;  %v1369_v33 = vadd.f32 1.0, %v2413_v56  ;;  %1703 = vmatmul.mubr.bf16.gmra.mrb[12].mxu1 %v1485_v53  ;;  %v1431_v16 = vmul.f32 %v1367_v30, %v1175_v59 }
 0x315   : > { %v1247_v12 = vmul.f32 0.70710677, %v3582_v1  ;;  %v1066_v8 = vpop.f32.mrb[27].mxu0  ;;  %v1370_v41 = vadd.f32 1.0, %v2415_v13  ;;  %v3592_v3 = vadd.f32 %v1064_v4, %v3511_v36  ;;  %v1432_v24 = vmul.f32 %v1368_v35, %v1176_v14 }
 0x316   : > { %v1248_v25 = vmul.f32 0.70710677, %v3586_v61  ;;  %v1433_v48 = vmul.f32 %v1369_v33, %v1177_v18  ;;  %v3595_v28 = vadd.f32 %v1066_v8, %v3513_v58  ;;  %v1183_v56 = vmul.f32 0.5, %v3582_v1 }
 0x317   : > { %2424 = verf.f32 %v1247_v12  ;;  %v1434_v7 = vmul.f32 %v1370_v41, %v1178_v22  ;;  %v1249_v34 = vmul.f32 0.70710677, %v3592_v3  ;;  %v1184_v14 = vmul.f32 0.5, %v3586_v61 }
 0x318   : > { %2426 = verf.f32 %v1248_v25  ;;  %v1250_v5 = vmul.f32 0.70710677, %v3595_v28  ;;  %v1487_v15 = vpack.c.bf16 %v1433_v48, %v1431_v16  ;;  %v1185_v18 = vmul.f32 0.5, %v3592_v3 }
 0x319   : > { %v2417_v23 = vpop.eup %2416  ;;  %2428 = verf.f32 %v1249_v34  ;;  %v1488_v40 = vpack.c.bf16 %v1434_v7, %v1432_v24  ;;  %v1186_v22 = vmul.f32 0.5, %v3595_v28 }
 0x31a   : > { %v2419_v2 = vpop.eup %2418  ;;  %v1070_v46 = vpop.f32.mrb[28].mxu0  ;;  %v1371_v47 = vadd.f32 1.0, %v2417_v23  ;;  %2430 = verf.f32 %v1250_v5 }
 0x31b   : > { %v3600_v55 = vadd.f32 %v1070_v46, %v3511_v36  ;;  %v1072_v20 = vpop.f32.mrb[29].mxu0  ;;  %v2421_v9 = vpop.eup %2420  ;;  %v1372_v42 = vadd.f32 1.0, %v2419_v2  ;;  %1710 = vmatprep.mubr.bf16.mxu1 %v1488_v40 }
 0x31c   : > { %v3604_v50 = vadd.f32 %v1072_v20, %v3513_v58  ;;  %v1074_v60 = vpop.f32.mrb[30].mxu0  ;;  %v2423_v26 = vpop.eup %2422  ;;  %v1373_v44 = vadd.f32 1.0, %v2421_v9  ;;  %1711 = vmatmul.mubr.bf16.gmra.mrb[16].mxu1 %v1487_v15  ;;  %v1435_v17 = vmul.f32 %v1371_v47, %v1179_v57 }
 0x31d   : > { %v1251_v21 = vmul.f32 0.70710677, %v3600_v55  ;;  %v1076_v19 = vpop.f32.mrb[31].mxu0  ;;  %v1374_v10 = vadd.f32 1.0, %v2423_v26  ;;  %v3612_v52 = vadd.f32 %v1074_v60, %v3511_v36  ;;  %v1436_v37 = vmul.f32 %v1372_v42, %v1180_v31 }
 0x31e   : > { %v1252_v38 = vmul.f32 0.70710677, %v3604_v50  ;;  %v1437_v45 = vmul.f32 %v1373_v44, %v1181_v39  ;;  %v3615_v29 = vadd.f32 %v1076_v19, %v3513_v58  ;;  %v1187_v9 = vmul.f32 0.5, %v3600_v55 }
 0x31f   : > { %2432 = verf.f32 %v1251_v21  ;;  %v1438_v27 = vmul.f32 %v1374_v10, %v1182_v62  ;;  %v1253_v49 = vmul.f32 0.70710677, %v3612_v52  ;;  %v1188_v31 = vmul.f32 0.5, %v3604_v50 }
 0x320   : > { %2434 = verf.f32 %v1252_v38  ;;  %v1254_v32 = vmul.f32 0.70710677, %v3615_v29  ;;  %v1489_v11 = vpack.c.bf16 %v1437_v45, %v1435_v17  ;;  %v1189_v39 = vmul.f32 0.5, %v3612_v52 }
 0x321   : > { %v2425_v54 = vpop.eup %2424  ;;  %2436 = verf.f32 %v1253_v49  ;;  %v1490_v63 = vpack.c.bf16 %v1438_v27, %v1436_v37  ;;  %v1190_v62 = vmul.f32 0.5, %v3615_v29 }
 0x322   : > { %v2427_v43 = vpop.eup %2426  ;;  %v1080_v53 = vpop.f32.mrb[32].mxu0  ;;  %v1375_v0 = vadd.f32 1.0, %v2425_v54  ;;  %2438 = verf.f32 %v1254_v32 }
 0x323   : > { %v3620_v51 = vadd.f32 %v1080_v53, %v3511_v36  ;;  %v1082_v30 = vpop.f32.mrb[33].mxu0  ;;  %v2429_v6 = vpop.eup %2428  ;;  %v1376_v59 = vadd.f32 1.0, %v2427_v43  ;;  %1718 = vmatprep.mubr.bf16.mxu1 %v1490_v63 }
 0x324   : > { %v3624_v35 = vadd.f32 %v1082_v30, %v3513_v58  ;;  %v1084_v4 = vpop.f32.mrb[34].mxu0  ;;  %v2431_v13 = vpop.eup %2430  ;;  %v1377_v33 = vadd.f32 1.0, %v2429_v6  ;;  %1719 = vmatmul.mubr.bf16.gmra.mrb[20].mxu1 %v1489_v11  ;;  %v1439_v16 = vmul.f32 %v1375_v0, %v1183_v56 }
 0x325   : > { %v1255_v12 = vmul.f32 0.70710677, %v3620_v51  ;;  %v1086_v8 = vpop.f32.mrb[35].mxu0  ;;  %v1378_v41 = vadd.f32 1.0, %v2431_v13  ;;  %v1085_v25 = vadd.f32 %v1084_v4, %v3511_v36  ;;  %v1440_v61 = vmul.f32 %v1376_v59, %v1184_v14 }
 0x326   : > { %v1256_v1 = vmul.f32 0.70710677, %v3624_v35  ;;  %v1441_v48 = vmul.f32 %v1377_v33, %v1185_v18  ;;  %v1087_v24 = vadd.f32 %v1086_v8, %v3513_v58  ;;  %v1191_v30 = vmul.f32 0.5, %v3620_v51 }
 0x327   : > { %2440 = verf.f32 %v1255_v12  ;;  %v1442_v7 = vmul.f32 %v1378_v41, %v1186_v22  ;;  %v1257_v3 = vmul.f32 0.70710677, %v1085_v25  ;;  %v1193_v6 = vmul.f32 0.5, %v1085_v25 }
 0x328   : > { %2442 = verf.f32 %v1256_v1  ;;  %v1258_v23 = vmul.f32 0.70710677, %v1087_v24  ;;  %v1491_v5 = vpack.c.bf16 %v1441_v48, %v1439_v16  ;;  %v1192_v59 = vmul.f32 0.5, %v3624_v35 }
 0x329   : > { %v2433_v34 = vpop.eup %2432  ;;  %2444 = verf.f32 %v1257_v3  ;;  %v1492_v2 = vpack.c.bf16 %v1442_v7, %v1440_v61  ;;  %v1194_v4 = vmul.f32 0.5, %v1087_v24 }
 0x32a   : > { %v2435_v15 = vpop.eup %2434  ;;  %v1090_v28 = vpop.f32.mrb[36].mxu0  ;;  %v1379_v46 = vadd.f32 1.0, %v2433_v34  ;;  %2446 = verf.f32 %v1258_v23 }
 0x32b   : > { %v1091_v40 = vadd.f32 %v1090_v28, %v3511_v36  ;;  %v1092_v47 = vpop.f32.mrb[37].mxu0  ;;  %v2437_v20 = vpop.eup %2436  ;;  %v1380_v57 = vadd.f32 1.0, %v2435_v15  ;;  %1726 = vmatprep.mubr.bf16.mxu1 %v1492_v2 }
 0x32c   : > { %v1093_v42 = vadd.f32 %v1092_v47, %v3513_v58  ;;  %v1094_v60 = vpop.f32.mrb[38].mxu0  ;;  %v2439_v26 = vpop.eup %2438  ;;  %v1381_v44 = vadd.f32 1.0, %v2437_v20  ;;  %1727 = vmatmul.mubr.bf16.gmra.mrb[24].mxu1 %v1491_v5  ;;  %v1443_v17 = vmul.f32 %v1379_v46, %v1187_v9 }
 0x32d   : > { %v1259_v21 = vmul.f32 0.70710677, %v1091_v40  ;;  %v1096_v19 = vpop.f32.mrb[39].mxu0  ;;  %v1382_v10 = vadd.f32 1.0, %v2439_v26  ;;  %v1095_v55 = vadd.f32 %v1094_v60, %v3511_v36  ;;  %v1444_v27 = vmul.f32 %v1380_v57, %v1188_v31 }
 0x32e   : > { %v1260_v38 = vmul.f32 0.70710677, %v1093_v42  ;;  %v1445_v45 = vmul.f32 %v1381_v44, %v1189_v39  ;;  %v1097_v37 = vadd.f32 %v1096_v19, %v3513_v58  ;;  %v1195_v25 = vmul.f32 0.5, %v1091_v40 }
 0x32f   : > { %2448 = verf.f32 %v1259_v21  ;;  %v1446_v49 = vmul.f32 %v1382_v10, %v1190_v62  ;;  %v1261_v50 = vmul.f32 0.70710677, %v1095_v55  ;;  %v1197_v7 = vmul.f32 0.5, %v1095_v55 }
 0x330   : > { %2450 = verf.f32 %v1260_v38  ;;  %v1262_v54 = vmul.f32 0.70710677, %v1097_v37  ;;  %v1493_v32 = vpack.c.bf16 %v1445_v45, %v1443_v17  ;;  %v1196_v35 = vmul.f32 0.5, %v1093_v42 }
 0x331   : > { %v2441_v52 = vpop.eup %2440  ;;  %2452 = verf.f32 %v1261_v50  ;;  %v1494_v43 = vpack.c.bf16 %v1446_v49, %v1444_v27  ;;  %v1198_v24 = vmul.f32 0.5, %v1097_v37 }
 0x332   : > { %v2443_v11 = vpop.eup %2442  ;;  %v1383_v29 = vadd.f32 1.0, %v2441_v52  ;;  %2454 = verf.f32 %v1262_v54 }
 0x333   : > { %v2445_v53 = vpop.eup %2444  ;;  %v1384_v63 = vadd.f32 1.0, %v2443_v11  ;;  %1734 = vmatprep.mubr.bf16.mxu1 %v1494_v43 }
 0x334   : > { %v2447_v0 = vpop.eup %2446  ;;  %v1385_v56 = vadd.f32 1.0, %v2445_v53  ;;  %1735 = vmatmul.mubr.bf16.gmra.mrb[28].mxu1 %v1493_v32  ;;  %v1447_v14 = vmul.f32 %v1383_v29, %v1191_v30 }
 0x335   : > { %v1386_v13 = vadd.f32 1.0, %v2447_v0  ;;  %v1448_v33 = vmul.f32 %v1384_v63, %v1192_v59 }
 0x336   : > { %v1449_v18 = vmul.f32 %v1385_v56, %v1193_v6 }
 0x337   : > { %v1450_v12 = vmul.f32 %v1386_v13, %v1194_v4 }
 0x338   : > { %v1495_v22 = vpack.c.bf16 %v1449_v18, %v1447_v14 }
 0x339   : > { %v2449_v8 = vpop.eup %2448  ;;  %v1496_v1 = vpack.c.bf16 %v1450_v12, %v1448_v33 }
 0x33a   : > { %v2451_v41 = vpop.eup %2450  ;;  %v1387_v16 = vadd.f32 1.0, %v2449_v8 }
 0x33b   : > { %v2453_v48 = vpop.eup %2452  ;;  %v1388_v61 = vadd.f32 1.0, %v2451_v41  ;;  %1742 = vmatprep.mubr.bf16.mxu1 %v1496_v1 }
 0x33c   : > { %v2455_v51 = vpop.eup %2454  ;;  %v1389_v3 = vadd.f32 1.0, %v2453_v48  ;;  %1743 = vmatmul.mubr.bf16.gmra.mrb[32].mxu1 %v1495_v22  ;;  %v1451_v23 = vmul.f32 %v1387_v16, %v1195_v25 }
 0x33d   : > { %v1390_v34 = vadd.f32 1.0, %v2455_v51  ;;  %v1452_v15 = vmul.f32 %v1388_v61, %v1196_v35 }
 0x33e   : > { %v1453_v5 = vmul.f32 %v1389_v3, %v1197_v7 }
 0x33f   : > { %v1454_v28 = vmul.f32 %v1390_v34, %v1198_v24 }
 0x340   : > { %v1497_v2 = vpack.c.bf16 %v1453_v5, %v1451_v23 }
 0x341   : > { %v1498_v46 = vpack.c.bf16 %v1454_v28, %v1452_v15 }
 0x343   : > { %1750 = vmatprep.mubr.bf16.mxu1 %v1498_v46 }
 0x344   : > { %1751 = vmatmul.mubr.bf16.gmra.mrb[36].mxu1 %v1497_v2 }
 0x37a   : > { %v1100_v47 = vpop.f32.mrb[40].mxu0 }
 0x37b   : > { %v1101_v20 = vadd.f32 %v1100_v47, %v3511_v36  ;;  %v1102_v9 = vpop.f32.mrb[41].mxu0 }
 0x37c   : > { %v1103_v40 = vadd.f32 %v1102_v9, %v3513_v58  ;;  %v1104_v57 = vpop.f32.mrb[42].mxu0 }
 0x37d   : > { %v1263_v60 = vmul.f32 0.70710677, %v1101_v20  ;;  %v1105_v42 = vadd.f32 %v1104_v57, %v3511_v36  ;;  %v1106_v26 = vpop.f32.mrb[43].mxu0  ;;  %v1199_v6 = vmul.f32 0.5, %v1101_v20 }
 0x37e   : > { %v1264_v31 = vmul.f32 0.70710677, %v1103_v40  ;;  %v1107_v39 = vadd.f32 %v1106_v26, %v3513_v58  ;;  %v1200_v14 = vmul.f32 0.5, %v1103_v40 }
 0x37f   : > { %2456 = verf.f32 %v1263_v60  ;;  %v1265_v44 = vmul.f32 0.70710677, %v1105_v42  ;;  %v1201_v56 = vmul.f32 0.5, %v1105_v42 }
 0x380   : > { %2458 = verf.f32 %v1264_v31  ;;  %v1266_v21 = vmul.f32 0.70710677, %v1107_v39  ;;  %v1202_v18 = vmul.f32 0.5, %v1107_v39 }
 0x381   : > { %2460 = verf.f32 %v1265_v44 }
 0x382   : > { %2462 = verf.f32 %v1266_v21  ;;  %v1110_v19 = vpop.f32.mrb[44].mxu0 }
 0x383   : > { %v1111_v62 = vadd.f32 %v1110_v19, %v3511_v36  ;;  %v1112_v10 = vpop.f32.mrb[45].mxu0 }
 0x384   : > { %v1113_v38 = vadd.f32 %v1112_v10, %v3513_v58  ;;  %v1114_v55 = vpop.f32.mrb[46].mxu0 }
 0x385   : > { %v1267_v17 = vmul.f32 0.70710677, %v1111_v62  ;;  %v1115_v45 = vadd.f32 %v1114_v55, %v3511_v36  ;;  %v1116_v37 = vpop.f32.mrb[47].mxu0  ;;  %v1203_v20 = vmul.f32 0.5, %v1111_v62 }
 0x386   : > { %v1268_v27 = vmul.f32 0.70710677, %v1113_v38  ;;  %v1117_v49 = vadd.f32 %v1116_v37, %v3513_v58  ;;  %v1204_v42 = vmul.f32 0.5, %v1113_v38 }
 0x387   : > { %2464 = verf.f32 %v1267_v17  ;;  %v1269_v50 = vmul.f32 0.70710677, %v1115_v45  ;;  %v1205_v9 = vmul.f32 0.5, %v1115_v45 }
 0x388   : > { %2466 = verf.f32 %v1268_v27  ;;  %v1270_v52 = vmul.f32 0.70710677, %v1117_v49  ;;  %v1206_v26 = vmul.f32 0.5, %v1117_v49 }
 0x389   : > { %v2457_v54 = vpop.eup %2456  ;;  %2468 = verf.f32 %v1269_v50 }
 0x38a   : > { %v2459_v32 = vpop.eup %2458  ;;  %v1391_v11 = vadd.f32 1.0, %v2457_v54  ;;  %2470 = verf.f32 %v1270_v52  ;;  %v1120_v43 = vpop.f32.mrb[48].mxu0 }
 0x38b   : > { %v2461_v29 = vpop.eup %2460  ;;  %v1392_v53 = vadd.f32 1.0, %v2459_v32  ;;  %v3652_v63 = vadd.f32 %v1120_v43, %v3511_v36  ;;  %v1122_v0 = vpop.f32.mrb[49].mxu0 }
 0x38c   : > { %v2463_v30 = vpop.eup %2462  ;;  %v1393_v59 = vadd.f32 1.0, %v2461_v29  ;;  %v3655_v4 = vadd.f32 %v1122_v0, %v3513_v58  ;;  %v1124_v13 = vpop.f32.mrb[50].mxu0  ;;  %v1455_v22 = vmul.f32 %v1391_v11, %v1199_v6 }
 0x38d   : > { %v1394_v33 = vadd.f32 1.0, %v2463_v30  ;;  %v1271_v12 = vmul.f32 0.70710677, %v3652_v63  ;;  %v1126_v8 = vpop.f32.mrb[51].mxu0  ;;  %v1125_v16 = vadd.f32 %v1124_v13, %v3511_v36  ;;  %v1456_v48 = vmul.f32 %v1392_v53, %v1200_v14 }
 0x38e   : > { %v1457_v41 = vmul.f32 %v1393_v59, %v1201_v56  ;;  %v1272_v1 = vmul.f32 0.70710677, %v3655_v4  ;;  %v1127_v51 = vadd.f32 %v1126_v8, %v3513_v58  ;;  %v1207_v53 = vmul.f32 0.5, %v3652_v63 }
 0x38f   : > { %v1458_v61 = vmul.f32 %v1394_v33, %v1202_v18  ;;  %2472 = verf.f32 %v1271_v12  ;;  %v1273_v25 = vmul.f32 0.70710677, %v1125_v16  ;;  %v1208_v59 = vmul.f32 0.5, %v3655_v4 }
 0x390   : > { %2474 = verf.f32 %v1272_v1  ;;  %v1499_v7 = vpack.c.bf16 %v1457_v41, %v1455_v22  ;;  %v1274_v35 = vmul.f32 0.70710677, %v1127_v51  ;;  %v1209_v13 = vmul.f32 0.5, %v1125_v16 }
 0x391   : > { %v2465_v3 = vpop.eup %2464  ;;  %v1500_v24 = vpack.c.bf16 %v1458_v61, %v1456_v48  ;;  %2476 = verf.f32 %v1273_v25  ;;  %v1210_v12 = vmul.f32 0.5, %v1127_v51 }
 0x392   : > { %v2467_v34 = vpop.eup %2466  ;;  %v1395_v23 = vadd.f32 1.0, %v2465_v3  ;;  %v1130_v5 = vpop.f32.mrb[52].mxu0  ;;  %2478 = verf.f32 %v1274_v35 }
 0x393   : > { %v2469_v15 = vpop.eup %2468  ;;  %v1396_v28 = vadd.f32 1.0, %v2467_v34  ;;  %v3662_v2 = vadd.f32 %v1130_v5, %v3511_v36  ;;  %v1132_v46 = vpop.f32.mrb[53].mxu0  ;;  %1758 = vmatprep.mubr.bf16.mxu1 %v1500_v24 }
 0x394   : > { %v2471_v47 = vpop.eup %2470  ;;  %v1397_v40 = vadd.f32 1.0, %v2469_v15  ;;  %v3665_v57 = vadd.f32 %v1132_v46, %v3513_v58  ;;  %v1134_v60 = vpop.f32.mrb[54].mxu0  ;;  %1759 = vmatmul.mubr.bf16.gmra.mrb[40].mxu1 %v1499_v7  ;;  %v1459_v21 = vmul.f32 %v1395_v23, %v1203_v20 }
 0x395   : > { %v1398_v31 = vadd.f32 1.0, %v2471_v47  ;;  %v1275_v39 = vmul.f32 0.70710677, %v3662_v2  ;;  %v1136_v44 = vpop.f32.mrb[55].mxu0  ;;  %v1135_v55 = vadd.f32 %v1134_v60, %v3511_v36  ;;  %v1460_v62 = vmul.f32 %v1396_v28, %v1204_v42 }
 0x396   : > { %v1461_v19 = vmul.f32 %v1397_v40, %v1205_v9  ;;  %v1276_v10 = vmul.f32 0.70710677, %v3665_v57  ;;  %v1137_v45 = vadd.f32 %v1136_v44, %v3513_v58  ;;  %v1211_v28 = vmul.f32 0.5, %v3662_v2 }
 0x397   : > { %v1462_v17 = vmul.f32 %v1398_v31, %v1206_v26  ;;  %2480 = verf.f32 %v1275_v39  ;;  %v1277_v37 = vmul.f32 0.70710677, %v1135_v55  ;;  %v1212_v40 = vmul.f32 0.5, %v3665_v57 }
 0x398   : > { %2482 = verf.f32 %v1276_v10  ;;  %v1501_v27 = vpack.c.bf16 %v1461_v19, %v1459_v21  ;;  %v1278_v49 = vmul.f32 0.70710677, %v1137_v45  ;;  %v1213_v60 = vmul.f32 0.5, %v1135_v55 }
 0x399   : > { %v2473_v38 = vpop.eup %2472  ;;  %v1502_v50 = vpack.c.bf16 %v1462_v17, %v1460_v62  ;;  %2484 = verf.f32 %v1277_v37  ;;  %v1214_v39 = vmul.f32 0.5, %v1137_v45 }
 0x39a   : > { %v2475_v52 = vpop.eup %2474  ;;  %v1140_v54 = vpop.f32.mrb[56].mxu0  ;;  %v1399_v32 = vadd.f32 1.0, %v2473_v38  ;;  %2486 = verf.f32 %v1278_v49 }
 0x39b   : > { %v3672_v11 = vadd.f32 %v1140_v54, %v3511_v36  ;;  %v1142_v43 = vpop.f32.mrb[57].mxu0  ;;  %1766 = vmatprep.mubr.bf16.mxu1 %v1502_v50  ;;  %v2477_v29 = vpop.eup %2476  ;;  %v1400_v0 = vadd.f32 1.0, %v2475_v52 }
 0x39c   : > { %v3676_v30 = vadd.f32 %v1142_v43, %v3513_v58  ;;  %v1144_v6 = vpop.f32.mrb[58].mxu0  ;;  %1767 = vmatmul.mubr.bf16.gmra.mrb[44].mxu1 %v1501_v27  ;;  %v2479_v56 = vpop.eup %2478  ;;  %v1401_v14 = vadd.f32 1.0, %v2477_v29  ;;  %v1463_v41 = vmul.f32 %v1399_v32, %v1207_v53 }
 0x39d   : > { %v1279_v18 = vmul.f32 0.70710677, %v3672_v11  ;;  %v1146_v33 = vpop.f32.mrb[59].mxu0  ;;  %v1402_v8 = vadd.f32 1.0, %v2479_v56  ;;  %v1145_v63 = vadd.f32 %v1144_v6, %v3511_v36  ;;  %v1464_v61 = vmul.f32 %v1400_v0, %v1208_v59 }
 0x39e   : > { %v1280_v22 = vmul.f32 0.70710677, %v3676_v30  ;;  %v1465_v1 = vmul.f32 %v1401_v14, %v1209_v13  ;;  %v1147_v48 = vadd.f32 %v1146_v33, %v3513_v58  ;;  %v1215_v32 = vmul.f32 0.5, %v3672_v11 }
 0x39f   : > { %2488 = verf.f32 %v1279_v18  ;;  %v1466_v25 = vmul.f32 %v1402_v8, %v1210_v12  ;;  %v1281_v4 = vmul.f32 0.70710677, %v1145_v63  ;;  %v1217_v43 = vmul.f32 0.5, %v1145_v63 }
 0x3a0   : > { %2490 = verf.f32 %v1280_v22  ;;  %v1282_v7 = vmul.f32 0.70710677, %v1147_v48  ;;  %v1503_v3 = vpack.c.bf16 %v1465_v1, %v1463_v41  ;;  %v1216_v29 = vmul.f32 0.5, %v3676_v30 }
 0x3a1   : > { %v2481_v16 = vpop.eup %2480  ;;  %2492 = verf.f32 %v1281_v4  ;;  %v1504_v24 = vpack.c.bf16 %v1466_v25, %v1464_v61  ;;  %v1218_v53 = vmul.f32 0.5, %v1147_v48 }
 0x3a2   : > { %v2483_v35 = vpop.eup %2482  ;;  %v1150_v51 = vpop.f32.mrb[60].mxu0  ;;  %v1403_v34 = vadd.f32 1.0, %v2481_v16  ;;  %2494 = verf.f32 %v1282_v7 }
 0x3a3   : > { %v1151_v23 = vadd.f32 %v1150_v51, %v3511_v36  ;;  %v1152_v5 = vpop.f32.mrb[61].mxu0  ;;  %v2485_v15 = vpop.eup %2484  ;;  %v1404_v46 = vadd.f32 1.0, %v2483_v35  ;;  %1774 = vmatprep.mubr.bf16.mxu1 %v1504_v24 }
 0x3a4   : > { %v1153_v47 = vadd.f32 %v1152_v5, %v3513_v58  ;;  %v1154_v20 = vpop.f32.mrb[62].mxu0  ;;  %v2487_v9 = vpop.eup %2486  ;;  %v1405_v42 = vadd.f32 1.0, %v2485_v15  ;;  %1775 = vmatmul.mubr.bf16.gmra.mrb[48].mxu1 %v1503_v3  ;;  %v1467_v10 = vmul.f32 %v1403_v34, %v1211_v28  ;;  %v3691_v34 = vld [vmem:[#allocation13] ss:$0 sm:$0xff] }
 0x3a5   : > { %v1283_v26 = vmul.f32 0.70710677, %v1151_v23  ;;  %v1156_v31 = vpop.f32.mrb[63].mxu0  ;;  %v1406_v44 = vadd.f32 1.0, %v2487_v9  ;;  %v1155_v19 = vadd.f32 %v1154_v20, %v3511_v36  ;;  %v1468_v17 = vmul.f32 %v1404_v46, %v1212_v40 }
 0x3a6   : > { %v1284_v21 = vmul.f32 0.70710677, %v1153_v47  ;;  %v1469_v2 = vmul.f32 %v1405_v42, %v1213_v60  ;;  %v1157_v62 = vadd.f32 %v1156_v31, %v3513_v58  ;;  %v1219_v63 = vmul.f32 0.5, %v1151_v23 }
 0x3a7   : > { %2496 = verf.f32 %v1283_v26  ;;  %v1470_v37 = vmul.f32 %v1406_v44, %v1214_v39  ;;  %v1285_v27 = vmul.f32 0.70710677, %v1155_v19  ;;  %v1221_v1 = vmul.f32 0.5, %v1155_v19 }
 0x3a8   : > { %2498 = verf.f32 %v1284_v21  ;;  %v1286_v55 = vmul.f32 0.70710677, %v1157_v62  ;;  %v1505_v38 = vpack.c.bf16 %v1469_v2, %v1467_v10  ;;  %v1220_v30 = vmul.f32 0.5, %v1153_v47 }
 0x3a9   : > { %v2489_v57 = vpop.eup %2488  ;;  %2500 = verf.f32 %v1285_v27  ;;  %v1506_v50 = vpack.c.bf16 %v1470_v37, %v1468_v17  ;;  %v1222_v48 = vmul.f32 0.5, %v1157_v62 }
 0x3aa   : > { %v2491_v49 = vpop.eup %2490  ;;  %v1407_v45 = vadd.f32 1.0, %v2489_v57  ;;  %2502 = verf.f32 %v1286_v55 }
 0x3ab   : > { %v2493_v52 = vpop.eup %2492  ;;  %v1408_v54 = vadd.f32 1.0, %v2491_v49  ;;  %1782 = vmatprep.mubr.bf16.mxu1 %v1506_v50 }
 0x3ac   : > { %v2495_v36 = vpop.eup %2494  ;;  %v1409_v58 = vadd.f32 1.0, %v2493_v52  ;;  %1783 = vmatmul.mubr.bf16.gmra.mrb[52].mxu1 %v1505_v38  ;;  %v1471_v6 = vmul.f32 %v1407_v45, %v1215_v32 }
 0x3ad   : > { %v1410_v0 = vadd.f32 1.0, %v2495_v36  ;;  %v1472_v59 = vmul.f32 %v1408_v54, %v1216_v29 }
 0x3ae   : > { %v1473_v56 = vmul.f32 %v1409_v58, %v1217_v43 }
 0x3af   : > { %v1474_v13 = vmul.f32 %v1410_v0, %v1218_v53 }
 0x3b0   : > { %v1507_v18 = vpack.c.bf16 %v1473_v56, %v1471_v6 }
 0x3b1   : > { %v2497_v14 = vpop.eup %2496  ;;  %v1508_v12 = vpack.c.bf16 %v1474_v13, %v1472_v59 }
 0x3b2   : > { %v2499_v33 = vpop.eup %2498  ;;  %v1411_v8 = vadd.f32 1.0, %v2497_v14 }
 0x3b3   : > { %v2501_v22 = vpop.eup %2500  ;;  %v1412_v41 = vadd.f32 1.0, %v2499_v33  ;;  %1790 = vmatprep.mubr.bf16.mxu1 %v1508_v12 }
 0x3b4   : > { %v2503_v11 = vpop.eup %2502  ;;  %v1413_v61 = vadd.f32 1.0, %v2501_v22  ;;  %1791 = vmatmul.mubr.bf16.gmra.mrb[56].mxu1 %v1507_v18  ;;  %v1475_v4 = vmul.f32 %v1411_v8, %v1219_v63 }
 0x3b5   : > { %v1414_v25 = vadd.f32 1.0, %v2503_v11  ;;  %v1476_v7 = vmul.f32 %v1412_v41, %v1220_v30 }
 0x3b6   : > { %v1477_v16 = vmul.f32 %v1413_v61, %v1221_v1 }
 0x3b7   : > { %v1478_v3 = vmul.f32 %v1414_v25, %v1222_v48 }
 0x3b8   : > { %v1509_v35 = vpack.c.bf16 %v1477_v16, %v1475_v4 }
 0x3b9   : > { %v1510_v51 = vpack.c.bf16 %v1478_v3, %v1476_v7 }
 0x3bb   : > { %1798 = vmatprep.mubr.bf16.mxu1 %v1510_v51 }
 0x3bc   : > { %1799 = vmatmul.mubr.bf16.gmra.mrb[60].mxu1 %v1509_v35 }
 0x3cf   : > { %v2062_v24 = vpop.f32.mrb[0].mxu1 }
 0x3d0   : > { %v2063_v5 = vpop.f32.mrb[1].mxu1 }
 0x3d1   : > { %v2064_v23 = vadd.f32 %v2063_v5, %v2062_v24  ;;  %v2065_v15 = vpop.f32.mrb[2].mxu1 }
 0x3d2   : > { %v2066_v28 = vpop.f32.mrb[3].mxu1 }
 0x3d3   : > { %v1681_v46 = vadd.f32 %v2064_v23, %v3691_v34  ;;  %v2067_v47 = vadd.f32 %v2066_v28, %v2065_v15 }
 0x3d5   : > { %1807 = vst [vmem:[%s3696_s8] sm:$0xff] %v1681_v46  ;;  %v1684_v20 = vadd.f32 %v2067_v47, %v3691_v34 }
 0x3d7   : > { %1808 = vst [vmem:[%s3696_s8 + $0x8] sm:$0xff] %v1684_v20  ;;  %v2068_v9 = vpop.f32.mrb[4].mxu1 }
 0x3d8   : > { %v2069_v40 = vpop.f32.mrb[5].mxu1 }
 0x3d9   : > { %v2070_v60 = vadd.f32 %v2069_v40, %v2068_v9  ;;  %v2071_v42 = vpop.f32.mrb[6].mxu1 }
 0x3da   : > { %v2072_v26 = vpop.f32.mrb[7].mxu1 }
 0x3db   : > { %v1689_v31 = vadd.f32 %v2070_v60, %v3691_v34  ;;  %v2073_v39 = vadd.f32 %v2072_v26, %v2071_v42 }
 0x3dd   : > { %1809 = vst [vmem:[%s3696_s8 + $0x10] sm:$0xff] %v1689_v31  ;;  %v1692_v44 = vadd.f32 %v2073_v39, %v3691_v34 }
 0x3df   : > { %1810 = vst [vmem:[%s3696_s8 + $0x18] sm:$0xff] %v1692_v44  ;;  %v2074_v21 = vpop.f32.mrb[8].mxu1 }
 0x3e0   : > { %v2075_v19 = vpop.f32.mrb[9].mxu1 }
 0x3e1   : > { %v2076_v10 = vadd.f32 %v2075_v19, %v2074_v21  ;;  %v2077_v2 = vpop.f32.mrb[10].mxu1 }
 0x3e2   : > { %v2078_v62 = vpop.f32.mrb[11].mxu1 }
 0x3e3   : > { %v1697_v17 = vadd.f32 %v2076_v10, %v3691_v34  ;;  %v2079_v37 = vadd.f32 %v2078_v62, %v2077_v2 }
 0x3e5   : > { %1811 = vst [vmem:[%s3696_s8 + $0x20] sm:$0xff] %v1697_v17  ;;  %v1700_v27 = vadd.f32 %v2079_v37, %v3691_v34 }
 0x3e7   : > { %1812 = vst [vmem:[%s3696_s8 + $0x28] sm:$0xff] %v1700_v27  ;;  %v2080_v57 = vpop.f32.mrb[12].mxu1 }
 0x3e8   : > { %v2081_v55 = vpop.f32.mrb[13].mxu1 }
 0x3e9   : > { %v2082_v38 = vadd.f32 %v2081_v55, %v2080_v57  ;;  %v2083_v49 = vpop.f32.mrb[14].mxu1 }
 0x3ea   : > { %v2084_v50 = vpop.f32.mrb[15].mxu1 }
 0x3eb   : > { %v1705_v45 = vadd.f32 %v2082_v38, %v3691_v34  ;;  %v2085_v52 = vadd.f32 %v2084_v50, %v2083_v49 }
 0x3ed   : > { %1813 = vst [vmem:[%s3696_s8 + $0x30] sm:$0xff] %v1705_v45  ;;  %v1708_v54 = vadd.f32 %v2085_v52, %v3691_v34 }
 0x3ef   : > { %1814 = vst [vmem:[%s3696_s8 + $0x38] sm:$0xff] %v1708_v54  ;;  %v2086_v36 = vpop.f32.mrb[16].mxu1 }
 0x3f0   : > { %v2087_v32 = vpop.f32.mrb[17].mxu1 }
 0x3f1   : > { %v2088_v43 = vadd.f32 %v2087_v32, %v2086_v36  ;;  %v2089_v58 = vpop.f32.mrb[18].mxu1 }
 0x3f2   : > { %v2090_v29 = vpop.f32.mrb[19].mxu1 }
 0x3f3   : > { %v1713_v53 = vadd.f32 %v2088_v43, %v3691_v34  ;;  %v2091_v0 = vadd.f32 %v2090_v29, %v2089_v58 }
 0x3f5   : > { %1815 = vst [vmem:[%s3696_s8 + $0x40] sm:$0xff] %v1713_v53  ;;  %v1716_v6 = vadd.f32 %v2091_v0, %v3691_v34 }
 0x3f7   : > { %1816 = vst [vmem:[%s3696_s8 + $0x48] sm:$0xff] %v1716_v6  ;;  %v2092_v56 = vpop.f32.mrb[20].mxu1 }
 0x3f8   : > { %v2093_v59 = vpop.f32.mrb[21].mxu1 }
 0x3f9   : > { %v2094_v13 = vadd.f32 %v2093_v59, %v2092_v56  ;;  %v2095_v14 = vpop.f32.mrb[22].mxu1 }
 0x3fa   : > { %v2096_v18 = vpop.f32.mrb[23].mxu1 }
 0x3fb   : > { %v1721_v33 = vadd.f32 %v2094_v13, %v3691_v34  ;;  %v2097_v12 = vadd.f32 %v2096_v18, %v2095_v14 }
 0x3fd   : > { %1817 = vst [vmem:[%s3696_s8 + $0x50] sm:$0xff] %v1721_v33  ;;  %v1724_v8 = vadd.f32 %v2097_v12, %v3691_v34 }
 0x3ff   : > { %1818 = vst [vmem:[%s3696_s8 + $0x58] sm:$0xff] %v1724_v8  ;;  %v2098_v22 = vpop.f32.mrb[24].mxu1 }
 0x400   : > { %v2099_v41 = vpop.f32.mrb[25].mxu1 }
 0x401   : > { %v2100_v11 = vadd.f32 %v2099_v41, %v2098_v22  ;;  %v2101_v63 = vpop.f32.mrb[26].mxu1 }
 0x402   : > { %v2102_v1 = vpop.f32.mrb[27].mxu1 }
 0x403   : > { %v1729_v61 = vadd.f32 %v2100_v11, %v3691_v34  ;;  %v2103_v30 = vadd.f32 %v2102_v1, %v2101_v63 }
 0x405   : > { %1819 = vst [vmem:[%s3696_s8 + $0x60] sm:$0xff] %v1729_v61  ;;  %v1732_v48 = vadd.f32 %v2103_v30, %v3691_v34 }
 0x407   : > { %1820 = vst [vmem:[%s3696_s8 + $0x68] sm:$0xff] %v1732_v48  ;;  %v2104_v25 = vpop.f32.mrb[28].mxu1 }
 0x408   : > { %v2105_v4 = vpop.f32.mrb[29].mxu1 }
 0x409   : > { %v2106_v16 = vadd.f32 %v2105_v4, %v2104_v25  ;;  %v2107_v7 = vpop.f32.mrb[30].mxu1 }
 0x40a   : > { %v2108_v3 = vpop.f32.mrb[31].mxu1 }
 0x40b   : > { %v1737_v35 = vadd.f32 %v2106_v16, %v3691_v34  ;;  %v2109_v51 = vadd.f32 %v2108_v3, %v2107_v7 }
 0x40d   : > { %1821 = vst [vmem:[%s3696_s8 + $0x70] sm:$0xff] %v1737_v35  ;;  %v1740_v24 = vadd.f32 %v2109_v51, %v3691_v34 }
 0x40f   : > { %1822 = vst [vmem:[%s3696_s8 + $0x78] sm:$0xff] %v1740_v24  ;;  %v2110_v5 = vpop.f32.mrb[32].mxu1 }
 0x410   : > { %v2111_v23 = vpop.f32.mrb[33].mxu1 }
 0x411   : > { %v2112_v15 = vadd.f32 %v2111_v23, %v2110_v5  ;;  %v2113_v28 = vpop.f32.mrb[34].mxu1 }
 0x412   : > { %v2114_v46 = vpop.f32.mrb[35].mxu1 }
 0x413   : > { %v1745_v47 = vadd.f32 %v2112_v15, %v3691_v34  ;;  %v2115_v20 = vadd.f32 %v2114_v46, %v2113_v28 }
 0x415   : > { %1823 = vst [vmem:[%s3696_s8 + $0x80] sm:$0xff] %v1745_v47  ;;  %v1748_v9 = vadd.f32 %v2115_v20, %v3691_v34 }
 0x417   : > { %1824 = vst [vmem:[%s3696_s8 + $0x88] sm:$0xff] %v1748_v9  ;;  %v2116_v40 = vpop.f32.mrb[36].mxu1 }
 0x418   : > { %v2117_v60 = vpop.f32.mrb[37].mxu1 }
 0x419   : > { %v2118_v42 = vadd.f32 %v2117_v60, %v2116_v40  ;;  %v2119_v26 = vpop.f32.mrb[38].mxu1 }
 0x41a   : > { %v2120_v31 = vpop.f32.mrb[39].mxu1 }
 0x41b   : > { %v1753_v39 = vadd.f32 %v2118_v42, %v3691_v34  ;;  %v2121_v44 = vadd.f32 %v2120_v31, %v2119_v26 }
 0x41d   : > { %1825 = vst [vmem:[%s3696_s8 + $0x90] sm:$0xff] %v1753_v39  ;;  %v1756_v21 = vadd.f32 %v2121_v44, %v3691_v34 }
 0x41f   : > { %1826 = vst [vmem:[%s3696_s8 + $0x98] sm:$0xff] %v1756_v21 }
 0x467   : > { %v2122_v19 = vpop.f32.mrb[40].mxu1 }
 0x468   : > { %v2123_v10 = vpop.f32.mrb[41].mxu1 }
 0x469   : > { %v2124_v2 = vadd.f32 %v2123_v10, %v2122_v19  ;;  %v2125_v62 = vpop.f32.mrb[42].mxu1 }
 0x46a   : > { %v2126_v17 = vpop.f32.mrb[43].mxu1 }
 0x46b   : > { %v1761_v37 = vadd.f32 %v2124_v2, %v3691_v34  ;;  %v2127_v27 = vadd.f32 %v2126_v17, %v2125_v62 }
 0x46d   : > { %1827 = vst [vmem:[%s3696_s8 + $0xa0] sm:$0xff] %v1761_v37  ;;  %v1764_v57 = vadd.f32 %v2127_v27, %v3691_v34 }
 0x46f   : > { %1828 = vst [vmem:[%s3696_s8 + $0xa8] sm:$0xff] %v1764_v57  ;;  %v2128_v55 = vpop.f32.mrb[44].mxu1 }
 0x470   : > { %v2129_v38 = vpop.f32.mrb[45].mxu1 }
 0x471   : > { %v2130_v49 = vadd.f32 %v2129_v38, %v2128_v55  ;;  %v2131_v50 = vpop.f32.mrb[46].mxu1 }
 0x472   : > { %v2132_v45 = vpop.f32.mrb[47].mxu1 }
 0x473   : > { %v1769_v52 = vadd.f32 %v2130_v49, %v3691_v34  ;;  %v2133_v54 = vadd.f32 %v2132_v45, %v2131_v50 }
 0x475   : > { %1829 = vst [vmem:[%s3696_s8 + $0xb0] sm:$0xff] %v1769_v52  ;;  %v1772_v36 = vadd.f32 %v2133_v54, %v3691_v34 }
 0x477   : > { %1830 = vst [vmem:[%s3696_s8 + $0xb8] sm:$0xff] %v1772_v36  ;;  %v2134_v32 = vpop.f32.mrb[48].mxu1 }
 0x478   : > { %v2135_v43 = vpop.f32.mrb[49].mxu1 }
 0x479   : > { %v2136_v58 = vadd.f32 %v2135_v43, %v2134_v32  ;;  %v2137_v29 = vpop.f32.mrb[50].mxu1 }
 0x47a   : > { %v2138_v53 = vpop.f32.mrb[51].mxu1 }
 0x47b   : > { %v1777_v0 = vadd.f32 %v2136_v58, %v3691_v34  ;;  %v2139_v6 = vadd.f32 %v2138_v53, %v2137_v29 }
 0x47d   : > { %1831 = vst [vmem:[%s3696_s8 + $0xc0] sm:$0xff] %v1777_v0  ;;  %v1780_v56 = vadd.f32 %v2139_v6, %v3691_v34 }
 0x47f   : > { %1832 = vst [vmem:[%s3696_s8 + $0xc8] sm:$0xff] %v1780_v56  ;;  %v2140_v59 = vpop.f32.mrb[52].mxu1 }
 0x480   : > { %v2141_v13 = vpop.f32.mrb[53].mxu1 }
 0x481   : > { %v2142_v14 = vadd.f32 %v2141_v13, %v2140_v59  ;;  %v2143_v18 = vpop.f32.mrb[54].mxu1 }
 0x482   : > { %v2144_v33 = vpop.f32.mrb[55].mxu1 }
 0x483   : > { %v1785_v12 = vadd.f32 %v2142_v14, %v3691_v34  ;;  %v2145_v8 = vadd.f32 %v2144_v33, %v2143_v18 }
 0x485   : > { %1833 = vst [vmem:[%s3696_s8 + $0xd0] sm:$0xff] %v1785_v12  ;;  %v1788_v22 = vadd.f32 %v2145_v8, %v3691_v34 }
 0x487   : > { %1834 = vst [vmem:[%s3696_s8 + $0xd8] sm:$0xff] %v1788_v22  ;;  %v2146_v41 = vpop.f32.mrb[56].mxu1 }
 0x488   : > { %v2147_v11 = vpop.f32.mrb[57].mxu1 }
 0x489   : > { %v2148_v63 = vadd.f32 %v2147_v11, %v2146_v41  ;;  %v2149_v1 = vpop.f32.mrb[58].mxu1 }
 0x48a   : > { %v2150_v61 = vpop.f32.mrb[59].mxu1 }
 0x48b   : > { %v1793_v30 = vadd.f32 %v2148_v63, %v3691_v34  ;;  %v2151_v48 = vadd.f32 %v2150_v61, %v2149_v1 }
 0x48d   : > { %1835 = vst [vmem:[%s3696_s8 + $0xe0] sm:$0xff] %v1793_v30  ;;  %v1796_v25 = vadd.f32 %v2151_v48, %v3691_v34 }
 0x48f   : > { %1836 = vst [vmem:[%s3696_s8 + $0xe8] sm:$0xff] %v1796_v25  ;;  %v2152_v4 = vpop.f32.mrb[60].mxu1 }
 0x490   : > { %v2153_v16 = vpop.f32.mrb[61].mxu1 }
 0x491   : > { %v2154_v7 = vadd.f32 %v2153_v16, %v2152_v4  ;;  %v2155_v3 = vpop.f32.mrb[62].mxu1 }
 0x492   : > { %v2156_v35 = vpop.f32.mrb[63].mxu1 }
 0x493   : > { %v1801_v51 = vadd.f32 %v2154_v7, %v3691_v34  ;;  %v2157_v24 = vadd.f32 %v2156_v35, %v2155_v3 }
 0x495   : > { %1837 = vst [vmem:[%s3696_s8 + $0xf0] sm:$0xff] %v1801_v51  ;;  %v1804_v5 = vadd.f32 %v2157_v24, %v3691_v34 }
 0x497   : > { %1838 = vst [vmem:[%s3696_s8 + $0xf8] sm:$0xff] %v1804_v5 }
 0x498   : > { %2715 = shalt.err (!%p2712_p8)
}
 0x499   : > { %s2716_s1 = scalar_lea.hbm %s3763_s20, 4096  ;;  %s2720_s16 = scalar_lea.hbm %s3819_s7, 8192 }
 0x49a   : > { %p2717_p10 = scmp.ne.s32.totalorder %s3763_s20, %s2716_s1  ;;  %p2721_p0 = scmp.lt.u32.totalorder %s3763_s20, %s3819_s7 }
 0x49b   : > { %p2722_p5 = scmp.lt.u32.totalorder %s2720_s16, %s2716_s1  ;;  %p2724_p6 = scmp.lt.u32.totalorder %s2716_s1, %s3763_s20 }
 0x49c   : > { %p2718_p11 = pnand %p2717_p10, %p3845_p9 }
 0x49d   : > { %p2723_p7 = por %p2722_p5, %p2721_p0 }
 0x49e   : > { %p2719_p12 = pneg %p2718_p11 }
 0x49f   : > { %p2725_p4 = por %p2724_p6, %p2723_p7 }
 0x4a1   : > { %p2726_p13 = pnand %p2725_p4, %p2719_p12 }
 0x4a3   : > { %2729 = shalt.err (!%p2726_p13)
}
 0x4a4   : > { %s2795_s14 = smov 128   ;;  %s2796_s19 = smov 8  }
 0x4a5   : > { %2184 = dma.vmem_to_hbm [thread:$0]  (%p3845_p9), %s3765_s15, 4096, %s3763_s20, %s1840_s30, %s2795_s14, %s2795_s14, %s2796_s19  }
 0x4a6 PF: > { %s1868_s28 = sand.u32 1, %s2768_s24   ;;  %p3846_p1 = scmp.ne.s32.totalorder %s3834_s29, 0 }
 0x4a7   : > { %p3847_p3 = scmp.ge.s32.totalorder %s2780_s27, 2  ;;  %s1869_s9 = scalar_lea.sflag [#allocation4], %s1868_s28 }
 0x4a9   : > { %p2210_p2 = pnand %p3847_p3, %p3846_p1 }
 0x4ab   : > { %2763 = dma.done.wait (!%p2210_p2), %s1869_s9, 4096  }
 0x4ac   : > { %2765 = vsyncadd (!%p2210_p2), %s1869_s9, 4294963200  ;;  %p23_p8 = scmp.ge.s32.totalorder %s3017_s11, 4   ;;  %s3848_s24 = smov %s2772_s25 }
 0x4ad   : > { %s3849_s25 = smov %s2776_s26  ;;  %s3850_s26 = smov %s3028_s18 }
 0x4ae   : > { %s3851_s27 = smov %s3017_s11  ;;  %25 = sbr.rel (!%p23_p8) target bundleno = 10 (0xa), region = 117 }
 0x4b5   :  { %1874 = vsyncpa [#allocation3], 1 }
 0x4b6   :  { %1876 = vsyncpa [#allocation3 + $0x1], 1 }
 0x4b7   :  { %1877 = vsyncpa [#allocation6], 1 }
 0x4b8   :  { %1878 = vsyncpa [#allocation9], 1 }
 0x4b9   :  { %1879 = vsyncpa [#allocation12], 1 }
 0x4ba   :  { %1880 = vsyncpa [#allocation4], 1 }
 0x4bb   :  { %1882 = vsyncpa [#allocation4 + $0x1], 1 }

// kernel: tpu_custom_call.1
= control target key start
LH: loop header
LB: loop body
LE: loop exit
PB: predicated region body
PF: predicated region fallthrough
CT: control target
= control target key end

     0   :  { %s3812_s0 = inlined_call_operand.hbm [shape: f32[512,128], index: 0, kind: input, shape index: {}]   ;;  %s3813_s1 = inlined_call_operand.hbm [shape: f32[1,128], index: 1, kind: input, shape index: {}]   ;;  %s3814_s2 = inlined_call_operand.hbm [shape: f32[1,128], index: 2, kind: input, shape index: {}]   ;;  %s3815_s3 = inlined_call_operand.hbm [shape: bf16[128,256], index: 3, kind: input, shape index: {}]   ;;  %s3816_s4 = inlined_call_operand.hbm [shape: f32[1,256], index: 4, kind: input, shape index: {}]   ;;  %s3817_s5 = inlined_call_operand.hbm [shape: bf16[256,128], index: 5, kind: input, shape index: {}]   ;;  %s3818_s6 = inlined_call_operand.hbm [shape: f32[1,128], index: 6, kind: input, shape index: {}]   ;;  %s3819_s7 = inlined_call_operand.hbm [shape: f32[512,128], index: 7, kind: output, shape index: {}]  }
   0x1   :  { %3825 = sst [smem:[#allocation20_spill]] %s3813_s1 }
   0x2   :  { %12 = vsyncpa [#allocation3], 0 }
   0x3   :  { %14 = vsyncpa [#allocation3 + $0x1], 0 }
   0x4   :  { %15 = vsyncpa [#allocation6], 0 }
   0x5   :  { %16 = vsyncpa [#allocation9], 0 }
   0x6   :  { %17 = vsyncpa [#allocation12], 0 }
   0x7   :  { %18 = vsyncpa [#allocation4], 0 }
   0x8   :  { %20 = vsyncpa [#allocation4 + $0x1], 0  ;;  %s2837_s24 = smov 0   ;;  %s2839_s25 = smov 0  }
   0x9   :  { %s2841_s26 = smov 0   ;;  %s2843_s27 = smov 0  }
   0xa LB: > { %s2782_s28 = smov [#allocation5]   ;;  %s2858_s30 = sadd.s32 4294967295, %s2780_s27   ;;  %s2780_s27 = sphi %s2843_s27, %s3851_s27   ;;  %s2776_s26 = sphi %s2841_s26, %s3850_s26   ;;  %s2772_s25 = sphi %s2839_s25, %s3849_s25   ;;  %s2768_s24 = sphi %s2837_s24, %s3848_s24  }
   0xb   : > { %s222_s29 = sshll.u32 %s2782_s28, 4  ;;  %p1984_p0 = scmp.ge.s32.totalorder %s2780_s27, 1  ;;  %s2863_s29 = int_to_ptr.vmem [resolvable:$true] %s222_s29 }
   0xc   : > { %p3822_p1 = scmp.eq.s32.totalorder %s2858_s30, 0  ;;  %p209_p2 = scmp.lt.s32.totalorder %s2780_s27, 3 }
   0xd   : > { %s2783_s9 = smov [#allocation8]   ;;  %s2784_s12 = smov [#allocation11]  }
   0xe   : > { %p2865_p3 = pnand %p1984_p0, %p209_p2  ;;  %s243_s10 = sshll.u32 %s2783_s9, 4  ;;  %s2872_s10 = int_to_ptr.vmem [resolvable:$true] %s243_s10 }
   0xf   : > { %s267_s13 = sshll.u32 %s2784_s12, 4  ;;  %s3828_s1 = sld [smem:[#allocation20_spill]]  ;;  %s2880_s13 = int_to_ptr.vmem [resolvable:$true] %s267_s13 }
  0x10   : > { %s3826_s8 = scalar_select %p2865_p3, 1, 0 }
  0x11   : > { %p2186_p5 = pneg %p2865_p3 }
  0x13   : > { %p2876_p6 = pnand %p2186_p5, %p3822_p1 }
  0x15   : > { %s2504_s16 = scalar_lea.hbm %s3828_s1, 16  ;;  %p2890_p8 = pneg %p2876_p6 }
  0x16   : > { %p2505_p7 = scmp.ne.s32.totalorder %s3828_s1, %s2504_s16  ;;  %p2511_p11 = scmp.lt.u32.totalorder %s2504_s16, %s3828_s1 }
  0x18   : > { %p2507_p9 = pnand %p2890_p8, %p2505_p7 }
  0x1a   : > { %p2508_p10 = pneg %p2507_p9 }
  0x1c   : > { %p2513_p12 = pnand %p2511_p11, %p2508_p10 }
  0x1e   : > { %2516 = shalt.err (!%p2513_p12)
}
  0x1f   : > { %s2517_s22 = scalar_lea.vmem %s2863_s29, 16  ;;  %s2524_s23 = scalar_lea.vmem %s2863_s29, 32 }
  0x20   : > { %p2518_p13 = scmp.ne.s32.totalorder %s2863_s29, %s2517_s22  ;;  %p2525_p5 = scmp.lt.s32.totalorder %s2863_s29, %s2863_s29 }
  0x21   : > { %p2526_p7 = scmp.lt.s32.totalorder %s2524_s23, %s2517_s22 }
  0x22   : > { %p2520_p0 = pnand %p2518_p13, %p2890_p8 }
  0x23   : > { %p2527_p9 = por %p2526_p7, %p2525_p5 }
  0x24   : > { %p2521_p2 = pneg %p2520_p0 }
  0x26   : > { %p2528_p4 = pnand %p2527_p9, %p2521_p2 }
  0x28   : > { %2531 = shalt.err (!%p2528_p4)
}
  0x29   : > { %2189 = dma.hbm_to_vmem [thread:$0]  (!%p2876_p6), %s3828_s1, 16, %s2863_s29, [#allocation6]  }
  0x2a   : > { %s2532_s15 = scalar_lea.hbm %s3815_s3, 2048 }
  0x2b   : > { %p2533_p10 = scmp.ne.s32.totalorder %s3815_s3, %s2532_s15  ;;  %p2539_p4 = scmp.lt.u32.totalorder %s2532_s15, %s3815_s3 }
  0x2d   : > { %p2535_p11 = pnand %p2533_p10, %p2890_p8 }
  0x2f   : > { %p2536_p12 = pneg %p2535_p11 }
  0x31   : > { %p2541_p13 = pnand %p2539_p4, %p2536_p12 }
  0x33   : > { %2544 = shalt.err (!%p2541_p13)
}
  0x34   : > { %s2545_s29 = scalar_lea.vmem %s2872_s10, 2048  ;;  %p2553_p7 = scmp.lt.s32.totalorder %s2872_s10, %s2872_s10 }
  0x35   : > { %p2546_p0 = scmp.ne.s32.totalorder %s2872_s10, %s2545_s29  ;;  %p2554_p9 = scmp.lt.s32.totalorder %s2545_s29, %s2545_s29 }
  0x37   : > { %p2548_p2 = pnand %p2546_p0, %p2890_p8  ;;  %p2555_p10 = por %p2554_p9, %p2553_p7 }
  0x39   : > { %p2549_p5 = pneg %p2548_p2 }
  0x3b   : > { %p2556_p11 = pnand %p2555_p10, %p2549_p5 }
  0x3d   : > { %2559 = shalt.err (!%p2556_p11)
}
  0x3e   : > { %s3820_s21 = smov 128   ;;  %s3821_s22 = smov 8  }
  0x3f   : > { %2195 = dma.hbm_to_vmem [thread:$0]  (!%p2876_p6), %s3815_s3, 2048, %s2872_s10, [#allocation9], %s3820_s21, %s3820_s21, %s3821_s22  }
  0x40   : > { %s2560_s14 = scalar_lea.hbm %s3817_s5, 2048 }
  0x41   : > { %p2561_p12 = scmp.ne.s32.totalorder %s3817_s5, %s2560_s14  ;;  %p2567_p0 = scmp.lt.u32.totalorder %s2560_s14, %s3817_s5 }
  0x43   : > { %p2563_p4 = pnand %p2561_p12, %p2890_p8 }
  0x45   : > { %p2564_p13 = pneg %p2563_p4 }
  0x47   : > { %p2569_p2 = pnand %p2567_p0, %p2564_p13 }
  0x49   : > { %2572 = shalt.err (!%p2569_p2)
}
  0x4a   : > { %s2573_s10 = scalar_lea.vmem %s2880_s13, 2048  ;;  %p2581_p10 = scmp.lt.s32.totalorder %s2880_s13, %s2880_s13 }
  0x4b   : > { %p2574_p5 = scmp.ne.s32.totalorder %s2880_s13, %s2573_s10  ;;  %p2582_p11 = scmp.lt.s32.totalorder %s2573_s10, %s2573_s10 }
  0x4d   : > { %p2576_p7 = pnand %p2574_p5, %p2890_p8  ;;  %p2583_p12 = por %p2582_p11, %p2581_p10 }
  0x4f   : > { %p2577_p9 = pneg %p2576_p7 }
  0x51   : > { %p2584_p4 = pnand %p2583_p12, %p2577_p9 }
  0x53   : > { %2587 = shalt.err (!%p2584_p4)
}
  0x54   : > { %s2787_s20 = smov 64   ;;  %s2788_s29 = smov 4  }
  0x55   : > { %2201 = dma.hbm_to_vmem [thread:$0]  (!%p2876_p6), %s3817_s5, 2048, %s2880_s13, [#allocation12], %s2787_s20, %s2787_s20, %s2788_s29  }
  0x56   : > { %s2789_s9 = smov [#allocation7]   ;;  %s2790_s14 = smov [#allocation10]  }
  0x57   : > { %s233_s12 = sshll.u32 %s2789_s9, 4  ;;  %s257_s15 = sshll.u32 %s2790_s14, 4  ;;  %s234_s12 = int_to_ptr.vmem [resolvable:$true] %s233_s12  ;;  %s258_s15 = int_to_ptr.vmem [resolvable:$true] %s257_s15 }
  0x58   : > { %s2588_s18 = scalar_lea.hbm %s3814_s2, 16 }
  0x59   : > { %p2589_p13 = scmp.ne.s32.totalorder %s3814_s2, %s2588_s18  ;;  %p2595_p5 = scmp.lt.u32.totalorder %s2588_s18, %s3814_s2 }
  0x5b   : > { %p2591_p0 = pnand %p2589_p13, %p2890_p8 }
  0x5d   : > { %p2592_p2 = pneg %p2591_p0 }
  0x5f   : > { %p2597_p7 = pnand %p2595_p5, %p2592_p2 }
  0x61   : > { %2600 = shalt.err (!%p2597_p7)
}
  0x62   : > { %s2601_s13 = scalar_lea.vmem %s234_s12, 16  ;;  %s2608_s20 = scalar_lea.vmem %s234_s12, 32 }
  0x63   : > { %p2602_p9 = scmp.ne.s32.totalorder %s234_s12, %s2601_s13  ;;  %p2609_p12 = scmp.lt.s32.totalorder %s234_s12, %s234_s12 }
  0x64   : > { %p2610_p4 = scmp.lt.s32.totalorder %s2608_s20, %s2601_s13 }
  0x65   : > { %p2604_p10 = pnand %p2602_p9, %p2890_p8 }
  0x66   : > { %p2611_p1 = por %p2610_p4, %p2609_p12 }
  0x67   : > { %p2605_p11 = pneg %p2604_p10 }
  0x69   : > { %p2612_p3 = pnand %p2611_p1, %p2605_p11 }
  0x6b   : > { %2615 = shalt.err (!%p2612_p3)
}
  0x6c   : > { %2192 = dma.hbm_to_vmem [thread:$0]  (!%p2876_p6), %s3814_s2, 16, %s234_s12, [#allocation6]  }
  0x6d   : > { %s2616_s23 = scalar_lea.hbm %s3816_s4, 32 }
  0x6e   : > { %p2617_p13 = scmp.ne.s32.totalorder %s3816_s4, %s2616_s23  ;;  %p2623_p3 = scmp.lt.u32.totalorder %s2616_s23, %s3816_s4 }
  0x70   : > { %p2619_p0 = pnand %p2617_p13, %p2890_p8 }
  0x72   : > { %p2620_p1 = pneg %p2619_p0 }
  0x74   : > { %p2625_p2 = pnand %p2623_p3, %p2620_p1 }
  0x76   : > { %2628 = shalt.err (!%p2625_p2)
}
  0x77   : > { %s2629_s17 = scalar_lea.vmem %s258_s15, 32  ;;  %p2637_p10 = scmp.lt.s32.totalorder %s258_s15, %s258_s15 }
  0x78   : > { %p2630_p5 = scmp.ne.s32.totalorder %s258_s15, %s2629_s17  ;;  %p2638_p11 = scmp.lt.s32.totalorder %s2629_s17, %s2629_s17 }
  0x7a   : > { %p2632_p7 = pnand %p2630_p5, %p2890_p8  ;;  %p2639_p12 = por %p2638_p11, %p2637_p10 }
  0x7c   : > { %p2633_p9 = pneg %p2632_p7 }
  0x7e   : > { %p2640_p4 = pnand %p2639_p12, %p2633_p9 }
  0x80   : > { %2643 = shalt.err (!%p2640_p4)
}
  0x81   : > { %2198 = dma.hbm_to_vmem [thread:$0]  (!%p2876_p6), %s3816_s4, 32, %s258_s15, [#allocation9]  }
  0x82   : > { %s2791_s10 = smov [#allocation13]   ;;  %s2644_s29 = scalar_lea.hbm %s3818_s6, 16 }
  0x83   : > { %s281_s13 = sshll.u32 %s2791_s10, 4  ;;  %p2645_p13 = scmp.ne.s32.totalorder %s3818_s6, %s2644_s29  ;;  %s282_s13 = int_to_ptr.vmem [resolvable:$true] %s281_s13 }
  0x84   : > { %p2651_p3 = scmp.lt.u32.totalorder %s2644_s29, %s3818_s6 }
  0x85   : > { %p2647_p0 = pnand %p2645_p13, %p2890_p8 }
  0x87   : > { %p2648_p1 = pneg %p2647_p0 }
  0x89   : > { %p2653_p2 = pnand %p2651_p3, %p2648_p1 }
  0x8b   : > { %2656 = shalt.err (!%p2653_p2)
}
  0x8c   : > { %s2657_s15 = scalar_lea.vmem %s282_s13, 16  ;;  %s2664_s9 = scalar_lea.vmem %s282_s13, 32 }
  0x8d   : > { %p2658_p5 = scmp.ne.s32.totalorder %s282_s13, %s2657_s15  ;;  %p2665_p10 = scmp.lt.s32.totalorder %s282_s13, %s282_s13 }
  0x8e   : > { %p2666_p11 = scmp.lt.s32.totalorder %s2664_s9, %s2657_s15 }
  0x8f   : > { %p2660_p7 = pnand %p2658_p5, %p2890_p8 }
  0x90   : > { %p2667_p12 = por %p2666_p11, %p2665_p10 }
  0x91   : > { %p2661_p9 = pneg %p2660_p7 }
  0x93   : > { %p2668_p4 = pnand %p2667_p12, %p2661_p9 }
  0x95   : > { %2671 = shalt.err (!%p2668_p4)
}
  0x96   : > { %2204 = dma.hbm_to_vmem [thread:$0]  (!%p2876_p6), %s3818_s6, 16, %s282_s13, [#allocation12]  }
  0x97   : > { %s1983_s19 = sadd.s32 4294967294, %s2780_s27   ;;  %s3017_s11 = sadd.s32 1, %s2780_s27  }
  0x98   : > { %s30_s17 = ssub.s32 %s2780_s27, %s3017_s11  ;;  %s33_s12 = sadd.s32 1, %s2776_s26 }
  0x99   : > { %p31_p8 = scmp.eq.s32.totalorder %s30_s17, 0  ;;  %p40_p13 = scmp.ne.s32.totalorder %s2776_s26, %s2772_s25 }
  0x9a   : > { %p41_p0 = scmp.eq.s32.totalorder %s2780_s27, 0  ;;  %p46_p1 = scmp.ne.s32.totalorder %s2772_s25, %s2768_s24 }
  0x9b   : > { %s3028_s18 = scalar_select %p31_p8, %s2776_s26, %s33_s12  }
  0x9c   : > { %p3030_p3 = por %p41_p0, %p40_p13  ;;  %p3831_p2 = scmp.eq.s32.totalorder %s2858_s30, 0 }
  0x9d   : > { %p196_p5 = scmp.eq.s32.totalorder %s2858_s30, 1  ;;  %p202_p7 = scmp.eq.s32.totalorder %s1983_s19, 1 }
  0x9e   : > { %p3036_p6 = por %p3831_p2, %p46_p1  ;;  %p2219_p9 = scmp.lt.s32.totalorder %s2780_s27, 2 }
  0x9f   : > { %s292_s20 = sand.u32 1, %s2776_s26   ;;  %p3043_p10 = por %p196_p5, %p40_p13 }
  0xa0   : > { %p3047_p11 = por %p202_p7, %p46_p1  ;;  %s1992_s1 = sshll.u32 %s292_s20, 8 }
  0xa1   : > { %s3833_s21 = scalar_select %p3043_p10, 1, 0 }
  0xa2   : > { %s3834_s29 = scalar_select %p3047_p11, 1, 0 }
  0xa3   : > { %s2044_s22 = sshll.u32 %s2780_s27, 12  ;;  %s296_s9 = scalar_lea.vmem [#allocation2], %s1992_s1 }
  0xa4   : > { %s3055_s15 = scalar_lea.hbm %s3812_s0, %s2044_s22  ;;  %s303_s14 = sshll.u32 %s296_s9, 4  ;;  %s3057_s14 = int_to_ptr.vmem [resolvable:$true] %s303_s14 }
  0xa5   : > { %p3061_p12 = pnand %p2219_p9, %p3030_p3  ;;  %s3065_s19 = scalar_lea.sflag [#allocation3], %s292_s20 }
  0xa6   : > { %s2672_s17 = scalar_lea.hbm %s3055_s15, 4096  ;;  %s2677_s10 = scalar_lea.hbm %s3812_s0, 8192 }
  0xa7   : > { %p2673_p4 = scmp.ne.s32.totalorder %s3055_s15, %s2672_s17  ;;  %p2674_p8 = pneg %p3061_p12 }
  0xa8   : > { %p2678_p1 = scmp.lt.u32.totalorder %s3055_s15, %s3812_s0  ;;  %p2679_p3 = scmp.lt.u32.totalorder %s2677_s10, %s2672_s17 }
  0xa9   : > { %p2675_p13 = pnand %p2674_p8, %p2673_p4  ;;  %p2681_p5 = scmp.lt.u32.totalorder %s2672_s17, %s3055_s15 }
  0xaa   : > { %p2680_p2 = por %p2679_p3, %p2678_p1 }
  0xab   : > { %p2676_p0 = pneg %p2675_p13 }
  0xac   : > { %p2682_p7 = por %p2681_p5, %p2680_p2 }
  0xae   : > { %p2683_p9 = pnand %p2682_p7, %p2676_p0 }
  0xb0   : > { %2686 = shalt.err (!%p2683_p9)
}
  0xb1   : > { %s2687_s20 = scalar_lea.vmem %s3057_s14, 4096  ;;  %s2792_s28 = smov [#allocation2]  }
  0xb2   : > { %p2688_p4 = scmp.ne.s32.totalorder %s3057_s14, %s2687_s20  ;;  %s2692_s9 = sshll.u32 %s2792_s28, 4  ;;  %s2693_s9 = int_to_ptr.vmem [resolvable:$false] %s2692_s9 }
  0xb3   : > { %s2694_s12 = scalar_lea.vmem %s2693_s9, 8192  ;;  %p2695_p10 = scmp.lt.s32.totalorder %s3057_s14, %s2693_s9 }
  0xb4   : > { %p2690_p13 = pnand %p2688_p4, %p2674_p8  ;;  %p2696_p1 = scmp.lt.s32.totalorder %s2694_s12, %s2687_s20 }
  0xb6   : > { %p2691_p11 = pneg %p2690_p13  ;;  %p2697_p3 = por %p2696_p1, %p2695_p10 }
  0xb8   : > { %p2698_p2 = pnand %p2697_p3, %p2691_p11 }
  0xba   : > { %2701 = shalt.err (!%p2698_p2)
}
  0xbb   : > { %s3836_s17 = smov 8   ;;  %s3837_s1 = smov 128  }
  0xbc   : > { %2208 = dma.hbm_to_vmem [thread:$0]  (!%p3061_p12), %s3055_s15, 4096, %s3057_s14, %s3065_s19, %s3837_s1, %s3837_s1, %s3836_s17  }
  0xbd   : > { %p3838_p8 = scmp.ne.s32.totalorder %s3826_s8, 0 }
  0xbe   : > { %s3099_s10 = sand.u32 (!%p3838_p8), 1, %s2772_s25  }
  0xbf   : > { %315 = sbr.rel (%p3838_p8) target bundleno = 1190 (0x4a6), region = 48  ;;  %s1996_s22 = sshll.u32 (!%p3838_p8), %s3099_s10, 8 }
  0xc0   : > { %s318_s23 = scalar_lea.sflag (!%p3838_p8), [#allocation3], %s3099_s10  ;;  %s3105_s16 = scalar_lea.vmem (!%p3838_p8), [#allocation2], %s1996_s22 }
  0xc6   : > { %2747 = dma.done.wait (%p3036_p6), %s318_s23, 4096  }
  0xc7   : > { %2749 = vsyncadd (%p3036_p6), %s318_s23, 4294963200  ;;  %p3839_p10 = scmp.eq.s32.totalorder %s2858_s30, 0 }
  0xc9   : > { %2751 = dma.done.wait (%p3839_p10), [#allocation6], 32   ;;  %p3840_p11 = pmov %p3839_p10 }
  0xca   : > { %p3841_p12 = pmov %p3839_p10 }
  0xcb   : > { %2753 = vsyncadd (%p3840_p11), [#allocation6], 4294967264 }
  0xcc   : > { %2755 = dma.done.wait (%p3841_p12), [#allocation9], 2080   ;;  %p3842_p0 = pmov %p3839_p10 }
  0xce   : > { %2757 = vsyncadd (%p3842_p0), [#allocation9], 4294965216  ;;  %p3843_p5 = pmov %p3842_p0 }
  0xcf   : > { %p3844_p7 = pmov %p3842_p0 }
  0xd0   : > { %2759 = dma.done.wait (%p3843_p5), [#allocation12], 2064  }
  0xd1   : > { %2761 = vsyncadd (%p3844_p7), [#allocation12], 4294965232  ;;  %v379_v0 = vld [vmem:[%s3105_s16] sm:$0xff]  ;;  %v381_v1 = vld [vmem:[%s3105_s16 + $0x10] sm:$0xff]  ;;  %s3696_s8 = scalar_lea.vmem [#allocation14], %s1996_s22  ;;  %s2045_s13 = sshll.u32 %s2858_s30, 12 }
  0xd2   : > { %411 = vadd.xlane.f32.xlu0 %v379_v0  ;;  %415 = vadd.xlane.f32.xlu1 %v381_v1  ;;  %v380_v2 = vld [vmem:[%s3105_s16 + $0x8] sm:$0xff]  ;;  %v382_v3 = vld [vmem:[%s3105_s16 + $0x18] sm:$0xff]  ;;  %v3128_v4 = vld [vmem:[%s3105_s16 + $0x20] sm:$0xff]  ;;  %s1853_s15 = sshll.u32 %s3696_s8, 4  ;;  %s3763_s20 = scalar_lea.hbm %s3819_s7, %s2045_s13  ;;  %s3765_s15 = int_to_ptr.vmem [resolvable:$true] %s1853_s15 }
  0xd3   : > { %v3131_v5 = vld [vmem:[%s3105_s16 + $0x28] sm:$0xff]  ;;  %v3134_v6 = vld [vmem:[%s3105_s16 + $0x30] sm:$0xff]  ;;  %v3137_v7 = vld [vmem:[%s3105_s16 + $0x38] sm:$0xff]  ;;  %s1840_s30 = scalar_lea.sflag [#allocation4], %s3099_s10  ;;  %s2702_s28 = scalar_lea.vmem %s3765_s15, 4096 }
  0xd4   : > { %v3142_v8 = vld [vmem:[%s3105_s16 + $0x40] sm:$0xff]  ;;  %v3145_v9 = vld [vmem:[%s3105_s16 + $0x48] sm:$0xff]  ;;  %v3150_v10 = vld [vmem:[%s3105_s16 + $0x50] sm:$0xff]  ;;  %p2703_p6 = scmp.ne.s32.totalorder %s3765_s15, %s2702_s28  ;;  %p3845_p9 = scmp.ne.s32.totalorder %s3833_s21, 0 }
  0xd5   : > { %v3153_v11 = vld [vmem:[%s3105_s16 + $0x58] sm:$0xff]  ;;  %v3158_v12 = vld [vmem:[%s3105_s16 + $0x60] sm:$0xff]  ;;  %v3163_v13 = vld [vmem:[%s3105_s16 + $0x68] sm:$0xff]  ;;  %s2794_s9 = smov [#allocation14]  }
  0xd6   : > { %413 = vadd.xlane.f32.xlu0 %v380_v2  ;;  %417 = vadd.xlane.f32.xlu1 %v382_v3  ;;  %v3168_v14 = vld [vmem:[%s3105_s16 + $0x70] sm:$0xff]  ;;  %v3171_v15 = vld [vmem:[%s3105_s16 + $0x78] sm:$0xff]  ;;  %v3176_v16 = vld [vmem:[%s3105_s16 + $0x80] sm:$0xff]  ;;  %p2704_p4 = pnand %p2703_p6, %p3845_p9  ;;  %s2706_s12 = sshll.u32 %s2794_s9, 4  ;;  %s2707_s12 = int_to_ptr.vmem [resolvable:$false] %s2706_s12 }
  0xd7   : > { %v3179_v17 = vld [vmem:[%s3105_s16 + $0x88] sm:$0xff]  ;;  %v3184_v18 = vld [vmem:[%s3105_s16 + $0x90] sm:$0xff]  ;;  %v3187_v19 = vld [vmem:[%s3105_s16 + $0x98] sm:$0xff]  ;;  %s2708_s17 = scalar_lea.vmem %s2707_s12, 8192  ;;  %p2709_p1 = scmp.lt.s32.totalorder %s3765_s15, %s2707_s12 }
  0xd8   : > { %v2272_v20 = vld [vmem:[#allocation8 + $0x4] ss:$8 sps:$4 sm:$0xff]   ;;  %v2274_v21 = vld [vmem:[#allocation8] ss:$8 sps:$4 sm:$0xff]   ;;  %v2275_v22 = vld [vmem:[#allocation8 + $0x14] ss:$8 sps:$4 sm:$0xff]   ;;  %p2705_p13 = pneg %p2704_p4  ;;  %p2710_p3 = scmp.lt.s32.totalorder %s2708_s17, %s2702_s28 }
  0xd9   : > { %966 = vmatprep.subr.bf16.mxu0 %v2272_v20  ;;  %v3200_v35 = vld [vmem:[%s3105_s16 + $0xa0] sm:$0xff]  ;;  %v3210_v41 = vld [vmem:[%s3105_s16 + $0xa8] sm:$0xff]  ;;  %v3219_v46 = vld [vmem:[%s3105_s16 + $0xb0] sm:$0xff] }
  0xda   : > { %419 = vadd.xlane.f32.xlu0 %v3128_v4  ;;  %421 = vadd.xlane.f32.xlu1 %v3131_v5  ;;  %v2277_v51 = vld [vmem:[#allocation8 + $0x10] ss:$8 sps:$4 sm:$0xff]   ;;  %v2278_v54 = vld [vmem:[#allocation8 + $0x24] ss:$8 sps:$4 sm:$0xff]   ;;  %v2280_v58 = vld [vmem:[#allocation8 + $0x20] ss:$8 sps:$4 sm:$0xff]   ;;  %p2711_p2 = por %p2710_p3, %p2709_p1 }
  0xdb   : > { %967 = vmatpush1.bf16.msra.mxu0 %v2274_v21  ;;  %v3228_v52 = vld [vmem:[%s3105_s16 + $0xb8] sm:$0xff]  ;;  %v3237_v59 = vld [vmem:[%s3105_s16 + $0xc0] sm:$0xff] }
  0xdc   : > { %968 = vmatprep.subr.bf16.mxu0 %v2275_v22  ;;  %v2281_v61 = vld [vmem:[#allocation8 + $0x34] ss:$8 sps:$4 sm:$0xff]   ;;  %v2286_v21 = vld [vmem:[#allocation8 + $0x40] ss:$8 sps:$4 sm:$0xff]   ;;  %v3255_v22 = vld [vmem:[%s3105_s16 + $0xd0] sm:$0xff]  ;;  %p2712_p8 = pnand %p2711_p2, %p2705_p13 }
  0xde   : > { %423 = vadd.xlane.f32.xlu0 %v3134_v6  ;;  %425 = vadd.xlane.f32.xlu1 %v3137_v7 }
  0xdf   : > { %969 = vmatpush1.bf16.msra.mxu0 %v2277_v51 }
  0xe0   : > { %970 = vmatprep.subr.bf16.mxu0 %v2278_v54 }
  0xe2   : > { %427 = vadd.xlane.f32.xlu0 %v3142_v8  ;;  %429 = vadd.xlane.f32.xlu1 %v3145_v9 }
  0xe3   : > { %971 = vmatpush1.bf16.msra.mxu0 %v2280_v58  ;;  %v3291_v58 = vld [vmem:[%s3105_s16 + $0xf0] sm:$0xff] }
  0xe4   : > { %972 = vmatprep.subr.bf16.mxu0 %v2281_v61 }
  0xe6   : > { %431 = vadd.xlane.f32.xlu0 %v3150_v10  ;;  %433 = vadd.xlane.f32.xlu1 %v3153_v11 }
  0xea   : > { %435 = vadd.xlane.f32.xlu0 %v3158_v12  ;;  %437 = vadd.xlane.f32.xlu1 %v3163_v13 }
  0xee   : > { %439 = vadd.xlane.f32.xlu0 %v3168_v14  ;;  %441 = vadd.xlane.f32.xlu1 %v3171_v15 }
  0xf2   : > { %443 = vadd.xlane.f32.xlu0 %v3176_v16  ;;  %445 = vadd.xlane.f32.xlu1 %v3179_v17 }
  0xf6   : > { %447 = vadd.xlane.f32.xlu0 %v3184_v18  ;;  %449 = vadd.xlane.f32.xlu1 %v3187_v19 }
 0x15f   : > { %v412_v23 = vpop.xlane.xlu0 %411  ;;  %v416_v24 = vpop.xlane.xlu1 %415 }
 0x160   : > { %v476_v25 = vmul.f32 0.0078125, %v412_v23  ;;  %v478_v27 = vmul.f32 0.0078125, %v416_v24 }
 0x162   : > { %v3191_v26 = vsub.f32 %v379_v0, %v476_v25  ;;  %v3197_v33 = vsub.f32 %v381_v1, %v478_v27  ;;  %v2283_v1 = vld [vmem:[#allocation8 + $0x30] ss:$8 sps:$4 sm:$0xff]   ;;  %v2287_v25 = vld [vmem:[#allocation8 + $0x54] ss:$8 sps:$4 sm:$0xff]  }
 0x163   : > { %v414_v28 = vpop.xlane.xlu0 %413  ;;  %v418_v29 = vpop.xlane.xlu1 %417  ;;  %973 = vmatpush1.bf16.msra.mxu0 %v2283_v1 }
 0x164   : > { %v477_v30 = vmul.f32 0.0078125, %v414_v28  ;;  %v540_v31 = vmul.f32 %v3191_v26, %v3191_v26  ;;  %v479_v34 = vmul.f32 0.0078125, %v418_v29  ;;  %v542_v39 = vmul.f32 %v3197_v33, %v3197_v33  ;;  %v2289_v29 = vld [vmem:[#allocation8 + $0x50] ss:$8 sps:$4 sm:$0xff]  }
 0x166   : > { %v3195_v32 = vsub.f32 %v380_v2, %v477_v30  ;;  %572 = vadd.xlane.f32.xlu0 %v540_v31  ;;  %v3205_v38 = vsub.f32 %v382_v3, %v479_v34  ;;  %v3246_v2 = vld [vmem:[%s3105_s16 + $0xc8] sm:$0xff]  ;;  %v3264_v30 = vld [vmem:[%s3105_s16 + $0xd8] sm:$0xff] }
 0x167   : > { %v420_v36 = vpop.xlane.xlu0 %419  ;;  %v422_v42 = vpop.xlane.xlu1 %421  ;;  %v2290_v34 = vld [vmem:[#allocation8 + $0x64] ss:$8 sps:$4 sm:$0xff]  }
 0x168   : > { %v541_v37 = vmul.f32 %v3195_v32, %v3195_v32  ;;  %v480_v40 = vmul.f32 0.0078125, %v420_v36  ;;  %v543_v44 = vmul.f32 %v3205_v38, %v3205_v38  ;;  %v481_v45 = vmul.f32 0.0078125, %v422_v42 }
 0x16a   : > { %451 = vadd.xlane.f32.xlu0 %v3200_v35  ;;  %574 = vadd.xlane.f32.xlu1 %v541_v37  ;;  %v3214_v43 = vsub.f32 %v3128_v4, %v480_v40  ;;  %v3223_v48 = vsub.f32 %v3131_v5, %v481_v45  ;;  %v2284_v5 = vld [vmem:[#allocation8 + $0x44] ss:$8 sps:$4 sm:$0xff]   ;;  %v3273_v40 = vld [vmem:[%s3105_s16 + $0xe0] sm:$0xff] }
 0x16b   : > { %v424_v47 = vpop.xlane.xlu0 %423  ;;  %v426_v53 = vpop.xlane.xlu1 %425  ;;  %974 = vmatprep.subr.bf16.mxu0 %v2284_v5 }
 0x16c   : > { %v544_v49 = vmul.f32 %v3214_v43, %v3214_v43  ;;  %v482_v50 = vmul.f32 0.0078125, %v424_v47  ;;  %v545_v56 = vmul.f32 %v3223_v48, %v3223_v48  ;;  %v483_v57 = vmul.f32 0.0078125, %v426_v53  ;;  %975 = vmatpush1.bf16.msra.mxu0 %v2286_v21 }
 0x16d   : > { %976 = vmatprep.subr.bf16.mxu0 %v2287_v25 }
 0x16e   : > { %576 = vadd.xlane.f32.xlu0 %v542_v39  ;;  %453 = vadd.xlane.f32.xlu1 %v3210_v41  ;;  %v3232_v55 = vsub.f32 %v3134_v6, %v482_v50  ;;  %v3241_v62 = vsub.f32 %v3137_v7, %v483_v57  ;;  %v2292_v39 = vld [vmem:[#allocation8 + $0x60] ss:$8 sps:$4 sm:$0xff]  }
 0x16f   : > { %v428_v60 = vpop.xlane.xlu0 %427  ;;  %v430_v3 = vpop.xlane.xlu1 %429  ;;  %v3282_v50 = vld [vmem:[%s3105_s16 + $0xe8] sm:$0xff] }
 0x170   : > { %v546_v63 = vmul.f32 %v3232_v55, %v3232_v55  ;;  %v484_v0 = vmul.f32 0.0078125, %v428_v60  ;;  %v547_v7 = vmul.f32 %v3241_v62, %v3241_v62  ;;  %v485_v20 = vmul.f32 0.0078125, %v430_v3  ;;  %977 = vmatpush1.bf16.msra.mxu0 %v2289_v29 }
 0x171   : > { %978 = vmatprep.subr.bf16.mxu0 %v2290_v34  ;;  %v2793_v60 = vmov 0  }
 0x172   : > { %455 = vadd.xlane.f32.xlu0 %v3219_v46  ;;  %578 = vadd.xlane.f32.xlu1 %v543_v44  ;;  %v3250_v6 = vsub.f32 %v3142_v8, %v484_v0  ;;  %v3259_v8 = vsub.f32 %v3145_v9, %v485_v20  ;;  %v2293_v44 = vld [vmem:[#allocation8 + $0x74] ss:$8 sps:$4 sm:$0xff]  }
 0x173   : > { %v432_v4 = vpop.xlane.xlu0 %431  ;;  %v434_v23 = vpop.xlane.xlu1 %433  ;;  %998 = vmatprep.mubr.bf16.mxu0 %v2793_v60 }
 0x174   : > { %v548_v27 = vmul.f32 %v3250_v6, %v3250_v6  ;;  %v486_v28 = vmul.f32 0.0078125, %v432_v4  ;;  %v549_v9 = vmul.f32 %v3259_v8, %v3259_v8  ;;  %v487_v37 = vmul.f32 0.0078125, %v434_v23  ;;  %979 = vmatpush1.bf16.msra.mxu0 %v2292_v39  ;;  %v3304_v4 = vld [vmem:[%s3105_s16 + $0xf8] sm:$0xff] }
 0x175   : > { %980 = vmatprep.subr.bf16.mxu0 %v2293_v44 }
 0x176   : > { %457 = vadd.xlane.f32.xlu1 %v3228_v52  ;;  %580 = vadd.xlane.f32.xlu0 %v544_v49  ;;  %v3268_v36 = vsub.f32 %v3150_v10, %v486_v28  ;;  %v3277_v45 = vsub.f32 %v3153_v11, %v487_v37  ;;  %v2295_v49 = vld [vmem:[#allocation8 + $0x70] ss:$8 sps:$4 sm:$0xff]  }
 0x177   : > { %v436_v24 = vpop.xlane.xlu0 %435  ;;  %v438_v31 = vpop.xlane.xlu1 %437 }
 0x178   : > { %v550_v10 = vmul.f32 %v3268_v36, %v3268_v36  ;;  %v488_v47 = vmul.f32 0.0078125, %v436_v24  ;;  %981 = vmatpush1.bf16.msra.mxu0 %v2295_v49  ;;  %v489_v53 = vmul.f32 0.0078125, %v438_v31  ;;  %v551_v11 = vmul.f32 %v3277_v45, %v3277_v45 }
 0x17a   : > { %582 = vadd.xlane.f32.xlu1 %v545_v56  ;;  %459 = vadd.xlane.f32.xlu0 %v3237_v59  ;;  %v3286_v56 = vsub.f32 %v3158_v12, %v488_v47  ;;  %v3295_v61 = vsub.f32 %v3163_v13, %v489_v53 }
 0x17b   : > { %v440_v42 = vpop.xlane.xlu0 %439  ;;  %v442_v51 = vpop.xlane.xlu1 %441 }
 0x17c   : > { %v490_v57 = vmul.f32 0.0078125, %v440_v42  ;;  %v552_v1 = vmul.f32 %v3286_v56, %v3286_v56  ;;  %v553_v13 = vmul.f32 %v3295_v61, %v3295_v61 }
 0x17e   : > { %461 = vadd.xlane.f32.xlu1 %v3246_v2  ;;  %584 = vadd.xlane.f32.xlu0 %v546_v63  ;;  %v491_v63 = vmul.f32 0.0078125, %v442_v51  ;;  %v3299_v12 = vsub.f32 %v3168_v14, %v490_v57 }
 0x17f   : > { %v444_v54 = vpop.xlane.xlu0 %443  ;;  %v446_v0 = vpop.xlane.xlu1 %445 }
 0x180   : > { %v492_v3 = vmul.f32 0.0078125, %v444_v54  ;;  %v554_v14 = vmul.f32 %v3299_v12, %v3299_v12  ;;  %v493_v21 = vmul.f32 0.0078125, %v446_v0 }
 0x182   : > { %586 = vadd.xlane.f32.xlu1 %v547_v7  ;;  %463 = vadd.xlane.f32.xlu0 %v3255_v22  ;;  %v3307_v7 = vsub.f32 %v3171_v15, %v491_v63  ;;  %v3313_v20 = vsub.f32 %v3176_v16, %v492_v3  ;;  %v3320_v15 = vsub.f32 %v3179_v17, %v493_v21 }
 0x183   : > { %v448_v5 = vpop.xlane.xlu0 %447  ;;  %v450_v24 = vpop.xlane.xlu1 %449 }
 0x184   : > { %v494_v23 = vmul.f32 0.0078125, %v448_v5  ;;  %v555_v25 = vmul.f32 %v3307_v7, %v3307_v7  ;;  %v556_v16 = vmul.f32 %v3313_v20, %v3313_v20  ;;  %v495_v28 = vmul.f32 0.0078125, %v450_v24 }
 0x185   : > { %v557_v31 = vmul.f32 %v3320_v15, %v3320_v15 }
 0x186   : > { %465 = vadd.xlane.f32.xlu1 %v3264_v30  ;;  %588 = vadd.xlane.f32.xlu0 %v548_v27  ;;  %v3323_v27 = vsub.f32 %v3184_v18, %v494_v23  ;;  %v3328_v29 = vsub.f32 %v3187_v19, %v495_v28 }
 0x188   : > { %v558_v34 = vmul.f32 %v3323_v27, %v3323_v27  ;;  %v559_v17 = vmul.f32 %v3328_v29, %v3328_v29 }
 0x18a   : > { %590 = vadd.xlane.f32.xlu1 %v549_v9  ;;  %467 = vadd.xlane.f32.xlu0 %v3273_v40 }
 0x18e   : > { %469 = vadd.xlane.f32.xlu1 %v3282_v50  ;;  %592 = vadd.xlane.f32.xlu0 %v550_v10 }
 0x192   : > { %594 = vadd.xlane.f32.xlu1 %v551_v11  ;;  %471 = vadd.xlane.f32.xlu0 %v3291_v58 }
 0x196   : > { %473 = vadd.xlane.f32.xlu1 %v3304_v4  ;;  %596 = vadd.xlane.f32.xlu0 %v552_v1 }
 0x19a   : > { %598 = vadd.xlane.f32.xlu1 %v553_v13  ;;  %600 = vadd.xlane.f32.xlu0 %v554_v14 }
 0x19e   : > { %602 = vadd.xlane.f32.xlu1 %v555_v25  ;;  %604 = vadd.xlane.f32.xlu0 %v556_v16 }
 0x1a2   : > { %606 = vadd.xlane.f32.xlu1 %v557_v31  ;;  %608 = vadd.xlane.f32.xlu0 %v558_v34  ;;  %v3352_v31 = vld [vmem:[#allocation5] ss:$0 sm:$0xff] }
 0x1a6   : > { %610 = vadd.xlane.f32.xlu1 %v559_v17 }
 0x1f3   : > { %v573_v18 = vpop.xlane.xlu0 %572 }
 0x1f4   : > { %v636_v9 = vmul.f32 0.0078125, %v573_v18 }
 0x1f6   : > { %v668_v37 = vadd.f32 1e-05, %v636_v9 }
 0x1f7   : > { %v575_v39 = vpop.xlane.xlu1 %574  ;;  %v452_v42 = vpop.xlane.xlu0 %451 }
 0x1f8   : > { %2312 = vrsqrt.f32 %v668_v37  ;;  %v637_v19 = vmul.f32 0.0078125, %v575_v39  ;;  %v496_v44 = vmul.f32 0.0078125, %v452_v42 }
 0x1fa   : > { %v669_v10 = vadd.f32 1e-05, %v637_v19  ;;  %v3337_v47 = vsub.f32 %v3200_v35, %v496_v44  ;;  %v3361_v44 = vld [vmem:[#allocation7] ss:$0 sm:$0xff] }
 0x1fb   : > { %v454_v49 = vpop.xlane.xlu1 %453  ;;  %v577_v51 = vpop.xlane.xlu0 %576 }
 0x1fc   : > { %2314 = vrsqrt.f32 %v669_v10  ;;  %v497_v53 = vmul.f32 0.0078125, %v454_v49  ;;  %v638_v54 = vmul.f32 0.0078125, %v577_v51  ;;  %v560_v11 = vmul.f32 %v3337_v47, %v3337_v47 }
 0x1fe   : > { %v3342_v57 = vsub.f32 %v3210_v41, %v497_v53  ;;  %v670_v63 = vadd.f32 1e-05, %v638_v54  ;;  %612 = vadd.xlane.f32.xlu0 %v560_v11 }
 0x1ff   : > { %v579_v0 = vpop.xlane.xlu1 %578  ;;  %v456_v1 = vpop.xlane.xlu0 %455 }
 0x200   : > { %2316 = vrsqrt.f32 %v670_v63  ;;  %v639_v3 = vmul.f32 0.0078125, %v579_v0  ;;  %v498_v5 = vmul.f32 0.0078125, %v456_v1  ;;  %v561_v35 = vmul.f32 %v3342_v57, %v3342_v57 }
 0x202   : > { %v2313_v13 = vpop.eup %2312  ;;  %v671_v14 = vadd.f32 1e-05, %v639_v3  ;;  %v3347_v21 = vsub.f32 %v3219_v46, %v498_v5  ;;  %614 = vadd.xlane.f32.xlu1 %v561_v35 }
 0x203   : > { %v458_v23 = vpop.xlane.xlu1 %457  ;;  %v581_v24 = vpop.xlane.xlu0 %580  ;;  %v732_v41 = vmul.f32 %v2313_v13, %v3191_v26 }
 0x204   : > { %2318 = vrsqrt.f32 %v671_v14  ;;  %v499_v25 = vmul.f32 0.0078125, %v458_v23  ;;  %v640_v16 = vmul.f32 0.0078125, %v581_v24  ;;  %v562_v28 = vmul.f32 %v3347_v21, %v3347_v21 }
 0x205   : > { %v771_v26 = vmul.f32 %v3352_v31, %v732_v41 }
 0x206   : > { %v2315_v34 = vpop.eup %2314  ;;  %v3355_v17 = vsub.f32 %v3228_v52, %v499_v25  ;;  %v672_v18 = vadd.f32 1e-05, %v640_v16  ;;  %616 = vadd.xlane.f32.xlu0 %v562_v28 }
 0x207   : > { %v583_v46 = vpop.xlane.xlu1 %582  ;;  %v460_v9 = vpop.xlane.xlu0 %459  ;;  %v733_v37 = vmul.f32 %v2315_v34, %v3195_v32  ;;  %v810_v54 = vadd.f32 %v3361_v44, %v771_v26 }
 0x208   : > { %2320 = vrsqrt.f32 %v672_v18  ;;  %v641_v39 = vmul.f32 0.0078125, %v583_v46  ;;  %v500_v42 = vmul.f32 0.0078125, %v460_v9  ;;  %v563_v19 = vmul.f32 %v3355_v17, %v3355_v17 }
 0x209   : > { %v772_v10 = vmul.f32 %v3352_v31, %v733_v37 }
 0x20a   : > { %v2317_v52 = vpop.eup %2316  ;;  %v673_v49 = vadd.f32 1e-05, %v641_v39  ;;  %v3365_v51 = vsub.f32 %v3237_v59, %v500_v42  ;;  %618 = vadd.xlane.f32.xlu1 %v563_v19 }
 0x20b   : > { %v462_v53 = vpop.xlane.xlu1 %461  ;;  %v585_v32 = vpop.xlane.xlu0 %584  ;;  %v811_v11 = vadd.f32 %v3361_v44, %v772_v10  ;;  %v734_v63 = vmul.f32 %v2317_v52, %v3197_v33 }
 0x20c   : > { %2322 = vrsqrt.f32 %v673_v49  ;;  %v501_v0 = vmul.f32 0.0078125, %v462_v53  ;;  %v642_v1 = vmul.f32 0.0078125, %v585_v32  ;;  %v564_v3 = vmul.f32 %v3365_v51, %v3365_v51 }
 0x20d   : > { %v842_v5 = vpack.c.bf16 %v811_v11, %v810_v54  ;;  %v773_v33 = vmul.f32 %v3352_v31, %v734_v63 }
 0x20e   : > { %v2319_v35 = vpop.eup %2318  ;;  %v3373_v59 = vsub.f32 %v3246_v2, %v501_v0  ;;  %v674_v13 = vadd.f32 1e-05, %v642_v1  ;;  %620 = vadd.xlane.f32.xlu0 %v564_v3 }
 0x20f   : > { %v587_v14 = vpop.xlane.xlu1 %586  ;;  %999 = vmatmul.mubr.bf16.vlgmr.msra.gmra.mrb[0].mxu0 %v842_v5  ;;  %v464_v23 = vpop.xlane.xlu0 %463  ;;  %v735_v24 = vmul.f32 %v2319_v35, %v3205_v38  ;;  %v812_v9 = vadd.f32 %v3361_v44, %v773_v33 }
 0x210   : > { %2324 = vrsqrt.f32 %v674_v13  ;;  %v643_v41 = vmul.f32 0.0078125, %v587_v14  ;;  %v502_v25 = vmul.f32 0.0078125, %v464_v23  ;;  %v565_v16 = vmul.f32 %v3373_v59, %v3373_v59  ;;  %1008 = vmatprep.mubr.bf16.mxu0 %v2793_v60 }
 0x211   : > { %v774_v2 = vmul.f32 %v3352_v31, %v735_v24 }
 0x212   : > { %v2321_v28 = vpop.eup %2320  ;;  %v675_v34 = vadd.f32 1e-05, %v643_v41  ;;  %v3382_v18 = vsub.f32 %v3255_v22, %v502_v25  ;;  %622 = vadd.xlane.f32.xlu1 %v565_v16 }
 0x213   : > { %v466_v46 = vpop.xlane.xlu1 %465  ;;  %v589_v38 = vpop.xlane.xlu0 %588  ;;  %v813_v37 = vadd.f32 %v3361_v44, %v774_v2  ;;  %v736_v26 = vmul.f32 %v2321_v28, %v3214_v43 }
 0x214   : > { %2326 = vrsqrt.f32 %v675_v34  ;;  %v503_v39 = vmul.f32 0.0078125, %v466_v46  ;;  %v644_v42 = vmul.f32 0.0078125, %v589_v38  ;;  %v566_v19 = vmul.f32 %v3382_v18, %v3382_v18 }
 0x215   : > { %v843_v10 = vpack.c.bf16 %v813_v37, %v812_v9  ;;  %v775_v43 = vmul.f32 %v3352_v31, %v736_v26 }
 0x216   : > { %v2323_v52 = vpop.eup %2322  ;;  %v3390_v22 = vsub.f32 %v3264_v30, %v503_v39  ;;  %v676_v49 = vadd.f32 1e-05, %v644_v42  ;;  %624 = vadd.xlane.f32.xlu0 %v566_v19 }
 0x217   : > { %v591_v53 = vpop.xlane.xlu1 %590  ;;  %1009 = vmatmul.mubr.bf16.gmra.mrb[4].mxu0 %v843_v10  ;;  %v468_v32 = vpop.xlane.xlu0 %467  ;;  %v737_v54 = vmul.f32 %v2323_v52, %v3223_v48  ;;  %v814_v13 = vadd.f32 %v3361_v44, %v775_v43 }
 0x218   : > { %2328 = vrsqrt.f32 %v676_v49  ;;  %v645_v11 = vmul.f32 0.0078125, %v591_v53  ;;  %v504_v63 = vmul.f32 0.0078125, %v468_v32  ;;  %v567_v0 = vmul.f32 %v3390_v22, %v3390_v22  ;;  %1018 = vmatprep.mubr.bf16.mxu0 %v2793_v60 }
 0x219   : > { %v776_v30 = vmul.f32 %v3352_v31, %v737_v54 }
 0x21a   : > { %v2325_v1 = vpop.eup %2324  ;;  %v677_v3 = vadd.f32 1e-05, %v645_v11  ;;  %v3399_v5 = vsub.f32 %v3273_v40, %v504_v63  ;;  %626 = vadd.xlane.f32.xlu1 %v567_v0 }
 0x21b   : > { %v470_v35 = vpop.xlane.xlu1 %469  ;;  %v593_v48 = vpop.xlane.xlu0 %592  ;;  %v815_v14 = vadd.f32 %v3361_v44, %v776_v30  ;;  %v738_v23 = vmul.f32 %v2325_v1, %v3232_v55 }
 0x21c   : > { %2330 = vrsqrt.f32 %v677_v3  ;;  %v505_v24 = vmul.f32 0.0078125, %v470_v35  ;;  %v646_v33 = vmul.f32 0.0078125, %v593_v48  ;;  %v568_v41 = vmul.f32 %v3399_v5, %v3399_v5 }
 0x21d   : > { %v844_v25 = vpack.c.bf16 %v815_v14, %v814_v13  ;;  %v777_v55 = vmul.f32 %v3352_v31, %v738_v23 }
 0x21e   : > { %v2327_v16 = vpop.eup %2326  ;;  %v3407_v40 = vsub.f32 %v3282_v50, %v505_v24  ;;  %v678_v2 = vadd.f32 1e-05, %v646_v33  ;;  %628 = vadd.xlane.f32.xlu0 %v568_v41 }
 0x21f   : > { %v595_v28 = vpop.xlane.xlu1 %594  ;;  %1019 = vmatmul.mubr.bf16.gmra.mrb[8].mxu0 %v844_v25  ;;  %v472_v34 = vpop.xlane.xlu0 %471  ;;  %v739_v46 = vmul.f32 %v2327_v16, %v3241_v62  ;;  %v816_v10 = vadd.f32 %v3361_v44, %v777_v55 }
 0x220   : > { %2332 = vrsqrt.f32 %v678_v2  ;;  %v647_v38 = vmul.f32 0.0078125, %v595_v28  ;;  %v506_v9 = vmul.f32 0.0078125, %v472_v34  ;;  %v569_v37 = vmul.f32 %v3407_v40, %v3407_v40  ;;  %1028 = vmatprep.mubr.bf16.mxu0 %v2793_v60 }
 0x221   : > { %v778_v50 = vmul.f32 %v3352_v31, %v739_v46 }
 0x222   : > { %v2329_v26 = vpop.eup %2328  ;;  %v679_v39 = vadd.f32 1e-05, %v647_v38  ;;  %v3416_v42 = vsub.f32 %v3291_v58, %v506_v9  ;;  %630 = vadd.xlane.f32.xlu1 %v569_v37 }
 0x223   : > { %v474_v19 = vpop.xlane.xlu1 %473  ;;  %v597_v62 = vpop.xlane.xlu0 %596  ;;  %v817_v52 = vadd.f32 %v3361_v44, %v778_v50  ;;  %v740_v49 = vmul.f32 %v2329_v26, %v3250_v6 }
 0x224   : > { %2334 = vrsqrt.f32 %v679_v39  ;;  %v507_v53 = vmul.f32 0.0078125, %v474_v19  ;;  %v648_v32 = vmul.f32 0.0078125, %v597_v62  ;;  %v570_v54 = vmul.f32 %v3416_v42, %v3416_v42 }
 0x225   : > { %v845_v43 = vpack.c.bf16 %v817_v52, %v816_v10  ;;  %v779_v6 = vmul.f32 %v3352_v31, %v740_v49 }
 0x226   : > { %v2331_v11 = vpop.eup %2330  ;;  %v3424_v58 = vsub.f32 %v3304_v4, %v507_v53  ;;  %v680_v63 = vadd.f32 1e-05, %v648_v32  ;;  %632 = vadd.xlane.f32.xlu0 %v570_v54 }
 0x227   : > { %v599_v0 = vpop.xlane.xlu1 %598  ;;  %1029 = vmatmul.mubr.bf16.gmra.mrb[12].mxu0 %v845_v43  ;;  %v601_v30 = vpop.xlane.xlu0 %600  ;;  %v741_v1 = vmul.f32 %v2331_v11, %v3259_v8  ;;  %v818_v8 = vadd.f32 %v3361_v44, %v779_v6 }
 0x228   : > { %2336 = vrsqrt.f32 %v680_v63  ;;  %v649_v3 = vmul.f32 0.0078125, %v599_v0  ;;  %v650_v35 = vmul.f32 0.0078125, %v601_v30  ;;  %v571_v48 = vmul.f32 %v3424_v58, %v3424_v58  ;;  %1038 = vmatprep.mubr.bf16.mxu0 %v2793_v60 }
 0x229   : > { %v780_v4 = vmul.f32 %v3352_v31, %v741_v1 }
 0x22a   : > { %v2333_v13 = vpop.eup %2332  ;;  %v681_v14 = vadd.f32 1e-05, %v649_v3  ;;  %v682_v23 = vadd.f32 1e-05, %v650_v35  ;;  %634 = vadd.xlane.f32.xlu1 %v571_v48 }
 0x22b   : > { %v603_v24 = vpop.xlane.xlu1 %602  ;;  %v605_v33 = vpop.xlane.xlu0 %604  ;;  %v819_v41 = vadd.f32 %v3361_v44, %v780_v4  ;;  %v742_v25 = vmul.f32 %v2333_v13, %v3268_v36 }
 0x22c   : > { %2338 = vrsqrt.f32 %v681_v14  ;;  %v651_v16 = vmul.f32 0.0078125, %v603_v24  ;;  %v652_v46 = vmul.f32 0.0078125, %v605_v33 }
 0x22d   : > { %v846_v2 = vpack.c.bf16 %v819_v41, %v818_v8  ;;  %2340 = vrsqrt.f32 %v682_v23  ;;  %v781_v9 = vmul.f32 %v3352_v31, %v742_v25 }
 0x22e   : > { %v2335_v28 = vpop.eup %2334  ;;  %v683_v34 = vadd.f32 1e-05, %v651_v16  ;;  %v684_v26 = vadd.f32 1e-05, %v652_v46 }
 0x22f   : > { %v607_v55 = vpop.xlane.xlu1 %606  ;;  %1039 = vmatmul.mubr.bf16.gmra.mrb[16].mxu0 %v846_v2  ;;  %v743_v38 = vmul.f32 %v2335_v28, %v3277_v45  ;;  %v609_v19 = vpop.xlane.xlu0 %608  ;;  %v820_v10 = vadd.f32 %v3361_v44, %v781_v9  ;;  %v2296_v9 = vld [vmem:[#allocation11 + $0x40] sm:$0xff]  }
 0x230   : > { %2342 = vrsqrt.f32 %v683_v34  ;;  %v653_v37 = vmul.f32 0.0078125, %v607_v55  ;;  %1048 = vmatprep.mubr.bf16.mxu0 %v2793_v60  ;;  %v654_v54 = vmul.f32 0.0078125, %v609_v19  ;;  %2046 = vmatprep.subr.bf16.mxu1 %v2296_v9  ;;  %v2301_v19 = vld [vmem:[#allocation11 + $0x10] sm:$0xff]  }
 0x231   : > { %v782_v50 = vmul.f32 %v3352_v31, %v743_v38 }
 0x232   : > { %v2337_v36 = vpop.eup %2336  ;;  %v685_v39 = vadd.f32 1e-05, %v653_v37  ;;  %v686_v6 = vadd.f32 1e-05, %v654_v54  ;;  %v2297_v37 = vld [vmem:[#allocation11] sm:$0xff]   ;;  %v2309_v54 = vld [vmem:[#allocation11 + $0x30] sm:$0xff]  }
 0x233   : > { %v611_v62 = vpop.xlane.xlu1 %610  ;;  %v821_v52 = vadd.f32 %v3361_v44, %v782_v50  ;;  %v744_v49 = vmul.f32 %v2337_v36, %v3286_v56  ;;  %v2298_v50 = vld [vmem:[#allocation11 + $0x48] sm:$0xff]   ;;  %2047 = vmatpush3.bf16.msra.mxu1 %v2297_v37 }
 0x234   : > { %2344 = vrsqrt.f32 %v685_v39  ;;  %v655_v45 = vmul.f32 0.0078125, %v611_v62  ;;  %2048 = vmatprep.subr.bf16.mxu1 %v2298_v50  ;;  %v2300_v39 = vld [vmem:[#allocation11 + $0x50] sm:$0xff]   ;;  %v2302_v62 = vld [vmem:[#allocation11 + $0x58] sm:$0xff]  }
 0x235   : > { %v847_v53 = vpack.c.bf16 %v821_v52, %v820_v10  ;;  %2346 = vrsqrt.f32 %v684_v26  ;;  %v783_v11 = vmul.f32 %v3352_v31, %v744_v49  ;;  %v2303_v10 = vld [vmem:[#allocation11 + $0x18] sm:$0xff]   ;;  %v2304_v52 = vld [vmem:[#allocation11 + $0x60] sm:$0xff]  }
 0x236   : > { %v2339_v32 = vpop.eup %2338  ;;  %v687_v0 = vadd.f32 1e-05, %v655_v45  ;;  %v2305_v49 = vld [vmem:[#allocation11 + $0x20] sm:$0xff]   ;;  %v2306_v45 = vld [vmem:[#allocation11 + $0x68] sm:$0xff]  }
 0x237   : > { %1049 = vmatmul.mubr.bf16.gmra.mrb[20].mxu0 %v847_v53  ;;  %v745_v43 = vmul.f32 %v2339_v32, %v3295_v61  ;;  %v2341_v63 = vpop.eup %2340  ;;  %v822_v56 = vadd.f32 %v3361_v44, %v783_v11  ;;  %v2307_v53 = vld [vmem:[#allocation11 + $0x28] sm:$0xff]   ;;  %v2308_v32 = vld [vmem:[#allocation11 + $0x70] sm:$0xff]   ;;  %v2311_v11 = vld [vmem:[#allocation11 + $0x38] sm:$0xff]  }
 0x238   : > { %1058 = vmatprep.mubr.bf16.mxu0 %v2793_v60  ;;  %v746_v35 = vmul.f32 %v2341_v63, %v3299_v12  ;;  %2348 = vrsqrt.f32 %v687_v0 }
 0x239   : > { %v784_v30 = vmul.f32 %v3352_v31, %v745_v43  ;;  %2350 = vrsqrt.f32 %v686_v6  ;;  %v2310_v43 = vld [vmem:[#allocation11 + $0x78] sm:$0xff]  }
 0x23a   : > { %v2343_v1 = vpop.eup %2342  ;;  %v785_v14 = vmul.f32 %v3352_v31, %v746_v35 }
 0x23b   : > { %v823_v3 = vadd.f32 %v3361_v44, %v784_v30  ;;  %v747_v48 = vmul.f32 %v2343_v1, %v3307_v7 }
 0x23c   : > { %v824_v12 = vadd.f32 %v3361_v44, %v785_v14 }
 0x23d   : > { %v848_v61 = vpack.c.bf16 %v823_v3, %v822_v56  ;;  %v786_v4 = vmul.f32 %v3352_v31, %v747_v48 }
 0x23e   : > { %v2345_v13 = vpop.eup %2344 }
 0x23f   : > { %1059 = vmatmul.mubr.bf16.gmra.mrb[24].mxu0 %v848_v61  ;;  %v2347_v23 = vpop.eup %2346  ;;  %v825_v24 = vadd.f32 %v3361_v44, %v786_v4  ;;  %v749_v33 = vmul.f32 %v2345_v13, %v3320_v15 }
 0x240   : > { %1068 = vmatprep.mubr.bf16.mxu0 %v2793_v60  ;;  %v748_v7 = vmul.f32 %v2347_v23, %v3313_v20 }
 0x241   : > { %v849_v8 = vpack.c.bf16 %v825_v24, %v824_v12  ;;  %v788_v41 = vmul.f32 %v3352_v31, %v749_v33 }
 0x242   : > { %v2349_v25 = vpop.eup %2348  ;;  %v787_v16 = vmul.f32 %v3352_v31, %v748_v7 }
 0x243   : > { %v2351_v2 = vpop.eup %2350  ;;  %v827_v28 = vadd.f32 %v3361_v44, %v788_v41  ;;  %v751_v34 = vmul.f32 %v2349_v25, %v3328_v29  ;;  %v2299_v29 = vld [vmem:[#allocation11 + $0x8] sm:$0xff]  }
 0x244   : > { %v826_v15 = vadd.f32 %v3361_v44, %v787_v16  ;;  %v750_v46 = vmul.f32 %v2351_v2, %v3323_v27  ;;  %2049 = vmatpush3.bf16.msra.mxu1 %v2299_v29 }
 0x245   : > { %v790_v20 = vmul.f32 %v3352_v31, %v751_v34  ;;  %2050 = vmatprep.subr.bf16.mxu1 %v2300_v39 }
 0x246   : > { %v850_v55 = vpack.c.bf16 %v827_v28, %v826_v15  ;;  %v789_v38 = vmul.f32 %v3352_v31, %v750_v46 }
 0x247   : > { %1069 = vmatmul.mubr.bf16.gmra.mrb[28].mxu0 %v849_v8  ;;  %v829_v36 = vadd.f32 %v3361_v44, %v790_v20 }
 0x248   : > { %1078 = vmatprep.mubr.bf16.mxu0 %v2793_v60  ;;  %v828_v26 = vadd.f32 %v3361_v44, %v789_v38  ;;  %2051 = vmatpush3.bf16.msra.mxu1 %v2301_v19 }
 0x249   : > { %2052 = vmatprep.subr.bf16.mxu1 %v2302_v62 }
 0x24a   : > { %v851_v27 = vpack.c.bf16 %v829_v36, %v828_v26 }
 0x24c   : > { %2053 = vmatpush3.bf16.msra.mxu1 %v2303_v10 }
 0x24d   : > { %2054 = vmatprep.subr.bf16.mxu1 %v2304_v52 }
 0x24f   : > { %1079 = vmatmul.mubr.bf16.gmra.mrb[32].mxu0 %v850_v55 }
 0x250   : > { %1088 = vmatprep.mubr.bf16.mxu0 %v2793_v60  ;;  %2055 = vmatpush3.bf16.msra.mxu1 %v2305_v49 }
 0x251   : > { %2056 = vmatprep.subr.bf16.mxu1 %v2306_v45 }
 0x254   : > { %2057 = vmatpush3.bf16.msra.mxu1 %v2307_v53 }
 0x255   : > { %2058 = vmatprep.subr.bf16.mxu1 %v2308_v32 }
 0x257   : > { %1089 = vmatmul.mubr.bf16.gmra.mrb[36].mxu0 %v851_v27 }
 0x258   : > { %1098 = vmatprep.mubr.bf16.mxu0 %v2793_v60  ;;  %2059 = vmatpush3.bf16.msra.mxu1 %v2309_v54 }
 0x259   : > { %2060 = vmatprep.subr.bf16.mxu1 %v2310_v43 }
 0x25c   : > { %2061 = vmatpush3.bf16.msra.mxu1 %v2311_v11 }
 0x28b   : > { %v613_v63 = vpop.xlane.xlu0 %612 }
 0x28c   : > { %v656_v0 = vmul.f32 0.0078125, %v613_v63 }
 0x28e   : > { %v688_v30 = vadd.f32 1e-05, %v656_v0 }
 0x28f   : > { %v615_v1 = vpop.xlane.xlu1 %614 }
 0x290   : > { %2352 = vrsqrt.f32 %v688_v30  ;;  %v657_v6 = vmul.f32 0.0078125, %v615_v1 }
 0x292   : > { %v689_v56 = vadd.f32 1e-05, %v657_v6 }
 0x293   : > { %v617_v3 = vpop.xlane.xlu0 %616 }
 0x294   : > { %2354 = vrsqrt.f32 %v689_v56  ;;  %v658_v35 = vmul.f32 0.0078125, %v617_v3 }
 0x296   : > { %v690_v48 = vadd.f32 1e-05, %v658_v35 }
 0x297   : > { %v619_v61 = vpop.xlane.xlu1 %618 }
 0x298   : > { %2356 = vrsqrt.f32 %v690_v48  ;;  %v659_v4 = vmul.f32 0.0078125, %v619_v61 }
 0x29a   : > { %v2353_v13 = vpop.eup %2352  ;;  %v691_v14 = vadd.f32 1e-05, %v659_v4 }
 0x29b   : > { %v621_v23 = vpop.xlane.xlu0 %620  ;;  %v752_v24 = vmul.f32 %v2353_v13, %v3337_v47 }
 0x29c   : > { %2358 = vrsqrt.f32 %v691_v14  ;;  %v660_v33 = vmul.f32 0.0078125, %v621_v23 }
 0x29d   : > { %v791_v25 = vmul.f32 %v3352_v31, %v752_v24 }
 0x29e   : > { %v2355_v12 = vpop.eup %2354  ;;  %v692_v7 = vadd.f32 1e-05, %v660_v33 }
 0x29f   : > { %v623_v8 = vpop.xlane.xlu1 %622  ;;  %v753_v41 = vmul.f32 %v2355_v12, %v3342_v57  ;;  %v830_v46 = vadd.f32 %v3361_v44, %v791_v25 }
 0x2a0   : > { %2360 = vrsqrt.f32 %v692_v7  ;;  %v661_v16 = vmul.f32 0.0078125, %v623_v8 }
 0x2a1   : > { %v792_v2 = vmul.f32 %v3352_v31, %v753_v41 }
 0x2a2   : > { %v2357_v28 = vpop.eup %2356  ;;  %v693_v34 = vadd.f32 1e-05, %v661_v16 }
 0x2a3   : > { %v625_v15 = vpop.xlane.xlu0 %624  ;;  %v831_v47 = vadd.f32 %v3361_v44, %v792_v2  ;;  %v754_v55 = vmul.f32 %v2357_v28, %v3347_v21 }
 0x2a4   : > { %2362 = vrsqrt.f32 %v693_v34  ;;  %v662_v20 = vmul.f32 0.0078125, %v625_v15 }
 0x2a5   : > { %v852_v38 = vpack.c.bf16 %v831_v47, %v830_v46  ;;  %v793_v36 = vmul.f32 %v3352_v31, %v754_v55 }
 0x2a6   : > { %v2359_v9 = vpop.eup %2358  ;;  %v694_v57 = vadd.f32 1e-05, %v662_v20 }
 0x2a7   : > { %v627_v37 = vpop.xlane.xlu1 %626  ;;  %1099 = vmatmul.mubr.bf16.gmra.mrb[40].mxu0 %v852_v38  ;;  %v755_v50 = vmul.f32 %v2359_v9, %v3355_v17  ;;  %v832_v19 = vadd.f32 %v3361_v44, %v793_v36  ;;  %v876_v9 = vlaneseq }
 0x2a8   : > { %2364 = vrsqrt.f32 %v694_v57  ;;  %v663_v29 = vmul.f32 0.0078125, %v627_v37  ;;  %1108 = vmatprep.mubr.bf16.mxu0 %v2793_v60  ;;  %v874_v37 = vld [vmem:[#allocation10] sm:$0x3] }
 0x2a9   : > { %v794_v26 = vmul.f32 %v3352_v31, %v755_v50  ;;  %v877_v57 = vshrl.u32 %v876_v9, 7 }
 0x2aa   : > { %v2361_v27 = vpop.eup %2360  ;;  %v695_v39 = vadd.f32 1e-05, %v663_v29 }
 0x2ab   : > { %v629_v21 = vpop.xlane.xlu0 %628  ;;  %v833_v62 = vadd.f32 %v3361_v44, %v794_v26  ;;  %v756_v10 = vmul.f32 %v2361_v27, %v3365_v51  ;;  %v882_v50 = vsub.s32 1, %v877_v57 }
 0x2ac   : > { %2366 = vrsqrt.f32 %v695_v39  ;;  %v664_v52 = vmul.f32 0.0078125, %v629_v21 }
 0x2ad   : > { %v853_v17 = vpack.c.bf16 %v833_v62, %v832_v19  ;;  %v795_v54 = vmul.f32 %v3352_v31, %v756_v10 }
 0x2ae   : > { %v2363_v49 = vpop.eup %2362  ;;  %v696_v45 = vadd.f32 1e-05, %v664_v52 }
 0x2af   : > { %v631_v53 = vpop.xlane.xlu1 %630  ;;  %1109 = vmatmul.mubr.bf16.gmra.mrb[44].mxu0 %v853_v17  ;;  %v757_v32 = vmul.f32 %v2363_v49, %v3373_v59  ;;  %v834_v30 = vadd.f32 %v3361_v44, %v795_v54 }
 0x2b0   : > { %2368 = vrsqrt.f32 %v696_v45  ;;  %v665_v43 = vmul.f32 0.0078125, %v631_v53  ;;  %1118 = vmatprep.mubr.bf16.mxu0 %v2793_v60 }
 0x2b1   : > { %v796_v11 = vmul.f32 %v3352_v31, %v757_v32 }
 0x2b2   : > { %v2365_v63 = vpop.eup %2364  ;;  %v697_v0 = vadd.f32 1e-05, %v665_v43 }
 0x2b3   : > { %v633_v51 = vpop.xlane.xlu0 %632  ;;  %v835_v1 = vadd.f32 %v3361_v44, %v796_v11  ;;  %v758_v6 = vmul.f32 %v2365_v63, %v3382_v18 }
 0x2b4   : > { %2370 = vrsqrt.f32 %v697_v0  ;;  %v666_v56 = vmul.f32 0.0078125, %v633_v51 }
 0x2b5   : > { %v854_v59 = vpack.c.bf16 %v835_v1, %v834_v30  ;;  %v797_v4 = vmul.f32 %v3352_v31, %v758_v6 }
 0x2b6   : > { %v2367_v3 = vpop.eup %2366  ;;  %v698_v35 = vadd.f32 1e-05, %v666_v56 }
 0x2b7   : > { %v635_v48 = vpop.xlane.xlu1 %634  ;;  %1119 = vmatmul.mubr.bf16.gmra.mrb[48].mxu0 %v854_v59  ;;  %v759_v61 = vmul.f32 %v2367_v3, %v3390_v22  ;;  %v836_v18 = vadd.f32 %v3361_v44, %v797_v4 }
 0x2b8   : > { %2372 = vrsqrt.f32 %v698_v35  ;;  %v667_v13 = vmul.f32 0.0078125, %v635_v48  ;;  %1128 = vmatprep.mubr.bf16.mxu0 %v2793_v60 }
 0x2b9   : > { %v798_v14 = vmul.f32 %v3352_v31, %v759_v61 }
 0x2ba   : > { %v2369_v23 = vpop.eup %2368  ;;  %v699_v24 = vadd.f32 1e-05, %v667_v13 }
 0x2bb   : > { %v837_v33 = vadd.f32 %v3361_v44, %v798_v14  ;;  %v760_v12 = vmul.f32 %v2369_v23, %v3399_v5 }
 0x2bc   : > { %2374 = vrsqrt.f32 %v699_v24 }
 0x2bd   : > { %v855_v7 = vpack.c.bf16 %v837_v33, %v836_v18  ;;  %v799_v41 = vmul.f32 %v3352_v31, %v760_v12 }
 0x2be   : > { %v2371_v8 = vpop.eup %2370 }
 0x2bf   : > { %1129 = vmatmul.mubr.bf16.gmra.mrb[52].mxu0 %v855_v7  ;;  %v761_v22 = vmul.f32 %v2371_v8, %v3407_v40  ;;  %v838_v2 = vadd.f32 %v3361_v44, %v799_v41 }
 0x2c0   : > { %1138 = vmatprep.mubr.bf16.mxu0 %v2793_v60 }
 0x2c1   : > { %v800_v25 = vmul.f32 %v3352_v31, %v761_v22 }
 0x2c2   : > { %v2373_v16 = vpop.eup %2372 }
 0x2c3   : > { %v839_v28 = vadd.f32 %v3361_v44, %v800_v25  ;;  %v762_v34 = vmul.f32 %v2373_v16, %v3416_v42  ;;  %v878_v42 = vsub.s32 0, %v877_v57 }
 0x2c5   : > { %v856_v5 = vpack.c.bf16 %v839_v28, %v838_v2  ;;  %v801_v40 = vmul.f32 %v3352_v31, %v762_v34  ;;  %v3511_v36 = vrot.slane %v874_v37, %v878_v42 }
 0x2c6   : > { %v2375_v15 = vpop.eup %2374 }
 0x2c7   : > { %1139 = vmatmul.mubr.bf16.gmra.mrb[56].mxu0 %v856_v5  ;;  %v763_v46 = vmul.f32 %v2375_v15, %v3424_v58  ;;  %v840_v55 = vadd.f32 %v3361_v44, %v801_v40  ;;  %v3513_v58 = vrot.slane %v874_v37, %v882_v50 }
 0x2c8   : > { %1148 = vmatprep.mubr.bf16.mxu0 %v2793_v60 }
 0x2c9   : > { %v802_v47 = vmul.f32 %v3352_v31, %v763_v46 }
 0x2cb   : > { %v841_v20 = vadd.f32 %v3361_v44, %v802_v47 }
 0x2cd   : > { %v857_v38 = vpack.c.bf16 %v841_v20, %v840_v55 }
 0x2cf   : > { %1149 = vmatmul.mubr.bf16.gmra.mrb[60].mxu0 %v857_v38 }
 0x2e2   : > { %v1000_v29 = vpop.f32.mrb[0].mxu0 }
 0x2e3   : > { %v1001_v60 = vadd.f32 %v1000_v29, %v3511_v36  ;;  %v1002_v26 = vpop.f32.mrb[1].mxu0 }
 0x2e4   : > { %v1003_v31 = vadd.f32 %v1002_v26, %v3513_v58  ;;  %v1004_v27 = vpop.f32.mrb[2].mxu0 }
 0x2e5   : > { %v1223_v39 = vmul.f32 0.70710677, %v1001_v60  ;;  %v1005_v44 = vadd.f32 %v1004_v27, %v3511_v36  ;;  %v1006_v21 = vpop.f32.mrb[3].mxu0  ;;  %v1159_v3 = vmul.f32 0.5, %v1001_v60 }
 0x2e6   : > { %v1224_v19 = vmul.f32 0.70710677, %v1003_v31  ;;  %v1007_v62 = vadd.f32 %v1006_v21, %v3513_v58  ;;  %v1160_v33 = vmul.f32 0.5, %v1003_v31 }
 0x2e7   : > { %2376 = verf.f32 %v1223_v39  ;;  %v1225_v10 = vmul.f32 0.70710677, %v1005_v44  ;;  %v1161_v13 = vmul.f32 0.5, %v1005_v44 }
 0x2e8   : > { %2378 = verf.f32 %v1224_v19  ;;  %v1226_v52 = vmul.f32 0.70710677, %v1007_v62  ;;  %v1162_v25 = vmul.f32 0.5, %v1007_v62 }
 0x2e9   : > { %2380 = verf.f32 %v1225_v10 }
 0x2ea   : > { %2382 = verf.f32 %v1226_v52  ;;  %v1010_v17 = vpop.f32.mrb[4].mxu0 }
 0x2eb   : > { %v1011_v49 = vadd.f32 %v1010_v17, %v3511_v36  ;;  %v1012_v45 = vpop.f32.mrb[5].mxu0 }
 0x2ec   : > { %v1013_v53 = vadd.f32 %v1012_v45, %v3513_v58  ;;  %v1014_v32 = vpop.f32.mrb[6].mxu0 }
 0x2ed   : > { %v1227_v54 = vmul.f32 0.70710677, %v1011_v49  ;;  %v1015_v43 = vadd.f32 %v1014_v32, %v3511_v36  ;;  %v1016_v11 = vpop.f32.mrb[7].mxu0  ;;  %v1163_v60 = vmul.f32 0.5, %v1011_v49 }
 0x2ee   : > { %v1228_v63 = vmul.f32 0.70710677, %v1013_v53  ;;  %v1017_v0 = vadd.f32 %v1016_v11, %v3513_v58  ;;  %v1164_v44 = vmul.f32 0.5, %v1013_v53 }
 0x2ef   : > { %2384 = verf.f32 %v1227_v54  ;;  %v1229_v51 = vmul.f32 0.70710677, %v1015_v43  ;;  %v1165_v26 = vmul.f32 0.5, %v1015_v43 }
 0x2f0   : > { %2386 = verf.f32 %v1228_v63  ;;  %v1230_v30 = vmul.f32 0.70710677, %v1017_v0  ;;  %v1166_v21 = vmul.f32 0.5, %v1017_v0 }
 0x2f1   : > { %v2377_v1 = vpop.eup %2376  ;;  %2388 = verf.f32 %v1229_v51 }
 0x2f2   : > { %v2379_v6 = vpop.eup %2378  ;;  %2390 = verf.f32 %v1230_v30  ;;  %v1020_v56 = vpop.f32.mrb[8].mxu0  ;;  %v1351_v35 = vadd.f32 1.0, %v2377_v1 }
 0x2f3   : > { %v2381_v59 = vpop.eup %2380  ;;  %v3524_v48 = vadd.f32 %v1020_v56, %v3511_v36  ;;  %v1022_v61 = vpop.f32.mrb[9].mxu0  ;;  %v1352_v18 = vadd.f32 1.0, %v2379_v6 }
 0x2f4   : > { %v2383_v4 = vpop.eup %2382  ;;  %v1353_v14 = vadd.f32 1.0, %v2381_v59  ;;  %v3527_v23 = vadd.f32 %v1022_v61, %v3513_v58  ;;  %v1024_v24 = vpop.f32.mrb[10].mxu0  ;;  %v1415_v28 = vmul.f32 %v1351_v35, %v1159_v3 }
 0x2f5   : > { %v1231_v12 = vmul.f32 0.70710677, %v3524_v48  ;;  %v3531_v7 = vadd.f32 %v1024_v24, %v3511_v36  ;;  %v1026_v8 = vpop.f32.mrb[11].mxu0  ;;  %v1354_v22 = vadd.f32 1.0, %v2383_v4  ;;  %v1416_v15 = vmul.f32 %v1352_v18, %v1160_v33 }
 0x2f6   : > { %v1417_v41 = vmul.f32 %v1353_v14, %v1161_v13  ;;  %v1232_v16 = vmul.f32 0.70710677, %v3527_v23  ;;  %v3535_v2 = vadd.f32 %v1026_v8, %v3513_v58  ;;  %v1167_v4 = vmul.f32 0.5, %v3524_v48 }
 0x2f7   : > { %2392 = verf.f32 %v1231_v12  ;;  %v1233_v34 = vmul.f32 0.70710677, %v3531_v7  ;;  %v1418_v46 = vmul.f32 %v1354_v22, %v1162_v25  ;;  %v1169_v13 = vmul.f32 0.5, %v3531_v7 }
 0x2f8   : > { %2394 = verf.f32 %v1232_v16  ;;  %v1234_v5 = vmul.f32 0.70710677, %v3535_v2  ;;  %v1479_v47 = vpack.c.bf16 %v1417_v41, %v1415_v28  ;;  %v1168_v33 = vmul.f32 0.5, %v3527_v23 }
 0x2f9   : > { %v2385_v40 = vpop.eup %2384  ;;  %2396 = verf.f32 %v1233_v34  ;;  %v1480_v9 = vpack.c.bf16 %v1418_v46, %v1416_v15  ;;  %v1170_v12 = vmul.f32 0.5, %v3535_v2 }
 0x2fa   : > { %v2387_v55 = vpop.eup %2386  ;;  %v1355_v20 = vadd.f32 1.0, %v2385_v40  ;;  %2398 = verf.f32 %v1234_v5  ;;  %v1030_v38 = vpop.f32.mrb[12].mxu0 }
 0x2fb   : > { %v2389_v57 = vpop.eup %2388  ;;  %v1356_v42 = vadd.f32 1.0, %v2387_v55  ;;  %v3540_v37 = vadd.f32 %v1030_v38, %v3511_v36  ;;  %v1032_v50 = vpop.f32.mrb[13].mxu0  ;;  %1678 = vmatprep.mubr.bf16.mxu1 %v1480_v9 }
 0x2fc   : > { %v2391_v29 = vpop.eup %2390  ;;  %v1357_v31 = vadd.f32 1.0, %v2389_v57  ;;  %v3543_v27 = vadd.f32 %v1032_v50, %v3513_v58  ;;  %v1034_v39 = vpop.f32.mrb[14].mxu0  ;;  %1679 = vmatmul.mubr.bf16.vlgmr.msra.gmra.mrb[0].mxu1 %v1479_v47  ;;  %v1419_v52 = vmul.f32 %v1355_v20, %v1163_v60 }
 0x2fd   : > { %v1358_v19 = vadd.f32 1.0, %v2391_v29  ;;  %v1235_v62 = vmul.f32 0.70710677, %v3540_v37  ;;  %v1036_v10 = vpop.f32.mrb[15].mxu0  ;;  %v1035_v49 = vadd.f32 %v1034_v39, %v3511_v36  ;;  %v1420_v32 = vmul.f32 %v1356_v42, %v1164_v44 }
 0x2fe   : > { %v1421_v17 = vmul.f32 %v1357_v31, %v1165_v26  ;;  %v1236_v45 = vmul.f32 0.70710677, %v3543_v27  ;;  %v1037_v43 = vadd.f32 %v1036_v10, %v3513_v58  ;;  %v1171_v42 = vmul.f32 0.5, %v3540_v37 }
 0x2ff   : > { %v1422_v54 = vmul.f32 %v1358_v19, %v1166_v21  ;;  %2400 = verf.f32 %v1235_v62  ;;  %v1237_v11 = vmul.f32 0.70710677, %v1035_v49  ;;  %v1172_v31 = vmul.f32 0.5, %v3543_v27 }
 0x300   : > { %2402 = verf.f32 %v1236_v45  ;;  %v1481_v53 = vpack.c.bf16 %v1421_v17, %v1419_v52  ;;  %v1238_v0 = vmul.f32 0.70710677, %v1037_v43  ;;  %v1173_v39 = vmul.f32 0.5, %v1035_v49 }
 0x301   : > { %v2393_v63 = vpop.eup %2392  ;;  %v1482_v51 = vpack.c.bf16 %v1422_v54, %v1420_v32  ;;  %2404 = verf.f32 %v1237_v11  ;;  %v1174_v62 = vmul.f32 0.5, %v1037_v43 }
 0x302   : > { %v2395_v30 = vpop.eup %2394  ;;  %v1359_v1 = vadd.f32 1.0, %v2393_v63  ;;  %v1040_v6 = vpop.f32.mrb[16].mxu0  ;;  %2406 = verf.f32 %v1238_v0 }
 0x303   : > { %v2397_v56 = vpop.eup %2396  ;;  %v1360_v59 = vadd.f32 1.0, %v2395_v30  ;;  %v3550_v3 = vadd.f32 %v1040_v6, %v3511_v36  ;;  %v1042_v35 = vpop.f32.mrb[17].mxu0  ;;  %1686 = vmatprep.mubr.bf16.mxu1 %v1482_v51 }
 0x304   : > { %v2399_v61 = vpop.eup %2398  ;;  %v1361_v14 = vadd.f32 1.0, %v2397_v56  ;;  %v3555_v24 = vadd.f32 %v1042_v35, %v3513_v58  ;;  %v1044_v18 = vpop.f32.mrb[18].mxu0  ;;  %1687 = vmatmul.mubr.bf16.gmra.mrb[4].mxu1 %v1481_v53  ;;  %v1423_v25 = vmul.f32 %v1359_v1, %v1167_v4 }
 0x305   : > { %v1362_v8 = vadd.f32 1.0, %v2399_v61  ;;  %v1239_v22 = vmul.f32 0.70710677, %v3550_v3  ;;  %v1046_v41 = vpop.f32.mrb[19].mxu0  ;;  %v1045_v7 = vadd.f32 %v1044_v18, %v3511_v36  ;;  %v1424_v28 = vmul.f32 %v1360_v59, %v1168_v33 }
 0x306   : > { %v1425_v16 = vmul.f32 %v1361_v14, %v1169_v13  ;;  %v1240_v48 = vmul.f32 0.70710677, %v3555_v24  ;;  %v1047_v5 = vadd.f32 %v1046_v41, %v3513_v58  ;;  %v1175_v59 = vmul.f32 0.5, %v3550_v3 }
 0x307   : > { %v1426_v34 = vmul.f32 %v1362_v8, %v1170_v12  ;;  %2408 = verf.f32 %v1239_v22  ;;  %v1241_v23 = vmul.f32 0.70710677, %v1045_v7  ;;  %v1176_v14 = vmul.f32 0.5, %v3555_v24 }
 0x308   : > { %2410 = verf.f32 %v1240_v48  ;;  %v1483_v15 = vpack.c.bf16 %v1425_v16, %v1423_v25  ;;  %v1242_v46 = vmul.f32 0.70710677, %v1047_v5  ;;  %v1177_v18 = vmul.f32 0.5, %v1045_v7 }
 0x309   : > { %v2401_v2 = vpop.eup %2400  ;;  %v1484_v40 = vpack.c.bf16 %v1426_v34, %v1424_v28  ;;  %2412 = verf.f32 %v1241_v23  ;;  %v1178_v22 = vmul.f32 0.5, %v1047_v5 }
 0x30a   : > { %v2403_v47 = vpop.eup %2402  ;;  %v1050_v55 = vpop.f32.mrb[20].mxu0  ;;  %v1363_v20 = vadd.f32 1.0, %v2401_v2  ;;  %2414 = verf.f32 %v1242_v46 }
 0x30b   : > { %v3564_v38 = vadd.f32 %v1050_v55, %v3511_v36  ;;  %v1052_v9 = vpop.f32.mrb[21].mxu0  ;;  %1694 = vmatprep.mubr.bf16.mxu1 %v1484_v40  ;;  %v2405_v57 = vpop.eup %2404  ;;  %v1364_v50 = vadd.f32 1.0, %v2403_v47 }
 0x30c   : > { %v3568_v29 = vadd.f32 %v1052_v9, %v3513_v58  ;;  %v1054_v60 = vpop.f32.mrb[22].mxu0  ;;  %v2407_v26 = vpop.eup %2406  ;;  %v1365_v44 = vadd.f32 1.0, %v2405_v57  ;;  %1695 = vmatmul.mubr.bf16.gmra.mrb[8].mxu1 %v1483_v15  ;;  %v1427_v17 = vmul.f32 %v1363_v20, %v1171_v42 }
 0x30d   : > { %v1243_v21 = vmul.f32 0.70710677, %v3564_v38  ;;  %v1056_v19 = vpop.f32.mrb[23].mxu0  ;;  %v1366_v10 = vadd.f32 1.0, %v2407_v26  ;;  %v3574_v37 = vadd.f32 %v1054_v60, %v3511_v36  ;;  %v1428_v27 = vmul.f32 %v1364_v50, %v1172_v31 }
 0x30e   : > { %v1244_v52 = vmul.f32 0.70710677, %v3568_v29  ;;  %v1429_v45 = vmul.f32 %v1365_v44, %v1173_v39  ;;  %v3577_v32 = vadd.f32 %v1056_v19, %v3513_v58  ;;  %v1179_v57 = vmul.f32 0.5, %v3564_v38 }
 0x30f   : > { %2416 = verf.f32 %v1243_v21  ;;  %v1430_v49 = vmul.f32 %v1366_v10, %v1174_v62  ;;  %v1245_v54 = vmul.f32 0.70710677, %v3574_v37  ;;  %v1180_v31 = vmul.f32 0.5, %v3568_v29 }
 0x310   : > { %2418 = verf.f32 %v1244_v52  ;;  %v1246_v43 = vmul.f32 0.70710677, %v3577_v32  ;;  %v1485_v53 = vpack.c.bf16 %v1429_v45, %v1427_v17  ;;  %v1181_v39 = vmul.f32 0.5, %v3574_v37 }
 0x311   : > { %v2409_v11 = vpop.eup %2408  ;;  %2420 = verf.f32 %v1245_v54  ;;  %v1486_v51 = vpack.c.bf16 %v1430_v49, %v1428_v27  ;;  %v1182_v62 = vmul.f32 0.5, %v3577_v32 }
 0x312   : > { %v2411_v63 = vpop.eup %2410  ;;  %v1060_v0 = vpop.f32.mrb[24].mxu0  ;;  %v1367_v30 = vadd.f32 1.0, %v2409_v11  ;;  %2422 = verf.f32 %v1246_v43 }
 0x313   : > { %v3582_v1 = vadd.f32 %v1060_v0, %v3511_v36  ;;  %v1062_v6 = vpop.f32.mrb[25].mxu0  ;;  %v2413_v56 = vpop.eup %2412  ;;  %v1368_v35 = vadd.f32 1.0, %v2411_v63  ;;  %1702 = vmatprep.mubr.bf16.mxu1 %v1486_v51 }
 0x314   : > { %v3586_v61 = vadd.f32 %v1062_v6, %v3513_v58  ;;  %v1064_v4 = vpop.f32.mrb[26].mxu0  ;;  %v2415_v13 = vpop.eup %2414  ;;  %v1369_v33 = vadd.f32 1.0, %v2413_v56  ;;  %1703 = vmatmul.mubr.bf16.gmra.mrb[12].mxu1 %v1485_v53  ;;  %v1431_v16 = vmul.f32 %v1367_v30, %v1175_v59 }
 0x315   : > { %v1247_v12 = vmul.f32 0.70710677, %v3582_v1  ;;  %v1066_v8 = vpop.f32.mrb[27].mxu0  ;;  %v1370_v41 = vadd.f32 1.0, %v2415_v13  ;;  %v3592_v3 = vadd.f32 %v1064_v4, %v3511_v36  ;;  %v1432_v24 = vmul.f32 %v1368_v35, %v1176_v14 }
 0x316   : > { %v1248_v25 = vmul.f32 0.70710677, %v3586_v61  ;;  %v1433_v48 = vmul.f32 %v1369_v33, %v1177_v18  ;;  %v3595_v28 = vadd.f32 %v1066_v8, %v3513_v58  ;;  %v1183_v56 = vmul.f32 0.5, %v3582_v1 }
 0x317   : > { %2424 = verf.f32 %v1247_v12  ;;  %v1434_v7 = vmul.f32 %v1370_v41, %v1178_v22  ;;  %v1249_v34 = vmul.f32 0.70710677, %v3592_v3  ;;  %v1184_v14 = vmul.f32 0.5, %v3586_v61 }
 0x318   : > { %2426 = verf.f32 %v1248_v25  ;;  %v1250_v5 = vmul.f32 0.70710677, %v3595_v28  ;;  %v1487_v15 = vpack.c.bf16 %v1433_v48, %v1431_v16  ;;  %v1185_v18 = vmul.f32 0.5, %v3592_v3 }
 0x319   : > { %v2417_v23 = vpop.eup %2416  ;;  %2428 = verf.f32 %v1249_v34  ;;  %v1488_v40 = vpack.c.bf16 %v1434_v7, %v1432_v24  ;;  %v1186_v22 = vmul.f32 0.5, %v3595_v28 }
 0x31a   : > { %v2419_v2 = vpop.eup %2418  ;;  %v1070_v46 = vpop.f32.mrb[28].mxu0  ;;  %v1371_v47 = vadd.f32 1.0, %v2417_v23  ;;  %2430 = verf.f32 %v1250_v5 }
 0x31b   : > { %v3600_v55 = vadd.f32 %v1070_v46, %v3511_v36  ;;  %v1072_v20 = vpop.f32.mrb[29].mxu0  ;;  %v2421_v9 = vpop.eup %2420  ;;  %v1372_v42 = vadd.f32 1.0, %v2419_v2  ;;  %1710 = vmatprep.mubr.bf16.mxu1 %v1488_v40 }
 0x31c   : > { %v3604_v50 = vadd.f32 %v1072_v20, %v3513_v58  ;;  %v1074_v60 = vpop.f32.mrb[30].mxu0  ;;  %v2423_v26 = vpop.eup %2422  ;;  %v1373_v44 = vadd.f32 1.0, %v2421_v9  ;;  %1711 = vmatmul.mubr.bf16.gmra.mrb[16].mxu1 %v1487_v15  ;;  %v1435_v17 = vmul.f32 %v1371_v47, %v1179_v57 }
 0x31d   : > { %v1251_v21 = vmul.f32 0.70710677, %v3600_v55  ;;  %v1076_v19 = vpop.f32.mrb[31].mxu0  ;;  %v1374_v10 = vadd.f32 1.0, %v2423_v26  ;;  %v3612_v52 = vadd.f32 %v1074_v60, %v3511_v36  ;;  %v1436_v37 = vmul.f32 %v1372_v42, %v1180_v31 }
 0x31e   : > { %v1252_v38 = vmul.f32 0.70710677, %v3604_v50  ;;  %v1437_v45 = vmul.f32 %v1373_v44, %v1181_v39  ;;  %v3615_v29 = vadd.f32 %v1076_v19, %v3513_v58  ;;  %v1187_v9 = vmul.f32 0.5, %v3600_v55 }
 0x31f   : > { %2432 = verf.f32 %v1251_v21  ;;  %v1438_v27 = vmul.f32 %v1374_v10, %v1182_v62  ;;  %v1253_v49 = vmul.f32 0.70710677, %v3612_v52  ;;  %v1188_v31 = vmul.f32 0.5, %v3604_v50 }
 0x320   : > { %2434 = verf.f32 %v1252_v38  ;;  %v1254_v32 = vmul.f32 0.70710677, %v3615_v29  ;;  %v1489_v11 = vpack.c.bf16 %v1437_v45, %v1435_v17  ;;  %v1189_v39 = vmul.f32 0.5, %v3612_v52 }
 0x321   : > { %v2425_v54 = vpop.eup %2424  ;;  %2436 = verf.f32 %v1253_v49  ;;  %v1490_v63 = vpack.c.bf16 %v1438_v27, %v1436_v37  ;;  %v1190_v62 = vmul.f32 0.5, %v3615_v29 }
 0x322   : > { %v2427_v43 = vpop.eup %2426  ;;  %v1080_v53 = vpop.f32.mrb[32].mxu0  ;;  %v1375_v0 = vadd.f32 1.0, %v2425_v54  ;;  %2438 = verf.f32 %v1254_v32 }
 0x323   : > { %v3620_v51 = vadd.f32 %v1080_v53, %v3511_v36  ;;  %v1082_v30 = vpop.f32.mrb[33].mxu0  ;;  %v2429_v6 = vpop.eup %2428  ;;  %v1376_v59 = vadd.f32 1.0, %v2427_v43  ;;  %1718 = vmatprep.mubr.bf16.mxu1 %v1490_v63 }
 0x324   : > { %v3624_v35 = vadd.f32 %v1082_v30, %v3513_v58  ;;  %v1084_v4 = vpop.f32.mrb[34].mxu0  ;;  %v2431_v13 = vpop.eup %2430  ;;  %v1377_v33 = vadd.f32 1.0, %v2429_v6  ;;  %1719 = vmatmul.mubr.bf16.gmra.mrb[20].mxu1 %v1489_v11  ;;  %v1439_v16 = vmul.f32 %v1375_v0, %v1183_v56 }
 0x325   : > { %v1255_v12 = vmul.f32 0.70710677, %v3620_v51  ;;  %v1086_v8 = vpop.f32.mrb[35].mxu0  ;;  %v1378_v41 = vadd.f32 1.0, %v2431_v13  ;;  %v1085_v25 = vadd.f32 %v1084_v4, %v3511_v36  ;;  %v1440_v61 = vmul.f32 %v1376_v59, %v1184_v14 }
 0x326   : > { %v1256_v1 = vmul.f32 0.70710677, %v3624_v35  ;;  %v1441_v48 = vmul.f32 %v1377_v33, %v1185_v18  ;;  %v1087_v24 = vadd.f32 %v1086_v8, %v3513_v58  ;;  %v1191_v30 = vmul.f32 0.5, %v3620_v51 }
 0x327   : > { %2440 = verf.f32 %v1255_v12  ;;  %v1442_v7 = vmul.f32 %v1378_v41, %v1186_v22  ;;  %v1257_v3 = vmul.f32 0.70710677, %v1085_v25  ;;  %v1193_v6 = vmul.f32 0.5, %v1085_v25 }
 0x328   : > { %2442 = verf.f32 %v1256_v1  ;;  %v1258_v23 = vmul.f32 0.70710677, %v1087_v24  ;;  %v1491_v5 = vpack.c.bf16 %v1441_v48, %v1439_v16  ;;  %v1192_v59 = vmul.f32 0.5, %v3624_v35 }
 0x329   : > { %v2433_v34 = vpop.eup %2432  ;;  %2444 = verf.f32 %v1257_v3  ;;  %v1492_v2 = vpack.c.bf16 %v1442_v7, %v1440_v61  ;;  %v1194_v4 = vmul.f32 0.5, %v1087_v24 }
 0x32a   : > { %v2435_v15 = vpop.eup %2434  ;;  %v1090_v28 = vpop.f32.mrb[36].mxu0  ;;  %v1379_v46 = vadd.f32 1.0, %v2433_v34  ;;  %2446 = verf.f32 %v1258_v23 }
 0x32b   : > { %v1091_v40 = vadd.f32 %v1090_v28, %v3511_v36  ;;  %v1092_v47 = vpop.f32.mrb[37].mxu0  ;;  %v2437_v20 = vpop.eup %2436  ;;  %v1380_v57 = vadd.f32 1.0, %v2435_v15  ;;  %1726 = vmatprep.mubr.bf16.mxu1 %v1492_v2 }
 0x32c   : > { %v1093_v42 = vadd.f32 %v1092_v47, %v3513_v58  ;;  %v1094_v60 = vpop.f32.mrb[38].mxu0  ;;  %v2439_v26 = vpop.eup %2438  ;;  %v1381_v44 = vadd.f32 1.0, %v2437_v20  ;;  %1727 = vmatmul.mubr.bf16.gmra.mrb[24].mxu1 %v1491_v5  ;;  %v1443_v17 = vmul.f32 %v1379_v46, %v1187_v9 }
 0x32d   : > { %v1259_v21 = vmul.f32 0.70710677, %v1091_v40  ;;  %v1096_v19 = vpop.f32.mrb[39].mxu0  ;;  %v1382_v10 = vadd.f32 1.0, %v2439_v26  ;;  %v1095_v55 = vadd.f32 %v1094_v60, %v3511_v36  ;;  %v1444_v27 = vmul.f32 %v1380_v57, %v1188_v31 }
 0x32e   : > { %v1260_v38 = vmul.f32 0.70710677, %v1093_v42  ;;  %v1445_v45 = vmul.f32 %v1381_v44, %v1189_v39  ;;  %v1097_v37 = vadd.f32 %v1096_v19, %v3513_v58  ;;  %v1195_v25 = vmul.f32 0.5, %v1091_v40 }
 0x32f   : > { %2448 = verf.f32 %v1259_v21  ;;  %v1446_v49 = vmul.f32 %v1382_v10, %v1190_v62  ;;  %v1261_v50 = vmul.f32 0.70710677, %v1095_v55  ;;  %v1197_v7 = vmul.f32 0.5, %v1095_v55 }
 0x330   : > { %2450 = verf.f32 %v1260_v38  ;;  %v1262_v54 = vmul.f32 0.70710677, %v1097_v37  ;;  %v1493_v32 = vpack.c.bf16 %v1445_v45, %v1443_v17  ;;  %v1196_v35 = vmul.f32 0.5, %v1093_v42 }
 0x331   : > { %v2441_v52 = vpop.eup %2440  ;;  %2452 = verf.f32 %v1261_v50  ;;  %v1494_v43 = vpack.c.bf16 %v1446_v49, %v1444_v27  ;;  %v1198_v24 = vmul.f32 0.5, %v1097_v37 }
 0x332   : > { %v2443_v11 = vpop.eup %2442  ;;  %v1383_v29 = vadd.f32 1.0, %v2441_v52  ;;  %2454 = verf.f32 %v1262_v54 }
 0x333   : > { %v2445_v53 = vpop.eup %2444  ;;  %v1384_v63 = vadd.f32 1.0, %v2443_v11  ;;  %1734 = vmatprep.mubr.bf16.mxu1 %v1494_v43 }
 0x334   : > { %v2447_v0 = vpop.eup %2446  ;;  %v1385_v56 = vadd.f32 1.0, %v2445_v53  ;;  %1735 = vmatmul.mubr.bf16.gmra.mrb[28].mxu1 %v1493_v32  ;;  %v1447_v14 = vmul.f32 %v1383_v29, %v1191_v30 }
 0x335   : > { %v1386_v13 = vadd.f32 1.0, %v2447_v0  ;;  %v1448_v33 = vmul.f32 %v1384_v63, %v1192_v59 }
 0x336   : > { %v1449_v18 = vmul.f32 %v1385_v56, %v1193_v6 }
 0x337   : > { %v1450_v12 = vmul.f32 %v1386_v13, %v1194_v4 }
 0x338   : > { %v1495_v22 = vpack.c.bf16 %v1449_v18, %v1447_v14 }
 0x339   : > { %v2449_v8 = vpop.eup %2448  ;;  %v1496_v1 = vpack.c.bf16 %v1450_v12, %v1448_v33 }
 0x33a   : > { %v2451_v41 = vpop.eup %2450  ;;  %v1387_v16 = vadd.f32 1.0, %v2449_v8 }
 0x33b   : > { %v2453_v48 = vpop.eup %2452  ;;  %v1388_v61 = vadd.f32 1.0, %v2451_v41  ;;  %1742 = vmatprep.mubr.bf16.mxu1 %v1496_v1 }
 0x33c   : > { %v2455_v51 = vpop.eup %2454  ;;  %v1389_v3 = vadd.f32 1.0, %v2453_v48  ;;  %1743 = vmatmul.mubr.bf16.gmra.mrb[32].mxu1 %v1495_v22  ;;  %v1451_v23 = vmul.f32 %v1387_v16, %v1195_v25 }
 0x33d   : > { %v1390_v34 = vadd.f32 1.0, %v2455_v51  ;;  %v1452_v15 = vmul.f32 %v1388_v61, %v1196_v35 }
 0x33e   : > { %v1453_v5 = vmul.f32 %v1389_v3, %v1197_v7 }
 0x33f   : > { %v1454_v28 = vmul.f32 %v1390_v34, %v1198_v24 }
 0x340   : > { %v1497_v2 = vpack.c.bf16 %v1453_v5, %v1451_v23 }
 0x341   : > { %v1498_v46 = vpack.c.bf16 %v1454_v28, %v1452_v15 }
 0x343   : > { %1750 = vmatprep.mubr.bf16.mxu1 %v1498_v46 }
 0x344   : > { %1751 = vmatmul.mubr.bf16.gmra.mrb[36].mxu1 %v1497_v2 }
 0x37a   : > { %v1100_v47 = vpop.f32.mrb[40].mxu0 }
 0x37b   : > { %v1101_v20 = vadd.f32 %v1100_v47, %v3511_v36  ;;  %v1102_v9 = vpop.f32.mrb[41].mxu0 }
 0x37c   : > { %v1103_v40 = vadd.f32 %v1102_v9, %v3513_v58  ;;  %v1104_v57 = vpop.f32.mrb[42].mxu0 }
 0x37d   : > { %v1263_v60 = vmul.f32 0.70710677, %v1101_v20  ;;  %v1105_v42 = vadd.f32 %v1104_v57, %v3511_v36  ;;  %v1106_v26 = vpop.f32.mrb[43].mxu0  ;;  %v1199_v6 = vmul.f32 0.5, %v1101_v20 }
 0x37e   : > { %v1264_v31 = vmul.f32 0.70710677, %v1103_v40  ;;  %v1107_v39 = vadd.f32 %v1106_v26, %v3513_v58  ;;  %v1200_v14 = vmul.f32 0.5, %v1103_v40 }
 0x37f   : > { %2456 = verf.f32 %v1263_v60  ;;  %v1265_v44 = vmul.f32 0.70710677, %v1105_v42  ;;  %v1201_v56 = vmul.f32 0.5, %v1105_v42 }
 0x380   : > { %2458 = verf.f32 %v1264_v31  ;;  %v1266_v21 = vmul.f32 0.70710677, %v1107_v39  ;;  %v1202_v18 = vmul.f32 0.5, %v1107_v39 }
 0x381   : > { %2460 = verf.f32 %v1265_v44 }
 0x382   : > { %2462 = verf.f32 %v1266_v21  ;;  %v1110_v19 = vpop.f32.mrb[44].mxu0 }
 0x383   : > { %v1111_v62 = vadd.f32 %v1110_v19, %v3511_v36  ;;  %v1112_v10 = vpop.f32.mrb[45].mxu0 }
 0x384   : > { %v1113_v38 = vadd.f32 %v1112_v10, %v3513_v58  ;;  %v1114_v55 = vpop.f32.mrb[46].mxu0 }
 0x385   : > { %v1267_v17 = vmul.f32 0.70710677, %v1111_v62  ;;  %v1115_v45 = vadd.f32 %v1114_v55, %v3511_v36  ;;  %v1116_v37 = vpop.f32.mrb[47].mxu0  ;;  %v1203_v20 = vmul.f32 0.5, %v1111_v62 }
 0x386   : > { %v1268_v27 = vmul.f32 0.70710677, %v1113_v38  ;;  %v1117_v49 = vadd.f32 %v1116_v37, %v3513_v58  ;;  %v1204_v42 = vmul.f32 0.5, %v1113_v38 }
 0x387   : > { %2464 = verf.f32 %v1267_v17  ;;  %v1269_v50 = vmul.f32 0.70710677, %v1115_v45  ;;  %v1205_v9 = vmul.f32 0.5, %v1115_v45 }
 0x388   : > { %2466 = verf.f32 %v1268_v27  ;;  %v1270_v52 = vmul.f32 0.70710677, %v1117_v49  ;;  %v1206_v26 = vmul.f32 0.5, %v1117_v49 }
 0x389   : > { %v2457_v54 = vpop.eup %2456  ;;  %2468 = verf.f32 %v1269_v50 }
 0x38a   : > { %v2459_v32 = vpop.eup %2458  ;;  %v1391_v11 = vadd.f32 1.0, %v2457_v54  ;;  %2470 = verf.f32 %v1270_v52  ;;  %v1120_v43 = vpop.f32.mrb[48].mxu0 }
 0x38b   : > { %v2461_v29 = vpop.eup %2460  ;;  %v1392_v53 = vadd.f32 1.0, %v2459_v32  ;;  %v3652_v63 = vadd.f32 %v1120_v43, %v3511_v36  ;;  %v1122_v0 = vpop.f32.mrb[49].mxu0 }
 0x38c   : > { %v2463_v30 = vpop.eup %2462  ;;  %v1393_v59 = vadd.f32 1.0, %v2461_v29  ;;  %v3655_v4 = vadd.f32 %v1122_v0, %v3513_v58  ;;  %v1124_v13 = vpop.f32.mrb[50].mxu0  ;;  %v1455_v22 = vmul.f32 %v1391_v11, %v1199_v6 }
 0x38d   : > { %v1394_v33 = vadd.f32 1.0, %v2463_v30  ;;  %v1271_v12 = vmul.f32 0.70710677, %v3652_v63  ;;  %v1126_v8 = vpop.f32.mrb[51].mxu0  ;;  %v1125_v16 = vadd.f32 %v1124_v13, %v3511_v36  ;;  %v1456_v48 = vmul.f32 %v1392_v53, %v1200_v14 }
 0x38e   : > { %v1457_v41 = vmul.f32 %v1393_v59, %v1201_v56  ;;  %v1272_v1 = vmul.f32 0.70710677, %v3655_v4  ;;  %v1127_v51 = vadd.f32 %v1126_v8, %v3513_v58  ;;  %v1207_v53 = vmul.f32 0.5, %v3652_v63 }
 0x38f   : > { %v1458_v61 = vmul.f32 %v1394_v33, %v1202_v18  ;;  %2472 = verf.f32 %v1271_v12  ;;  %v1273_v25 = vmul.f32 0.70710677, %v1125_v16  ;;  %v1208_v59 = vmul.f32 0.5, %v3655_v4 }
 0x390   : > { %2474 = verf.f32 %v1272_v1  ;;  %v1499_v7 = vpack.c.bf16 %v1457_v41, %v1455_v22  ;;  %v1274_v35 = vmul.f32 0.70710677, %v1127_v51  ;;  %v1209_v13 = vmul.f32 0.5, %v1125_v16 }
 0x391   : > { %v2465_v3 = vpop.eup %2464  ;;  %v1500_v24 = vpack.c.bf16 %v1458_v61, %v1456_v48  ;;  %2476 = verf.f32 %v1273_v25  ;;  %v1210_v12 = vmul.f32 0.5, %v1127_v51 }
 0x392   : > { %v2467_v34 = vpop.eup %2466  ;;  %v1395_v23 = vadd.f32 1.0, %v2465_v3  ;;  %v1130_v5 = vpop.f32.mrb[52].mxu0  ;;  %2478 = verf.f32 %v1274_v35 }
 0x393   : > { %v2469_v15 = vpop.eup %2468  ;;  %v1396_v28 = vadd.f32 1.0, %v2467_v34  ;;  %v3662_v2 = vadd.f32 %v1130_v5, %v3511_v36  ;;  %v1132_v46 = vpop.f32.mrb[53].mxu0  ;;  %1758 = vmatprep.mubr.bf16.mxu1 %v1500_v24 }
 0x394   : > { %v2471_v47 = vpop.eup %2470  ;;  %v1397_v40 = vadd.f32 1.0, %v2469_v15  ;;  %v3665_v57 = vadd.f32 %v1132_v46, %v3513_v58  ;;  %v1134_v60 = vpop.f32.mrb[54].mxu0  ;;  %1759 = vmatmul.mubr.bf16.gmra.mrb[40].mxu1 %v1499_v7  ;;  %v1459_v21 = vmul.f32 %v1395_v23, %v1203_v20 }
 0x395   : > { %v1398_v31 = vadd.f32 1.0, %v2471_v47  ;;  %v1275_v39 = vmul.f32 0.70710677, %v3662_v2  ;;  %v1136_v44 = vpop.f32.mrb[55].mxu0  ;;  %v1135_v55 = vadd.f32 %v1134_v60, %v3511_v36  ;;  %v1460_v62 = vmul.f32 %v1396_v28, %v1204_v42 }
 0x396   : > { %v1461_v19 = vmul.f32 %v1397_v40, %v1205_v9  ;;  %v1276_v10 = vmul.f32 0.70710677, %v3665_v57  ;;  %v1137_v45 = vadd.f32 %v1136_v44, %v3513_v58  ;;  %v1211_v28 = vmul.f32 0.5, %v3662_v2 }
 0x397   : > { %v1462_v17 = vmul.f32 %v1398_v31, %v1206_v26  ;;  %2480 = verf.f32 %v1275_v39  ;;  %v1277_v37 = vmul.f32 0.70710677, %v1135_v55  ;;  %v1212_v40 = vmul.f32 0.5, %v3665_v57 }
 0x398   : > { %2482 = verf.f32 %v1276_v10  ;;  %v1501_v27 = vpack.c.bf16 %v1461_v19, %v1459_v21  ;;  %v1278_v49 = vmul.f32 0.70710677, %v1137_v45  ;;  %v1213_v60 = vmul.f32 0.5, %v1135_v55 }
 0x399   : > { %v2473_v38 = vpop.eup %2472  ;;  %v1502_v50 = vpack.c.bf16 %v1462_v17, %v1460_v62  ;;  %2484 = verf.f32 %v1277_v37  ;;  %v1214_v39 = vmul.f32 0.5, %v1137_v45 }
 0x39a   : > { %v2475_v52 = vpop.eup %2474  ;;  %v1140_v54 = vpop.f32.mrb[56].mxu0  ;;  %v1399_v32 = vadd.f32 1.0, %v2473_v38  ;;  %2486 = verf.f32 %v1278_v49 }
 0x39b   : > { %v3672_v11 = vadd.f32 %v1140_v54, %v3511_v36  ;;  %v1142_v43 = vpop.f32.mrb[57].mxu0  ;;  %1766 = vmatprep.mubr.bf16.mxu1 %v1502_v50  ;;  %v2477_v29 = vpop.eup %2476  ;;  %v1400_v0 = vadd.f32 1.0, %v2475_v52 }
 0x39c   : > { %v3676_v30 = vadd.f32 %v1142_v43, %v3513_v58  ;;  %v1144_v6 = vpop.f32.mrb[58].mxu0  ;;  %1767 = vmatmul.mubr.bf16.gmra.mrb[44].mxu1 %v1501_v27  ;;  %v2479_v56 = vpop.eup %2478  ;;  %v1401_v14 = vadd.f32 1.0, %v2477_v29  ;;  %v1463_v41 = vmul.f32 %v1399_v32, %v1207_v53 }
 0x39d   : > { %v1279_v18 = vmul.f32 0.70710677, %v3672_v11  ;;  %v1146_v33 = vpop.f32.mrb[59].mxu0  ;;  %v1402_v8 = vadd.f32 1.0, %v2479_v56  ;;  %v1145_v63 = vadd.f32 %v1144_v6, %v3511_v36  ;;  %v1464_v61 = vmul.f32 %v1400_v0, %v1208_v59 }
 0x39e   : > { %v1280_v22 = vmul.f32 0.70710677, %v3676_v30  ;;  %v1465_v1 = vmul.f32 %v1401_v14, %v1209_v13  ;;  %v1147_v48 = vadd.f32 %v1146_v33, %v3513_v58  ;;  %v1215_v32 = vmul.f32 0.5, %v3672_v11 }
 0x39f   : > { %2488 = verf.f32 %v1279_v18  ;;  %v1466_v25 = vmul.f32 %v1402_v8, %v1210_v12  ;;  %v1281_v4 = vmul.f32 0.70710677, %v1145_v63  ;;  %v1217_v43 = vmul.f32 0.5, %v1145_v63 }
 0x3a0   : > { %2490 = verf.f32 %v1280_v22  ;;  %v1282_v7 = vmul.f32 0.70710677, %v1147_v48  ;;  %v1503_v3 = vpack.c.bf16 %v1465_v1, %v1463_v41  ;;  %v1216_v29 = vmul.f32 0.5, %v3676_v30 }
 0x3a1   : > { %v2481_v16 = vpop.eup %2480  ;;  %2492 = verf.f32 %v1281_v4  ;;  %v1504_v24 = vpack.c.bf16 %v1466_v25, %v1464_v61  ;;  %v1218_v53 = vmul.f32 0.5, %v1147_v48 }
 0x3a2   : > { %v2483_v35 = vpop.eup %2482  ;;  %v1150_v51 = vpop.f32.mrb[60].mxu0  ;;  %v1403_v34 = vadd.f32 1.0, %v2481_v16  ;;  %2494 = verf.f32 %v1282_v7 }
 0x3a3   : > { %v1151_v23 = vadd.f32 %v1150_v51, %v3511_v36  ;;  %v1152_v5 = vpop.f32.mrb[61].mxu0  ;;  %v2485_v15 = vpop.eup %2484  ;;  %v1404_v46 = vadd.f32 1.0, %v2483_v35  ;;  %1774 = vmatprep.mubr.bf16.mxu1 %v1504_v24 }
 0x3a4   : > { %v1153_v47 = vadd.f32 %v1152_v5, %v3513_v58  ;;  %v1154_v20 = vpop.f32.mrb[62].mxu0  ;;  %v2487_v9 = vpop.eup %2486  ;;  %v1405_v42 = vadd.f32 1.0, %v2485_v15  ;;  %1775 = vmatmul.mubr.bf16.gmra.mrb[48].mxu1 %v1503_v3  ;;  %v1467_v10 = vmul.f32 %v1403_v34, %v1211_v28  ;;  %v3691_v34 = vld [vmem:[#allocation13] ss:$0 sm:$0xff] }
 0x3a5   : > { %v1283_v26 = vmul.f32 0.70710677, %v1151_v23  ;;  %v1156_v31 = vpop.f32.mrb[63].mxu0  ;;  %v1406_v44 = vadd.f32 1.0, %v2487_v9  ;;  %v1155_v19 = vadd.f32 %v1154_v20, %v3511_v36  ;;  %v1468_v17 = vmul.f32 %v1404_v46, %v1212_v40 }
 0x3a6   : > { %v1284_v21 = vmul.f32 0.70710677, %v1153_v47  ;;  %v1469_v2 = vmul.f32 %v1405_v42, %v1213_v60  ;;  %v1157_v62 = vadd.f32 %v1156_v31, %v3513_v58  ;;  %v1219_v63 = vmul.f32 0.5, %v1151_v23 }
 0x3a7   : > { %2496 = verf.f32 %v1283_v26  ;;  %v1470_v37 = vmul.f32 %v1406_v44, %v1214_v39  ;;  %v1285_v27 = vmul.f32 0.70710677, %v1155_v19  ;;  %v1221_v1 = vmul.f32 0.5, %v1155_v19 }
 0x3a8   : > { %2498 = verf.f32 %v1284_v21  ;;  %v1286_v55 = vmul.f32 0.70710677, %v1157_v62  ;;  %v1505_v38 = vpack.c.bf16 %v1469_v2, %v1467_v10  ;;  %v1220_v30 = vmul.f32 0.5, %v1153_v47 }
 0x3a9   : > { %v2489_v57 = vpop.eup %2488  ;;  %2500 = verf.f32 %v1285_v27  ;;  %v1506_v50 = vpack.c.bf16 %v1470_v37, %v1468_v17  ;;  %v1222_v48 = vmul.f32 0.5, %v1157_v62 }
 0x3aa   : > { %v2491_v49 = vpop.eup %2490  ;;  %v1407_v45 = vadd.f32 1.0, %v2489_v57  ;;  %2502 = verf.f32 %v1286_v55 }
 0x3ab   : > { %v2493_v52 = vpop.eup %2492  ;;  %v1408_v54 = vadd.f32 1.0, %v2491_v49  ;;  %1782 = vmatprep.mubr.bf16.mxu1 %v1506_v50 }
 0x3ac   : > { %v2495_v36 = vpop.eup %2494  ;;  %v1409_v58 = vadd.f32 1.0, %v2493_v52  ;;  %1783 = vmatmul.mubr.bf16.gmra.mrb[52].mxu1 %v1505_v38  ;;  %v1471_v6 = vmul.f32 %v1407_v45, %v1215_v32 }
 0x3ad   : > { %v1410_v0 = vadd.f32 1.0, %v2495_v36  ;;  %v1472_v59 = vmul.f32 %v1408_v54, %v1216_v29 }
 0x3ae   : > { %v1473_v56 = vmul.f32 %v1409_v58, %v1217_v43 }
 0x3af   : > { %v1474_v13 = vmul.f32 %v1410_v0, %v1218_v53 }
 0x3b0   : > { %v1507_v18 = vpack.c.bf16 %v1473_v56, %v1471_v6 }
 0x3b1   : > { %v2497_v14 = vpop.eup %2496  ;;  %v1508_v12 = vpack.c.bf16 %v1474_v13, %v1472_v59 }
 0x3b2   : > { %v2499_v33 = vpop.eup %2498  ;;  %v1411_v8 = vadd.f32 1.0, %v2497_v14 }
 0x3b3   : > { %v2501_v22 = vpop.eup %2500  ;;  %v1412_v41 = vadd.f32 1.0, %v2499_v33  ;;  %1790 = vmatprep.mubr.bf16.mxu1 %v1508_v12 }
 0x3b4   : > { %v2503_v11 = vpop.eup %2502  ;;  %v1413_v61 = vadd.f32 1.0, %v2501_v22  ;;  %1791 = vmatmul.mubr.bf16.gmra.mrb[56].mxu1 %v1507_v18  ;;  %v1475_v4 = vmul.f32 %v1411_v8, %v1219_v63 }
 0x3b5   : > { %v1414_v25 = vadd.f32 1.0, %v2503_v11  ;;  %v1476_v7 = vmul.f32 %v1412_v41, %v1220_v30 }
 0x3b6   : > { %v1477_v16 = vmul.f32 %v1413_v61, %v1221_v1 }
 0x3b7   : > { %v1478_v3 = vmul.f32 %v1414_v25, %v1222_v48 }
 0x3b8   : > { %v1509_v35 = vpack.c.bf16 %v1477_v16, %v1475_v4 }
 0x3b9   : > { %v1510_v51 = vpack.c.bf16 %v1478_v3, %v1476_v7 }
 0x3bb   : > { %1798 = vmatprep.mubr.bf16.mxu1 %v1510_v51 }
 0x3bc   : > { %1799 = vmatmul.mubr.bf16.gmra.mrb[60].mxu1 %v1509_v35 }
 0x3cf   : > { %v2062_v24 = vpop.f32.mrb[0].mxu1 }
 0x3d0   : > { %v2063_v5 = vpop.f32.mrb[1].mxu1 }
 0x3d1   : > { %v2064_v23 = vadd.f32 %v2063_v5, %v2062_v24  ;;  %v2065_v15 = vpop.f32.mrb[2].mxu1 }
 0x3d2   : > { %v2066_v28 = vpop.f32.mrb[3].mxu1 }
 0x3d3   : > { %v1681_v46 = vadd.f32 %v2064_v23, %v3691_v34  ;;  %v2067_v47 = vadd.f32 %v2066_v28, %v2065_v15 }
 0x3d5   : > { %1807 = vst [vmem:[%s3696_s8] sm:$0xff] %v1681_v46  ;;  %v1684_v20 = vadd.f32 %v2067_v47, %v3691_v34 }
 0x3d7   : > { %1808 = vst [vmem:[%s3696_s8 + $0x8] sm:$0xff] %v1684_v20  ;;  %v2068_v9 = vpop.f32.mrb[4].mxu1 }
 0x3d8   : > { %v2069_v40 = vpop.f32.mrb[5].mxu1 }
 0x3d9   : > { %v2070_v60 = vadd.f32 %v2069_v40, %v2068_v9  ;;  %v2071_v42 = vpop.f32.mrb[6].mxu1 }
 0x3da   : > { %v2072_v26 = vpop.f32.mrb[7].mxu1 }
 0x3db   : > { %v1689_v31 = vadd.f32 %v2070_v60, %v3691_v34  ;;  %v2073_v39 = vadd.f32 %v2072_v26, %v2071_v42 }
 0x3dd   : > { %1809 = vst [vmem:[%s3696_s8 + $0x10] sm:$0xff] %v1689_v31  ;;  %v1692_v44 = vadd.f32 %v2073_v39, %v3691_v34 }
 0x3df   : > { %1810 = vst [vmem:[%s3696_s8 + $0x18] sm:$0xff] %v1692_v44  ;;  %v2074_v21 = vpop.f32.mrb[8].mxu1 }
 0x3e0   : > { %v2075_v19 = vpop.f32.mrb[9].mxu1 }
 0x3e1   : > { %v2076_v10 = vadd.f32 %v2075_v19, %v2074_v21  ;;  %v2077_v2 = vpop.f32.mrb[10].mxu1 }
 0x3e2   : > { %v2078_v62 = vpop.f32.mrb[11].mxu1 }
 0x3e3   : > { %v1697_v17 = vadd.f32 %v2076_v10, %v3691_v34  ;;  %v2079_v37 = vadd.f32 %v2078_v62, %v2077_v2 }
 0x3e5   : > { %1811 = vst [vmem:[%s3696_s8 + $0x20] sm:$0xff] %v1697_v17  ;;  %v1700_v27 = vadd.f32 %v2079_v37, %v3691_v34 }
 0x3e7   : > { %1812 = vst [vmem:[%s3696_s8 + $0x28] sm:$0xff] %v1700_v27  ;;  %v2080_v57 = vpop.f32.mrb[12].mxu1 }
 0x3e8   : > { %v2081_v55 = vpop.f32.mrb[13].mxu1 }
 0x3e9   : > { %v2082_v38 = vadd.f32 %v2081_v55, %v2080_v57  ;;  %v2083_v49 = vpop.f32.mrb[14].mxu1 }
 0x3ea   : > { %v2084_v50 = vpop.f32.mrb[15].mxu1 }
 0x3eb   : > { %v1705_v45 = vadd.f32 %v2082_v38, %v3691_v34  ;;  %v2085_v52 = vadd.f32 %v2084_v50, %v2083_v49 }
 0x3ed   : > { %1813 = vst [vmem:[%s3696_s8 + $0x30] sm:$0xff] %v1705_v45  ;;  %v1708_v54 = vadd.f32 %v2085_v52, %v3691_v34 }
 0x3ef   : > { %1814 = vst [vmem:[%s3696_s8 + $0x38] sm:$0xff] %v1708_v54  ;;  %v2086_v36 = vpop.f32.mrb[16].mxu1 }
 0x3f0   : > { %v2087_v32 = vpop.f32.mrb[17].mxu1 }
 0x3f1   : > { %v2088_v43 = vadd.f32 %v2087_v32, %v2086_v36  ;;  %v2089_v58 = vpop.f32.mrb[18].mxu1 }
 0x3f2   : > { %v2090_v29 = vpop.f32.mrb[19].mxu1 }
 0x3f3   : > { %v1713_v53 = vadd.f32 %v2088_v43, %v3691_v34  ;;  %v2091_v0 = vadd.f32 %v2090_v29, %v2089_v58 }
 0x3f5   : > { %1815 = vst [vmem:[%s3696_s8 + $0x40] sm:$0xff] %v1713_v53  ;;  %v1716_v6 = vadd.f32 %v2091_v0, %v3691_v34 }
 0x3f7   : > { %1816 = vst [vmem:[%s3696_s8 + $0x48] sm:$0xff] %v1716_v6  ;;  %v2092_v56 = vpop.f32.mrb[20].mxu1 }
 0x3f8   : > { %v2093_v59 = vpop.f32.mrb[21].mxu1 }
 0x3f9   : > { %v2094_v13 = vadd.f32 %v2093_v59, %v2092_v56  ;;  %v2095_v14 = vpop.f32.mrb[22].mxu1 }
 0x3fa   : > { %v2096_v18 = vpop.f32.mrb[23].mxu1 }
 0x3fb   : > { %v1721_v33 = vadd.f32 %v2094_v13, %v3691_v34  ;;  %v2097_v12 = vadd.f32 %v2096_v18, %v2095_v14 }
 0x3fd   : > { %1817 = vst [vmem:[%s3696_s8 + $0x50] sm:$0xff] %v1721_v33  ;;  %v1724_v8 = vadd.f32 %v2097_v12, %v3691_v34 }
 0x3ff   : > { %1818 = vst [vmem:[%s3696_s8 + $0x58] sm:$0xff] %v1724_v8  ;;  %v2098_v22 = vpop.f32.mrb[24].mxu1 }
 0x400   : > { %v2099_v41 = vpop.f32.mrb[25].mxu1 }
 0x401   : > { %v2100_v11 = vadd.f32 %v2099_v41, %v2098_v22  ;;  %v2101_v63 = vpop.f32.mrb[26].mxu1 }
 0x402   : > { %v2102_v1 = vpop.f32.mrb[27].mxu1 }
 0x403   : > { %v1729_v61 = vadd.f32 %v2100_v11, %v3691_v34  ;;  %v2103_v30 = vadd.f32 %v2102_v1, %v2101_v63 }
 0x405   : > { %1819 = vst [vmem:[%s3696_s8 + $0x60] sm:$0xff] %v1729_v61  ;;  %v1732_v48 = vadd.f32 %v2103_v30, %v3691_v34 }
 0x407   : > { %1820 = vst [vmem:[%s3696_s8 + $0x68] sm:$0xff] %v1732_v48  ;;  %v2104_v25 = vpop.f32.mrb[28].mxu1 }
 0x408   : > { %v2105_v4 = vpop.f32.mrb[29].mxu1 }
 0x409   : > { %v2106_v16 = vadd.f32 %v2105_v4, %v2104_v25  ;;  %v2107_v7 = vpop.f32.mrb[30].mxu1 }
 0x40a   : > { %v2108_v3 = vpop.f32.mrb[31].mxu1 }
 0x40b   : > { %v1737_v35 = vadd.f32 %v2106_v16, %v3691_v34  ;;  %v2109_v51 = vadd.f32 %v2108_v3, %v2107_v7 }
 0x40d   : > { %1821 = vst [vmem:[%s3696_s8 + $0x70] sm:$0xff] %v1737_v35  ;;  %v1740_v24 = vadd.f32 %v2109_v51, %v3691_v34 }
 0x40f   : > { %1822 = vst [vmem:[%s3696_s8 + $0x78] sm:$0xff] %v1740_v24  ;;  %v2110_v5 = vpop.f32.mrb[32].mxu1 }
 0x410   : > { %v2111_v23 = vpop.f32.mrb[33].mxu1 }
 0x411   : > { %v2112_v15 = vadd.f32 %v2111_v23, %v2110_v5  ;;  %v2113_v28 = vpop.f32.mrb[34].mxu1 }
 0x412   : > { %v2114_v46 = vpop.f32.mrb[35].mxu1 }
 0x413   : > { %v1745_v47 = vadd.f32 %v2112_v15, %v3691_v34  ;;  %v2115_v20 = vadd.f32 %v2114_v46, %v2113_v28 }
 0x415   : > { %1823 = vst [vmem:[%s3696_s8 + $0x80] sm:$0xff] %v1745_v47  ;;  %v1748_v9 = vadd.f32 %v2115_v20, %v3691_v34 }
 0x417   : > { %1824 = vst [vmem:[%s3696_s8 + $0x88] sm:$0xff] %v1748_v9  ;;  %v2116_v40 = vpop.f32.mrb[36].mxu1 }
 0x418   : > { %v2117_v60 = vpop.f32.mrb[37].mxu1 }
 0x419   : > { %v2118_v42 = vadd.f32 %v2117_v60, %v2116_v40  ;;  %v2119_v26 = vpop.f32.mrb[38].mxu1 }
 0x41a   : > { %v2120_v31 = vpop.f32.mrb[39].mxu1 }
 0x41b   : > { %v1753_v39 = vadd.f32 %v2118_v42, %v3691_v34  ;;  %v2121_v44 = vadd.f32 %v2120_v31, %v2119_v26 }
 0x41d   : > { %1825 = vst [vmem:[%s3696_s8 + $0x90] sm:$0xff] %v1753_v39  ;;  %v1756_v21 = vadd.f32 %v2121_v44, %v3691_v34 }
 0x41f   : > { %1826 = vst [vmem:[%s3696_s8 + $0x98] sm:$0xff] %v1756_v21 }
 0x467   : > { %v2122_v19 = vpop.f32.mrb[40].mxu1 }
 0x468   : > { %v2123_v10 = vpop.f32.mrb[41].mxu1 }
 0x469   : > { %v2124_v2 = vadd.f32 %v2123_v10, %v2122_v19  ;;  %v2125_v62 = vpop.f32.mrb[42].mxu1 }
 0x46a   : > { %v2126_v17 = vpop.f32.mrb[43].mxu1 }
 0x46b   : > { %v1761_v37 = vadd.f32 %v2124_v2, %v3691_v34  ;;  %v2127_v27 = vadd.f32 %v2126_v17, %v2125_v62 }
 0x46d   : > { %1827 = vst [vmem:[%s3696_s8 + $0xa0] sm:$0xff] %v1761_v37  ;;  %v1764_v57 = vadd.f32 %v2127_v27, %v3691_v34 }
 0x46f   : > { %1828 = vst [vmem:[%s3696_s8 + $0xa8] sm:$0xff] %v1764_v57  ;;  %v2128_v55 = vpop.f32.mrb[44].mxu1 }
 0x470   : > { %v2129_v38 = vpop.f32.mrb[45].mxu1 }
 0x471   : > { %v2130_v49 = vadd.f32 %v2129_v38, %v2128_v55  ;;  %v2131_v50 = vpop.f32.mrb[46].mxu1 }
 0x472   : > { %v2132_v45 = vpop.f32.mrb[47].mxu1 }
 0x473   : > { %v1769_v52 = vadd.f32 %v2130_v49, %v3691_v34  ;;  %v2133_v54 = vadd.f32 %v2132_v45, %v2131_v50 }
 0x475   : > { %1829 = vst [vmem:[%s3696_s8 + $0xb0] sm:$0xff] %v1769_v52  ;;  %v1772_v36 = vadd.f32 %v2133_v54, %v3691_v34 }
 0x477   : > { %1830 = vst [vmem:[%s3696_s8 + $0xb8] sm:$0xff] %v1772_v36  ;;  %v2134_v32 = vpop.f32.mrb[48].mxu1 }
 0x478   : > { %v2135_v43 = vpop.f32.mrb[49].mxu1 }
 0x479   : > { %v2136_v58 = vadd.f32 %v2135_v43, %v2134_v32  ;;  %v2137_v29 = vpop.f32.mrb[50].mxu1 }
 0x47a   : > { %v2138_v53 = vpop.f32.mrb[51].mxu1 }
 0x47b   : > { %v1777_v0 = vadd.f32 %v2136_v58, %v3691_v34  ;;  %v2139_v6 = vadd.f32 %v2138_v53, %v2137_v29 }
 0x47d   : > { %1831 = vst [vmem:[%s3696_s8 + $0xc0] sm:$0xff] %v1777_v0  ;;  %v1780_v56 = vadd.f32 %v2139_v6, %v3691_v34 }
 0x47f   : > { %1832 = vst [vmem:[%s3696_s8 + $0xc8] sm:$0xff] %v1780_v56  ;;  %v2140_v59 = vpop.f32.mrb[52].mxu1 }
 0x480   : > { %v2141_v13 = vpop.f32.mrb[53].mxu1 }
 0x481   : > { %v2142_v14 = vadd.f32 %v2141_v13, %v2140_v59  ;;  %v2143_v18 = vpop.f32.mrb[54].mxu1 }
 0x482   : > { %v2144_v33 = vpop.f32.mrb[55].mxu1 }
 0x483   : > { %v1785_v12 = vadd.f32 %v2142_v14, %v3691_v34  ;;  %v2145_v8 = vadd.f32 %v2144_v33, %v2143_v18 }
 0x485   : > { %1833 = vst [vmem:[%s3696_s8 + $0xd0] sm:$0xff] %v1785_v12  ;;  %v1788_v22 = vadd.f32 %v2145_v8, %v3691_v34 }
 0x487   : > { %1834 = vst [vmem:[%s3696_s8 + $0xd8] sm:$0xff] %v1788_v22  ;;  %v2146_v41 = vpop.f32.mrb[56].mxu1 }
 0x488   : > { %v2147_v11 = vpop.f32.mrb[57].mxu1 }
 0x489   : > { %v2148_v63 = vadd.f32 %v2147_v11, %v2146_v41  ;;  %v2149_v1 = vpop.f32.mrb[58].mxu1 }
 0x48a   : > { %v2150_v61 = vpop.f32.mrb[59].mxu1 }
 0x48b   : > { %v1793_v30 = vadd.f32 %v2148_v63, %v3691_v34  ;;  %v2151_v48 = vadd.f32 %v2150_v61, %v2149_v1 }
 0x48d   : > { %1835 = vst [vmem:[%s3696_s8 + $0xe0] sm:$0xff] %v1793_v30  ;;  %v1796_v25 = vadd.f32 %v2151_v48, %v3691_v34 }
 0x48f   : > { %1836 = vst [vmem:[%s3696_s8 + $0xe8] sm:$0xff] %v1796_v25  ;;  %v2152_v4 = vpop.f32.mrb[60].mxu1 }
 0x490   : > { %v2153_v16 = vpop.f32.mrb[61].mxu1 }
 0x491   : > { %v2154_v7 = vadd.f32 %v2153_v16, %v2152_v4  ;;  %v2155_v3 = vpop.f32.mrb[62].mxu1 }
 0x492   : > { %v2156_v35 = vpop.f32.mrb[63].mxu1 }
 0x493   : > { %v1801_v51 = vadd.f32 %v2154_v7, %v3691_v34  ;;  %v2157_v24 = vadd.f32 %v2156_v35, %v2155_v3 }
 0x495   : > { %1837 = vst [vmem:[%s3696_s8 + $0xf0] sm:$0xff] %v1801_v51  ;;  %v1804_v5 = vadd.f32 %v2157_v24, %v3691_v34 }
 0x497   : > { %1838 = vst [vmem:[%s3696_s8 + $0xf8] sm:$0xff] %v1804_v5 }
 0x498   : > { %2715 = shalt.err (!%p2712_p8)
}
 0x499   : > { %s2716_s1 = scalar_lea.hbm %s3763_s20, 4096  ;;  %s2720_s16 = scalar_lea.hbm %s3819_s7, 8192 }
 0x49a   : > { %p2717_p10 = scmp.ne.s32.totalorder %s3763_s20, %s2716_s1  ;;  %p2721_p0 = scmp.lt.u32.totalorder %s3763_s20, %s3819_s7 }
 0x49b   : > { %p2722_p5 = scmp.lt.u32.totalorder %s2720_s16, %s2716_s1  ;;  %p2724_p6 = scmp.lt.u32.totalorder %s2716_s1, %s3763_s20 }
 0x49c   : > { %p2718_p11 = pnand %p2717_p10, %p3845_p9 }
 0x49d   : > { %p2723_p7 = por %p2722_p5, %p2721_p0 }
 0x49e   : > { %p2719_p12 = pneg %p2718_p11 }
 0x49f   : > { %p2725_p4 = por %p2724_p6, %p2723_p7 }
 0x4a1   : > { %p2726_p13 = pnand %p2725_p4, %p2719_p12 }
 0x4a3   : > { %2729 = shalt.err (!%p2726_p13)
}
 0x4a4   : > { %s2795_s14 = smov 128   ;;  %s2796_s19 = smov 8  }
 0x4a5   : > { %2184 = dma.vmem_to_hbm [thread:$0]  (%p3845_p9), %s3765_s15, 4096, %s3763_s20, %s1840_s30, %s2795_s14, %s2795_s14, %s2796_s19  }
 0x4a6 PF: > { %s1868_s28 = sand.u32 1, %s2768_s24   ;;  %p3846_p1 = scmp.ne.s32.totalorder %s3834_s29, 0 }
 0x4a7   : > { %p3847_p3 = scmp.ge.s32.totalorder %s2780_s27, 2  ;;  %s1869_s9 = scalar_lea.sflag [#allocation4], %s1868_s28 }
 0x4a9   : > { %p2210_p2 = pnand %p3847_p3, %p3846_p1 }
 0x4ab   : > { %2763 = dma.done.wait (!%p2210_p2), %s1869_s9, 4096  }
 0x4ac   : > { %2765 = vsyncadd (!%p2210_p2), %s1869_s9, 4294963200  ;;  %p23_p8 = scmp.ge.s32.totalorder %s3017_s11, 4   ;;  %s3848_s24 = smov %s2772_s25 }
 0x4ad   : > { %s3849_s25 = smov %s2776_s26  ;;  %s3850_s26 = smov %s3028_s18 }
 0x4ae   : > { %s3851_s27 = smov %s3017_s11  ;;  %25 = sbr.rel (!%p23_p8) target bundleno = 10 (0xa), region = 117 }
 0x4b5   :  { %1874 = vsyncpa [#allocation3], 1 }
 0x4b6   :  { %1876 = vsyncpa [#allocation3 + $0x1], 1 }
 0x4b7   :  { %1877 = vsyncpa [#allocation6], 1 }
 0x4b8   :  { %1878 = vsyncpa [#allocation9], 1 }
 0x4b9   :  { %1879 = vsyncpa [#allocation12], 1 }
 0x4ba   :  { %1880 = vsyncpa [#allocation4], 1 }
 0x4bb   :  { %1882 = vsyncpa [#allocation4 + $0x1], 1 }

</bundles_post_ra>
